<compile_context>
chip_gen: v7x
topology: tpu7x:2x2x1
jax: 0.10.0
libtpu: 0.0.40
codegen_flags: <defaults>
</compile_context>

<pallas_src>
import functools
import math

import jax
import jax.numpy as jnp
from jax.experimental import pallas as pl
from jax.experimental.pallas import tpu as pltpu


def _layernorm_f32(x, gamma, beta, eps=1e-5):
    mu = jnp.mean(x, axis=-1, keepdims=True)
    var = jnp.mean((x - mu) ** 2, axis=-1, keepdims=True)
    return (x - mu) * jax.lax.rsqrt(var + eps) * gamma + beta


# ----------------------------------------------------------------------------
# Kernel: one grid step = (batch block b, layer l).  The output block is
# revisited across l (layer axis innermost + "arbitrary") and carries the
# activation between layers; reordering the grid would break this.
# ----------------------------------------------------------------------------
def encoder_stack_kernel(
    x_ref,        # (Bb, S, D)   f32   input activations (read at l == 0 only)
    wqkv_ref,     # (1, D, 3D)   bf16  fused [Wq^T | Wk^T | Wv^T]
    wo_ref,       # (1, D, D)    bf16
    w1_ref,       # (1, D, F)    bf16
    w2_ref,       # (1, F, D)    bf16
    bqkv_ref,     # (1, 1, 3D)   f32   fused [bq | bk | bv]
    b1_ref,       # (1, 1, F)    f32
    vec_ref,      # (1, 8, D)    f32   rows = [bo, g1, be1, b2, g2, be2, 0, 0]
    o_ref,        # (Bb, S, D)   f32   revisited across l: carries activation
    *, num_heads,
):
    l = pl.program_id(1)
    Bb, S, D = o_ref.shape
    H = num_heads
    dh = D // H
    scale = 1.0 / math.sqrt(dh)

    # Layer 0 consumes the kernel input; later layers consume the previous
    # layer's output, which stays resident in the revisited output block.
    @pl.when(l == 0)
    def _():
        o_ref[...] = x_ref[...]

    x = o_ref[...].reshape(Bb * S, D)            # (Bb*S, D) f32
    x_mm = x.astype(jnp.bfloat16)

    vec = vec_ref[0]                             # (8, D) f32
    bo, g1, be1 = vec[0:1], vec[1:2], vec[2:3]
    b2, g2, be2 = vec[3:4], vec[4:5], vec[5:6]

    # --- fused QKV in-projection: bf16 operands, f32 MXU accumulation -------
    qkv = jnp.dot(x_mm, wqkv_ref[0],
                  preferred_element_type=jnp.float32) + bqkv_ref[0]
    q = qkv[:, :D] * scale                       # fold 1/sqrt(d_head) into q
    k = qkv[:, D:2 * D]
    v = qkv[:, 2 * D:]

    # --- attention: static loop over the Bb batch rows -----------------------
    # Heads on a leading (non-lane) axis -> one batched einsum per stage
    # instead of per-head lane-sliced matmuls.
    ctx_parts = []
    for bi in range(Bb):
        lo, hi = bi * S, (bi + 1) * S
        qh = jnp.transpose(q[lo:hi].astype(jnp.bfloat16).reshape(S, H, dh), (1, 0, 2))
        kh = jnp.transpose(k[lo:hi].astype(jnp.bfloat16).reshape(S, H, dh), (1, 0, 2))
        vh = jnp.transpose(v[lo:hi].astype(jnp.bfloat16).reshape(S, H, dh), (1, 0, 2))

        s = jnp.einsum("hqd,hkd->hqk", qh, kh,
                       preferred_element_type=jnp.float32)   # (H, S, S) f32
        s = s - jnp.max(s, axis=-1, keepdims=True)
        p = jnp.exp(s)                                        # f32 EUP
        denom = jnp.sum(p, axis=-1, keepdims=True)
        p = p * pl.reciprocal(denom, approx=True)             # EUP reciprocal

        cb = jnp.einsum("hqk,hkd->hqd", p.astype(jnp.bfloat16), vh,
                        preferred_element_type=jnp.float32)   # (H, S, dh) f32
        ctx_parts.append(jnp.transpose(cb, (1, 0, 2)).reshape(S, D))
    ctx = ctx_parts[0] if Bb == 1 else jnp.concatenate(ctx_parts, axis=0)

    # --- output projection + residual + LayerNorm1 (f32) ---------------------
    attn = jnp.dot(ctx.astype(jnp.bfloat16), wo_ref[0],
                   preferred_element_type=jnp.float32) + bo
    x1 = x + attn                                # dropout1 == identity (eval)
    x1n = _layernorm_f32(x1, g1, be1)

    # --- ReLU FFN + residual + LayerNorm2 -------------------------------------
    h1 = jnp.dot(x1n.astype(jnp.bfloat16), w1_ref[0],
                 preferred_element_type=jnp.float32) + b1_ref[0]
    h1 = jnp.maximum(h1, 0.0)
    ff = jnp.dot(h1.astype(jnp.bfloat16), w2_ref[0],
                 preferred_element_type=jnp.float32) + b2
    x2 = x1n + ff                                # dropout2 == identity (eval)
    o_ref[...] = _layernorm_f32(x2, g2, be2).reshape(Bb, S, D)


# ----------------------------------------------------------------------------
# Wrapper: single pallas_call over the whole stack.
# ----------------------------------------------------------------------------
def pallas_transformer(x, stacked, num_heads, *, block_batch=None,
                       vmem_limit_bytes=None):
    B, S, D = x.shape
    L = stacked["wqkv"].shape[0]
    assert D % num_heads == 0, "d_model must be divisible by num_heads"

    if block_batch is None:
        block_batch = next((c for c in (4, 2, 1) if B % c == 0), 1)
    Bb = block_batch
    assert B % Bb == 0, "batch must be divisible by block_batch"

    if vmem_limit_bytes is None:
        # ~80% of physical VMEM: ~100 MiB on v5e/v6e, ~51 MiB on v7x.
        try:
            vmem_limit_bytes = int(0.8 * pltpu.get_tpu_info().vmem_capacity_bytes)
        except Exception:
            vmem_limit_bytes = 64 * 1024 * 1024

    weight_names = ["wqkv", "wo", "w1", "w2", "bqkv", "b1", "vecs"]
    args = [stacked[n] for n in weight_names]

    def layer_spec(arr):
        nd = arr.ndim
        # block picks the layer-l slab of the stacked parameter
        return pl.BlockSpec((1,) + arr.shape[1:],
                            lambda b, l, _nd=nd: (l,) + (0,) * (_nd - 1))

    # x's block index is constant in l -> DMA'd once per batch block, not
    # re-fetched for every layer.
    in_specs = ([pl.BlockSpec((Bb, S, D), lambda b, l: (b, 0, 0))]
                + [layer_spec(a) for a in args])

    kernel = functools.partial(encoder_stack_kernel, num_heads=num_heads)

    return pl.pallas_call(
        kernel,
        out_shape=jax.ShapeDtypeStruct((B, S, D), x.dtype),
        grid_spec=pltpu.PrefetchScalarGridSpec(
            num_scalar_prefetch=0,
            grid=(B // Bb, L),                   # batch blocks parallel, layers sequential
            in_specs=in_specs,
            out_specs=pl.BlockSpec((Bb, S, D), lambda b, l: (b, 0, 0)),
        ),
        compiler_params=pltpu.CompilerParams(
            dimension_semantics=("parallel", "arbitrary"),
            vmem_limit_bytes=vmem_limit_bytes),
    )(x, *args)


# ----------------------------------------------------------------------------
# Pure-JAX reference (mirrors torch.nn.TransformerEncoderLayer, post-norm, eval)
# ----------------------------------------------------------------------------
def ref_transformer(x, layer_params, num_heads):
    for p in layer_params:
        B, S, D = x.shape
        Dh = D // num_heads
        q = x @ p["wq"] + p["bq"][0]
        k = x @ p["wk"] + p["bk"][0]
        v = x @ p["wv"] + p["bv"][0]
        qh = q.reshape(B, S, num_heads, Dh).transpose(0, 2, 1, 3)
        kh = k.reshape(B, S, num_heads, Dh).transpose(0, 2, 1, 3)
        vh = v.reshape(B, S, num_heads, Dh).transpose(0, 2, 1, 3)
        s = jnp.einsum("bhqd,bhkd->bhqk", qh, kh) / math.sqrt(Dh)
        att = jax.nn.softmax(s, axis=-1)
        a = jnp.einsum("bhqk,bhkd->bhqd", att, vh)
        a = a.transpose(0, 2, 1, 3).reshape(B, S, D)
        attn = a @ p["wo"] + p["bo"][0]
        x1 = x + attn
        x1n = _layernorm_f32(x1, p["g1"][0], p["be1"][0])
        ff = jnp.maximum(x1n @ p["w1"] + p["b1"][0], 0.0) @ p["w2"] + p["b2"][0]
        x = _layernorm_f32(x1n + ff, p["g2"][0], p["be2"][0])
    return x


# ----------------------------------------------------------------------------
# Deterministic parameter init (shapes follow nn.TransformerEncoderLayer)
# ----------------------------------------------------------------------------
def init_layer_params(key, d_model, ffwd_dim):
    ks = jax.random.split(key, 10)
    s = 0.05
    return dict(
        wq=s * jax.random.normal(ks[0], (d_model, d_model), jnp.float32),
        wk=s * jax.random.normal(ks[1], (d_model, d_model), jnp.float32),
        wv=s * jax.random.normal(ks[2], (d_model, d_model), jnp.float32),
        bq=s * jax.random.normal(ks[3], (1, d_model), jnp.float32),
        bk=s * jax.random.normal(ks[4], (1, d_model), jnp.float32),
        bv=s * jax.random.normal(ks[5], (1, d_model), jnp.float32),
        wo=s * jax.random.normal(ks[6], (d_model, d_model), jnp.float32),
        bo=jnp.zeros((1, d_model), jnp.float32),
        g1=jnp.ones((1, d_model), jnp.float32),
        be1=jnp.zeros((1, d_model), jnp.float32),
        g2=jnp.ones((1, d_model), jnp.float32),
        be2=jnp.zeros((1, d_model), jnp.float32),
        w1=s * jax.random.normal(ks[7], (d_model, ffwd_dim), jnp.float32),
        b1=s * jax.random.normal(ks[8], (1, ffwd_dim), jnp.float32),
        w2=s * jax.random.normal(ks[9], (ffwd_dim, d_model), jnp.float32),
        b2=jnp.zeros((1, d_model), jnp.float32),
    )


def stack_layer_params(layer_params, matmul_dtype=jnp.bfloat16):
    """Stack per-layer params with a leading L axis; fuse QKV; pack vectors."""
    L = len(layer_params)
    d_model = layer_params[0]["wq"].shape[0]

    def st(name):
        return jnp.stack([p[name] for p in layer_params], axis=0)

    wqkv = jnp.concatenate([st("wq"), st("wk"), st("wv")], axis=-1)  # (L, D, 3D)
    bqkv = jnp.concatenate([st("bq"), st("bk"), st("bv")], axis=-1)  # (L, 1, 3D)
    # rows: [bo, g1, be1, b2, g2, be2, pad, pad] -> one (L, 8, D) DMA per layer
    vec_rows = [st("bo"), st("g1"), st("be1"), st("b2"), st("g2"), st("be2")]
    vecs = jnp.concatenate(vec_rows + [jnp.zeros((L, 2, d_model), jnp.float32)],
                           axis=1)                                   # (L, 8, D)
    return dict(
        wqkv=wqkv.astype(matmul_dtype),
        wo=st("wo").astype(matmul_dtype),
        w1=st("w1").astype(matmul_dtype),
        w2=st("w2").astype(matmul_dtype),
        bqkv=bqkv.astype(jnp.float32),
        b1=st("b1").astype(jnp.float32),
        vecs=vecs.astype(jnp.float32),
    )


if __name__ == "__main__":
    # Small but lane-dense config (D, F multiples of 128 per perf review).
    num_layers = 2
    d_model = 128
    num_heads = 4
    ffwd_dim = 256
    batch = 4
    seq = 16

    root = jax.random.PRNGKey(0)
    x_key, *layer_keys = jax.random.split(root, num_layers + 1)
    x = jax.random.normal(x_key, (batch, seq, d_model), jnp.float32)
    layer_params = [init_layer_params(k, d_model, ffwd_dim) for k in layer_keys]
    stacked = stack_layer_params(layer_params, matmul_dtype=jnp.bfloat16)

    out = pallas_transformer(x, stacked, num_heads, block_batch=2)
    out = jax.block_until_ready(out)

    ref = ref_transformer(x, layer_params, num_heads)
    assert out.shape == (batch, seq, d_model)
    err = float(jnp.max(jnp.abs(out - ref)))
    # bf16 matmul operands + approx reciprocal vs f32 reference -> loosened tol
    assert err < 5e-2, f"mismatch vs JAX reference: max abs err = {err}"

    print("KERNEL_OK")
</pallas_src>

<mosaic_0001>
module attributes {stable_mosaic.version = 11 : i64} {
  func.func @encoder_stack_kernel(%arg0: i32, %arg1: i32, %arg2: memref<2x16x128xf32, #tpu.memory_space<vmem>>, %arg3: memref<1x128x384xbf16, #tpu.memory_space<vmem>>, %arg4: memref<1x128x128xbf16, #tpu.memory_space<vmem>>, %arg5: memref<1x128x256xbf16, #tpu.memory_space<vmem>>, %arg6: memref<1x256x128xbf16, #tpu.memory_space<vmem>>, %arg7: memref<1x1x384xf32, #tpu.memory_space<vmem>>, %arg8: memref<1x1x256xf32, #tpu.memory_space<vmem>>, %arg9: memref<1x8x128xf32, #tpu.memory_space<vmem>>, %arg10: memref<2x16x128xf32, #tpu.memory_space<vmem>>) attributes {dimension_semantics = [#tpu.dimension_semantics<parallel>, #tpu.dimension_semantics<arbitrary>], iteration_bounds = array<i64: 2, 2>, scalar_prefetch = 0 : i64, scratch_operands = 0 : i64, tpu.core_type = #tpu.core_type<tc>, window_params = [{transform_indices = @transform_0, window_bounds = array<i64: 2, 16, 128>}, {transform_indices = @transform_1, window_bounds = array<i64: 1, 128, 384>}, {transform_indices = @transform_2, window_bounds = array<i64: 1, 128, 128>}, {transform_indices = @transform_3, window_bounds = array<i64: 1, 128, 256>}, {transform_indices = @transform_4, window_bounds = array<i64: 1, 256, 128>}, {transform_indices = @transform_5, window_bounds = array<i64: 1, 1, 384>}, {transform_indices = @transform_6, window_bounds = array<i64: 1, 1, 256>}, {transform_indices = @transform_7, window_bounds = array<i64: 1, 8, 128>}, {transform_indices = @transform_8, window_bounds = array<i64: 2, 16, 128>}]} {
    %c0_i32 = arith.constant 0 : i32
    %0 = arith.cmpi eq, %arg1, %c0_i32 : i32
    %1 = arith.extui %0 : i1 to i32
    %c0_i32_0 = arith.constant 0 : i32
    %2 = arith.cmpi ne, %1, %c0_i32_0 : i32
    scf.if %2 {
      %c0_50 = arith.constant 0 : index
      %c0_51 = arith.constant 0 : index
      %c0_52 = arith.constant 0 : index
      %151 = vector.load %arg2[%c0_50, %c0_51, %c0_52] : memref<2x16x128xf32, #tpu.memory_space<vmem>>, vector<2x16x128xf32>
      %c0_53 = arith.constant 0 : index
      %c0_54 = arith.constant 0 : index
      %c0_55 = arith.constant 0 : index
      %152 = vector.load %arg10[%c0_53, %c0_54, %c0_55] : memref<2x16x128xf32, #tpu.memory_space<vmem>>, vector<2x16x128xf32>
      tpu.vector_store %arg10[%c0_53, %c0_54, %c0_55], %151 {strides = array<i32>} : memref<2x16x128xf32, #tpu.memory_space<vmem>>, vector<2x16x128xf32>,
    } else {
    }
    %c0 = arith.constant 0 : index
    %c0_1 = arith.constant 0 : index
    %c0_2 = arith.constant 0 : index
    %3 = vector.load %arg10[%c0, %c0_1, %c0_2] : memref<2x16x128xf32, #tpu.memory_space<vmem>>, vector<2x16x128xf32>
    %4 = vector.shape_cast %3 : vector<2x16x128xf32> to vector<32x128xf32>
    %5 = arith.truncf %4 : vector<32x128xf32> to vector<32x128xbf16>
    %c0_3 = arith.constant 0 : index
    %c0_4 = arith.constant 0 : index
    %c0_5 = arith.constant 0 : index
    %6 = vector.load %arg9[%c0_3, %c0_4, %c0_5] : memref<1x8x128xf32, #tpu.memory_space<vmem>>, vector<1x8x128xf32>
    %7 = vector.shape_cast %6 : vector<1x8x128xf32> to vector<8x128xf32>
    %8 = vector.extract_strided_slice %7 {offsets = [0, 0], sizes = [1, 128], strides = [1, 1]} : vector<8x128xf32> to vector<1x128xf32>
    %9 = vector.extract_strided_slice %7 {offsets = [1, 0], sizes = [1, 128], strides = [1, 1]} : vector<8x128xf32> to vector<1x128xf32>
    %10 = vector.extract_strided_slice %7 {offsets = [2, 0], sizes = [1, 128], strides = [1, 1]} : vector<8x128xf32> to vector<1x128xf32>
    %11 = vector.extract_strided_slice %7 {offsets = [3, 0], sizes = [1, 128], strides = [1, 1]} : vector<8x128xf32> to vector<1x128xf32>
    %12 = vector.extract_strided_slice %7 {offsets = [4, 0], sizes = [1, 128], strides = [1, 1]} : vector<8x128xf32> to vector<1x128xf32>
    %13 = vector.extract_strided_slice %7 {offsets = [5, 0], sizes = [1, 128], strides = [1, 1]} : vector<8x128xf32> to vector<1x128xf32>
    %c0_6 = arith.constant 0 : index
    %c0_7 = arith.constant 0 : index
    %c0_8 = arith.constant 0 : index
    %14 = vector.load %arg3[%c0_6, %c0_7, %c0_8] : memref<1x128x384xbf16, #tpu.memory_space<vmem>>, vector<1x128x384xbf16>
    %15 = vector.shape_cast %14 : vector<1x128x384xbf16> to vector<128x384xbf16>
    %cst = arith.constant dense<0.000000e+00> : vector<32x384xf32>
    %16 = tpu.matmul %5, %15, %cst {dimension_numbers = #tpu.dot_dimension_numbers<[1], [0], [0], [1], [0, 0, 1, 1], [], []>} : vector<32x128xbf16>, vector<128x384xbf16>, vector<32x384xf32> -> vector<32x384xf32>
    %c0_9 = arith.constant 0 : index
    %c0_10 = arith.constant 0 : index
    %c0_11 = arith.constant 0 : index
    %17 = vector.load %arg7[%c0_9, %c0_10, %c0_11] : memref<1x1x384xf32, #tpu.memory_space<vmem>>, vector<1x1x384xf32>
    %18 = vector.shape_cast %17 : vector<1x1x384xf32> to vector<1x384xf32>
    %19 = vector.broadcast %18 : vector<1x384xf32> to vector<32x384xf32>
    %20 = arith.addf %16, %19 : vector<32x384xf32>
    %21 = vector.extract_strided_slice %20 {offsets = [0, 0], sizes = [32, 128], strides = [1, 1]} : vector<32x384xf32> to vector<32x128xf32>
    %cst_12 = arith.constant 0.176776692 : f32
    %22 = vector.broadcast %cst_12 : f32 to vector<32x128xf32>
    %23 = arith.mulf %21, %22 : vector<32x128xf32>
    %24 = vector.extract_strided_slice %20 {offsets = [0, 128], sizes = [32, 128], strides = [1, 1]} : vector<32x384xf32> to vector<32x128xf32>
    %25 = vector.extract_strided_slice %20 {offsets = [0, 256], sizes = [32, 128], strides = [1, 1]} : vector<32x384xf32> to vector<32x128xf32>
    %26 = vector.extract_strided_slice %23 {offsets = [0, 0], sizes = [16, 128], strides = [1, 1]} : vector<32x128xf32> to vector<16x128xf32>
    %27 = arith.truncf %26 : vector<16x128xf32> to vector<16x128xbf16>
    %28 = vector.shape_cast %27 : vector<16x128xbf16> to vector<16x4x32xbf16>
    %29 = tpu.transpose %28, [1, 0, 2] : vector<16x4x32xbf16> -> vector<4x16x32xbf16>
    %30 = vector.extract_strided_slice %24 {offsets = [0, 0], sizes = [16, 128], strides = [1, 1]} : vector<32x128xf32> to vector<16x128xf32>
    %31 = arith.truncf %30 : vector<16x128xf32> to vector<16x128xbf16>
    %32 = vector.shape_cast %31 : vector<16x128xbf16> to vector<16x4x32xbf16>
    %33 = tpu.transpose %32, [1, 0, 2] : vector<16x4x32xbf16> -> vector<4x16x32xbf16>
    %34 = vector.extract_strided_slice %25 {offsets = [0, 0], sizes = [16, 128], strides = [1, 1]} : vector<32x128xf32> to vector<16x128xf32>
    %35 = arith.truncf %34 : vector<16x128xf32> to vector<16x128xbf16>
    %36 = vector.shape_cast %35 : vector<16x128xbf16> to vector<16x4x32xbf16>
    %37 = tpu.transpose %36, [1, 0, 2] : vector<16x4x32xbf16> -> vector<4x16x32xbf16>
    "tpu.trace_start"() <{level = 10 : i32, message = "hqd,hkd->hqk"}> : () -> ()
    %cst_13 = arith.constant dense<0.000000e+00> : vector<4x16x16xf32>
    %38 = tpu.matmul %29, %33, %cst_13 {dimension_numbers = #tpu.dot_dimension_numbers<[2], [2], [1], [1], [0, 0, 0, 1, 1, 1], [0], [0]>} : vector<4x16x32xbf16>, vector<4x16x32xbf16>, vector<4x16x16xf32> -> vector<4x16x16xf32>
    "tpu.trace_stop"() : () -> ()
    %cst_14 = arith.constant dense<0xFF800000> : vector<4x16xf32>
    %39 = vector.multi_reduction <maximumf>, %38, %cst_14 [2] : vector<4x16x16xf32> to vector<4x16xf32>
    %40 = vector.shape_cast %39 : vector<4x16xf32> to vector<4x16x1xf32>
    %41 = vector.broadcast %40 : vector<4x16x1xf32> to vector<4x16x16xf32>
    %42 = arith.subf %38, %41 : vector<4x16x16xf32>
    %43 = math.exp %42 : vector<4x16x16xf32>
    %cst_15 = arith.constant dense<0.000000e+00> : vector<4x16xf32>
    %44 = vector.multi_reduction <add>, %43, %cst_15 [2] : vector<4x16x16xf32> to vector<4x16xf32>
    %45 = vector.shape_cast %44 : vector<4x16xf32> to vector<4x16x1xf32>
    %46 = tpu.reciprocal %45 {approx = true} : vector<4x16x1xf32> -> vector<4x16x1xf32>
    %47 = vector.broadcast %46 : vector<4x16x1xf32> to vector<4x16x16xf32>
    %48 = arith.mulf %43, %47 : vector<4x16x16xf32>
    %49 = arith.truncf %48 : vector<4x16x16xf32> to vector<4x16x16xbf16>
    "tpu.trace_start"() <{level = 10 : i32, message = "hqk,hkd->hqd"}> : () -> ()
    %cst_16 = arith.constant dense<0.000000e+00> : vector<4x16x32xf32>
    %50 = tpu.matmul %49, %37, %cst_16 {dimension_numbers = #tpu.dot_dimension_numbers<[2], [1], [1], [2], [0, 0, 0, 1, 1, 2], [0], [0]>} : vector<4x16x16xbf16>, vector<4x16x32xbf16>, vector<4x16x32xf32> -> vector<4x16x32xf32>
    "tpu.trace_stop"() : () -> ()
    %51 = tpu.transpose %50, [1, 0, 2] : vector<4x16x32xf32> -> vector<16x4x32xf32>
    %52 = vector.shape_cast %51 : vector<16x4x32xf32> to vector<16x128xf32>
    %53 = vector.extract_strided_slice %23 {offsets = [16, 0], sizes = [16, 128], strides = [1, 1]} : vector<32x128xf32> to vector<16x128xf32>
    %54 = arith.truncf %53 : vector<16x128xf32> to vector<16x128xbf16>
    %55 = vector.shape_cast %54 : vector<16x128xbf16> to vector<16x4x32xbf16>
    %56 = tpu.transpose %55, [1, 0, 2] : vector<16x4x32xbf16> -> vector<4x16x32xbf16>
    %57 = vector.extract_strided_slice %24 {offsets = [16, 0], sizes = [16, 128], strides = [1, 1]} : vector<32x128xf32> to vector<16x128xf32>
    %58 = arith.truncf %57 : vector<16x128xf32> to vector<16x128xbf16>
    %59 = vector.shape_cast %58 : vector<16x128xbf16> to vector<16x4x32xbf16>
    %60 = tpu.transpose %59, [1, 0, 2] : vector<16x4x32xbf16> -> vector<4x16x32xbf16>
    %61 = vector.extract_strided_slice %25 {offsets = [16, 0], sizes = [16, 128], strides = [1, 1]} : vector<32x128xf32> to vector<16x128xf32>
    %62 = arith.truncf %61 : vector<16x128xf32> to vector<16x128xbf16>
    %63 = vector.shape_cast %62 : vector<16x128xbf16> to vector<16x4x32xbf16>
    %64 = tpu.transpose %63, [1, 0, 2] : vector<16x4x32xbf16> -> vector<4x16x32xbf16>
    "tpu.trace_start"() <{level = 10 : i32, message = "hqd,hkd->hqk"}> : () -> ()
    %cst_17 = arith.constant dense<0.000000e+00> : vector<4x16x16xf32>
    %65 = tpu.matmul %56, %60, %cst_17 {dimension_numbers = #tpu.dot_dimension_numbers<[2], [2], [1], [1], [0, 0, 0, 1, 1, 1], [0], [0]>} : vector<4x16x32xbf16>, vector<4x16x32xbf16>, vector<4x16x16xf32> -> vector<4x16x16xf32>
    "tpu.trace_stop"() : () -> ()
    %cst_18 = arith.constant dense<0xFF800000> : vector<4x16xf32>
    %66 = vector.multi_reduction <maximumf>, %65, %cst_18 [2] : vector<4x16x16xf32> to vector<4x16xf32>
    %67 = vector.shape_cast %66 : vector<4x16xf32> to vector<4x16x1xf32>
    %68 = vector.broadcast %67 : vector<4x16x1xf32> to vector<4x16x16xf32>
    %69 = arith.subf %65, %68 : vector<4x16x16xf32>
    %70 = math.exp %69 : vector<4x16x16xf32>
    %cst_19 = arith.constant dense<0.000000e+00> : vector<4x16xf32>
    %71 = vector.multi_reduction <add>, %70, %cst_19 [2] : vector<4x16x16xf32> to vector<4x16xf32>
    %72 = vector.shape_cast %71 : vector<4x16xf32> to vector<4x16x1xf32>
    %73 = tpu.reciprocal %72 {approx = true} : vector<4x16x1xf32> -> vector<4x16x1xf32>
    %74 = vector.broadcast %73 : vector<4x16x1xf32> to vector<4x16x16xf32>
    %75 = arith.mulf %70, %74 : vector<4x16x16xf32>
    %76 = arith.truncf %75 : vector<4x16x16xf32> to vector<4x16x16xbf16>
    "tpu.trace_start"() <{level = 10 : i32, message = "hqk,hkd->hqd"}> : () -> ()
    %cst_20 = arith.constant dense<0.000000e+00> : vector<4x16x32xf32>
    %77 = tpu.matmul %76, %64, %cst_20 {dimension_numbers = #tpu.dot_dimension_numbers<[2], [1], [1], [2], [0, 0, 0, 1, 1, 2], [0], [0]>} : vector<4x16x16xbf16>, vector<4x16x32xbf16>, vector<4x16x32xf32> -> vector<4x16x32xf32>
    "tpu.trace_stop"() : () -> ()
    %78 = tpu.transpose %77, [1, 0, 2] : vector<4x16x32xf32> -> vector<16x4x32xf32>
    %79 = vector.shape_cast %78 : vector<16x4x32xf32> to vector<16x128xf32>
    %80 = tpu.concatenate %52, %79 in 0 : vector<16x128xf32>, vector<16x128xf32> -> vector<32x128xf32>
    %81 = arith.truncf %80 : vector<32x128xf32> to vector<32x128xbf16>
    %c0_21 = arith.constant 0 : index
    %c0_22 = arith.constant 0 : index
    %c0_23 = arith.constant 0 : index
    %82 = vector.load %arg4[%c0_21, %c0_22, %c0_23] : memref<1x128x128xbf16, #tpu.memory_space<vmem>>, vector<1x128x128xbf16>
    %83 = vector.shape_cast %82 : vector<1x128x128xbf16> to vector<128x128xbf16>
    %cst_24 = arith.constant dense<0.000000e+00> : vector<32x128xf32>
    %84 = tpu.matmul %81, %83, %cst_24 {dimension_numbers = #tpu.dot_dimension_numbers<[1], [0], [0], [1], [0, 0, 1, 1], [], []>} : vector<32x128xbf16>, vector<128x128xbf16>, vector<32x128xf32> -> vector<32x128xf32>
    %85 = vector.broadcast %8 : vector<1x128xf32> to vector<32x128xf32>
    %86 = arith.addf %84, %85 : vector<32x128xf32>
    %87 = arith.addf %4, %86 : vector<32x128xf32>
    %cst_25 = arith.constant dense<0.000000e+00> : vector<32xf32>
    %88 = vector.multi_reduction <add>, %87, %cst_25 [1] : vector<32x128xf32> to vector<32xf32>
    %89 = vector.shape_cast %88 : vector<32xf32> to vector<32x1xf32>
    %cst_26 = arith.constant 1.280000e+02 : f32
    %90 = vector.broadcast %cst_26 : f32 to vector<32x1xf32>
    %91 = arith.divf %89, %90 : vector<32x1xf32>
    %92 = vector.broadcast %91 : vector<32x1xf32> to vector<32x128xf32>
    %93 = arith.subf %87, %92 : vector<32x128xf32>
    %94 = arith.mulf %93, %93 : vector<32x128xf32>
    %cst_27 = arith.constant dense<0.000000e+00> : vector<32xf32>
    %95 = vector.multi_reduction <add>, %94, %cst_27 [1] : vector<32x128xf32> to vector<32xf32>
    %96 = vector.shape_cast %95 : vector<32xf32> to vector<32x1xf32>
    %cst_28 = arith.constant 1.280000e+02 : f32
    %97 = vector.broadcast %cst_28 : f32 to vector<32x1xf32>
    %98 = arith.divf %96, %97 : vector<32x1xf32>
    %99 = vector.broadcast %91 : vector<32x1xf32> to vector<32x128xf32>
    %100 = arith.subf %87, %99 : vector<32x128xf32>
    %cst_29 = arith.constant 9.99999974E-6 : f32
    %101 = vector.broadcast %cst_29 : f32 to vector<32x1xf32>
    %102 = arith.addf %98, %101 : vector<32x1xf32>
    %103 = math.rsqrt %102 : vector<32x1xf32>
    %104 = vector.broadcast %103 : vector<32x1xf32> to vector<32x128xf32>
    %105 = arith.mulf %100, %104 : vector<32x128xf32>
    %106 = vector.broadcast %9 : vector<1x128xf32> to vector<32x128xf32>
    %107 = arith.mulf %105, %106 : vector<32x128xf32>
    %108 = vector.broadcast %10 : vector<1x128xf32> to vector<32x128xf32>
    %109 = arith.addf %107, %108 : vector<32x128xf32>
    %110 = arith.truncf %109 : vector<32x128xf32> to vector<32x128xbf16>
    %c0_30 = arith.constant 0 : index
    %c0_31 = arith.constant 0 : index
    %c0_32 = arith.constant 0 : index
    %111 = vector.load %arg5[%c0_30, %c0_31, %c0_32] : memref<1x128x256xbf16, #tpu.memory_space<vmem>>, vector<1x128x256xbf16>
    %112 = vector.shape_cast %111 : vector<1x128x256xbf16> to vector<128x256xbf16>
    %cst_33 = arith.constant dense<0.000000e+00> : vector<32x256xf32>
    %113 = tpu.matmul %110, %112, %cst_33 {dimension_numbers = #tpu.dot_dimension_numbers<[1], [0], [0], [1], [0, 0, 1, 1], [], []>} : vector<32x128xbf16>, vector<128x256xbf16>, vector<32x256xf32> -> vector<32x256xf32>
    %c0_34 = arith.constant 0 : index
    %c0_35 = arith.constant 0 : index
    %c0_36 = arith.constant 0 : index
    %114 = vector.load %arg8[%c0_34, %c0_35, %c0_36] : memref<1x1x256xf32, #tpu.memory_space<vmem>>, vector<1x1x256xf32>
    %115 = vector.shape_cast %114 : vector<1x1x256xf32> to vector<1x256xf32>
    %116 = vector.broadcast %115 : vector<1x256xf32> to vector<32x256xf32>
    %117 = arith.addf %113, %116 : vector<32x256xf32>
    %cst_37 = arith.constant 0.000000e+00 : f32
    %118 = vector.broadcast %cst_37 : f32 to vector<32x256xf32>
    %119 = arith.maximumf %117, %118 : vector<32x256xf32>
    %120 = arith.truncf %119 : vector<32x256xf32> to vector<32x256xbf16>
    %c0_38 = arith.constant 0 : index
    %c0_39 = arith.constant 0 : index
    %c0_40 = arith.constant 0 : index
    %121 = vector.load %arg6[%c0_38, %c0_39, %c0_40] : memref<1x256x128xbf16, #tpu.memory_space<vmem>>, vector<1x256x128xbf16>
    %122 = vector.shape_cast %121 : vector<1x256x128xbf16> to vector<256x128xbf16>
    %cst_41 = arith.constant dense<0.000000e+00> : vector<32x128xf32>
    %123 = tpu.matmul %120, %122, %cst_41 {dimension_numbers = #tpu.dot_dimension_numbers<[1], [0], [0], [1], [0, 0, 1, 1], [], []>} : vector<32x256xbf16>, vector<256x128xbf16>, vector<32x128xf32> -> vector<32x128xf32>
    %124 = vector.broadcast %11 : vector<1x128xf32> to vector<32x128xf32>
    %125 = arith.addf %123, %124 : vector<32x128xf32>
    %126 = arith.addf %109, %125 : vector<32x128xf32>
    %cst_42 = arith.constant dense<0.000000e+00> : vector<32xf32>
    %127 = vector.multi_reduction <add>, %126, %cst_42 [1] : vector<32x128xf32> to vector<32xf32>
    %128 = vector.shape_cast %127 : vector<32xf32> to vector<32x1xf32>
    %cst_43 = arith.constant 1.280000e+02 : f32
    %129 = vector.broadcast %cst_43 : f32 to vector<32x1xf32>
    %130 = arith.divf %128, %129 : vector<32x1xf32>
    %131 = vector.broadcast %130 : vector<32x1xf32> to vector<32x128xf32>
    %132 = arith.subf %126, %131 : vector<32x128xf32>
    %133 = arith.mulf %132, %132 : vector<32x128xf32>
    %cst_44 = arith.constant dense<0.000000e+00> : vector<32xf32>
    %134 = vector.multi_reduction <add>, %133, %cst_44 [1] : vector<32x128xf32> to vector<32xf32>
    %135 = vector.shape_cast %134 : vector<32xf32> to vector<32x1xf32>
    %cst_45 = arith.constant 1.280000e+02 : f32
    %136 = vector.broadcast %cst_45 : f32 to vector<32x1xf32>
    %137 = arith.divf %135, %136 : vector<32x1xf32>
    %138 = vector.broadcast %130 : vector<32x1xf32> to vector<32x128xf32>
    %139 = arith.subf %126, %138 : vector<32x128xf32>
    %cst_46 = arith.constant 9.99999974E-6 : f32
    %140 = vector.broadcast %cst_46 : f32 to vector<32x1xf32>
    %141 = arith.addf %137, %140 : vector<32x1xf32>
    %142 = math.rsqrt %141 : vector<32x1xf32>
    %143 = vector.broadcast %142 : vector<32x1xf32> to vector<32x128xf32>
    %144 = arith.mulf %139, %143 : vector<32x128xf32>
    %145 = vector.broadcast %12 : vector<1x128xf32> to vector<32x128xf32>
    %146 = arith.mulf %144, %145 : vector<32x128xf32>
    %147 = vector.broadcast %13 : vector<1x128xf32> to vector<32x128xf32>
    %148 = arith.addf %146, %147 : vector<32x128xf32>
    %149 = vector.shape_cast %148 : vector<32x128xf32> to vector<2x16x128xf32>
    %c0_47 = arith.constant 0 : index
    %c0_48 = arith.constant 0 : index
    %c0_49 = arith.constant 0 : index
    %150 = vector.load %arg10[%c0_47, %c0_48, %c0_49] : memref<2x16x128xf32, #tpu.memory_space<vmem>>, vector<2x16x128xf32>
    tpu.vector_store %arg10[%c0_47, %c0_48, %c0_49], %149 {strides = array<i32>} : memref<2x16x128xf32, #tpu.memory_space<vmem>>, vector<2x16x128xf32>,
    return
  }
  func.func @transform_0(%arg0: i32, %arg1: i32) -> (i32, i32, i32) {
    %c0_i32 = arith.constant 0 : i32
    %c0_i32_0 = arith.constant 0 : i32
    %c0_i32_1 = arith.constant 0 : i32
    return %arg0, %c0_i32, %c0_i32_0 : i32, i32, i32
  }
  func.func @transform_1(%arg0: i32, %arg1: i32) -> (i32, i32, i32) {
    %c0_i32 = arith.constant 0 : i32
    %c0_i32_0 = arith.constant 0 : i32
    %c0_i32_1 = arith.constant 0 : i32
    return %arg1, %c0_i32, %c0_i32_0 : i32, i32, i32
  }
  func.func @transform_2(%arg0: i32, %arg1: i32) -> (i32, i32, i32) {
    %c0_i32 = arith.constant 0 : i32
    %c0_i32_0 = arith.constant 0 : i32
    %c0_i32_1 = arith.constant 0 : i32
    return %arg1, %c0_i32, %c0_i32_0 : i32, i32, i32
  }
  func.func @transform_3(%arg0: i32, %arg1: i32) -> (i32, i32, i32) {
    %c0_i32 = arith.constant 0 : i32
    %c0_i32_0 = arith.constant 0 : i32
    %c0_i32_1 = arith.constant 0 : i32
    return %arg1, %c0_i32, %c0_i32_0 : i32, i32, i32
  }
  func.func @transform_4(%arg0: i32, %arg1: i32) -> (i32, i32, i32) {
    %c0_i32 = arith.constant 0 : i32
    %c0_i32_0 = arith.constant 0 : i32
    %c0_i32_1 = arith.constant 0 : i32
    return %arg1, %c0_i32, %c0_i32_0 : i32, i32, i32
  }
  func.func @transform_5(%arg0: i32, %arg1: i32) -> (i32, i32, i32) {
    %c0_i32 = arith.constant 0 : i32
    %c0_i32_0 = arith.constant 0 : i32
    %c0_i32_1 = arith.constant 0 : i32
    return %arg1, %c0_i32, %c0_i32_0 : i32, i32, i32
  }
  func.func @transform_6(%arg0: i32, %arg1: i32) -> (i32, i32, i32) {
    %c0_i32 = arith.constant 0 : i32
    %c0_i32_0 = arith.constant 0 : i32
    %c0_i32_1 = arith.constant 0 : i32
    return %arg1, %c0_i32, %c0_i32_0 : i32, i32, i32
  }
  func.func @transform_7(%arg0: i32, %arg1: i32) -> (i32, i32, i32) {
    %c0_i32 = arith.constant 0 : i32
    %c0_i32_0 = arith.constant 0 : i32
    %c0_i32_1 = arith.constant 0 : i32
    return %arg1, %c0_i32, %c0_i32_0 : i32, i32, i32
  }
  func.func @transform_8(%arg0: i32, %arg1: i32) -> (i32, i32, i32) {
    %c0_i32 = arith.constant 0 : i32
    %c0_i32_0 = arith.constant 0 : i32
    %c0_i32_1 = arith.constant 0 : i32
    return %arg0, %c0_i32, %c0_i32_0 : i32, i32, i32
  }
}

</mosaic_0001>

<bundles_post_ra>
// kernel: tpu_custom_call.1
= control target key start
LH: loop header
LB: loop body
LE: loop exit
PB: predicated region body
PF: predicated region fallthrough
CT: control target
= control target key end

     0   :  { %s7377_s0 = inlined_call_operand.hbm [shape: f32[4,16,128], index: 0, kind: input, shape index: {}]   ;;  %s7378_s1 = inlined_call_operand.hbm [shape: bf16[2,128,384], index: 1, kind: input, shape index: {}]   ;;  %s7379_s2 = inlined_call_operand.hbm [shape: bf16[2,128,128], index: 2, kind: input, shape index: {}]   ;;  %s7380_s3 = inlined_call_operand.hbm [shape: bf16[2,128,256], index: 3, kind: input, shape index: {}]   ;;  %s7381_s4 = inlined_call_operand.hbm [shape: bf16[2,256,128], index: 4, kind: input, shape index: {}]   ;;  %s7382_s5 = inlined_call_operand.hbm [shape: f32[2,1,384], index: 5, kind: input, shape index: {}]   ;;  %s7383_s6 = inlined_call_operand.hbm [shape: f32[2,1,256], index: 6, kind: input, shape index: {}]   ;;  %s7384_s7 = inlined_call_operand.hbm [shape: f32[2,8,128], index: 7, kind: input, shape index: {}]   ;;  %s7385_s8 = inlined_call_operand.hbm [shape: f32[4,16,128], index: 8, kind: output, shape index: {}]  }
   0x1   :  { %7411 = sst [smem:[#allocation33_spill]] %s7377_s0 }
   0x2   :  { %7412 = sst [smem:[#allocation34_spill]] %s7378_s1 }
   0x3   :  { %7413 = sst [smem:[#allocation35_spill]] %s7379_s2 }
   0x4   :  { %7414 = sst [smem:[#allocation36_spill]] %s7380_s3 }
   0x5   :  { %7415 = sst [smem:[#allocation37_spill]] %s7382_s5 }
   0x6   :  { %7416 = sst [smem:[#allocation38_spill]] %s7383_s6 }
   0x7   :  { %7417 = sst [smem:[#allocation39_spill]] %s7384_s7 }
   0x8   :  { %7418 = sst [smem:[#allocation40_spill]] %s7385_s8 }
   0x9   :  { %13 = vsyncpa [#allocation3], 0 }
   0xa   :  { %15 = vsyncpa [#allocation3 + $0x1], 0 }
   0xb   :  { %16 = vsyncpa [#allocation6], 0 }
   0xc   :  { %18 = vsyncpa [#allocation6 + $0x1], 0 }
   0xd   :  { %19 = vsyncpa [#allocation9], 0 }
   0xe   :  { %21 = vsyncpa [#allocation9 + $0x1], 0 }
   0xf   :  { %22 = vsyncpa [#allocation12], 0 }
  0x10   :  { %24 = vsyncpa [#allocation12 + $0x1], 0 }
  0x11   :  { %25 = vsyncpa [#allocation15], 0 }
  0x12   :  { %27 = vsyncpa [#allocation15 + $0x1], 0 }
  0x13   :  { %28 = vsyncpa [#allocation4], 0 }
  0x14   :  { %30 = vsyncpa [#allocation4 + $0x1], 0  ;;  %s6085_s27 = smov 0   ;;  %s6087_s28 = smov 0  }
  0x15   :  { %s6089_s29 = smov 0   ;;  %s6091_s30 = smov 0  }
  0x16   :  { %s6093_s9 = smov 0   ;;  %s6095_s10 = smov 0  }
  0x17   :  { %s6097_s11 = smov 0   ;;  %s6099_s12 = smov 0  }
  0x18   :  { %s6101_s13 = smov 0   ;;  %s6103_s14 = smov 0  }
  0x19   :  { %s6105_s15 = smov 0  }
  0x1a LB: > { %7419 = sst [smem:[#allocation23_spill]] %s5977_s28  ;;  %p7388_p0 = scmp.eq.s32.totalorder %s6013_s15, 0  ;;  %s6013_s15 = sphi %s6105_s15, %s36_s15   ;;  %s6009_s14 = sphi %s6103_s14, %s7478_s14   ;;  %s6005_s13 = sphi %s6101_s13, %s7486_s13   ;;  %s6001_s12 = sphi %s6099_s12, %s7485_s12   ;;  %s5997_s11 = sphi %s6097_s11, %s7484_s11   ;;  %s5993_s10 = sphi %s6095_s10, %s7483_s10   ;;  %s5989_s9 = sphi %s6093_s9, %s7482_s9   ;;  %s5985_s30 = sphi %s6091_s30, %s7481_s30   ;;  %s5981_s29 = sphi %s6089_s29, %s7480_s29   ;;  %s5977_s28 = sphi %s6087_s28, %s7479_s28   ;;  %s5973_s27 = sphi %s6085_s27, %s7472_s27  }
  0x1b   : > { %7420 = sst [smem:[#allocation24_spill]] %s5993_s10  ;;  %p88_p1 = scmp.ne.s32.totalorder %s5981_s29, %s5977_s28 }
  0x1c   : > { %7421 = sst [smem:[#allocation25_spill]] %s5997_s11  ;;  %p7387_p2 = scmp.lt.s32.totalorder %s6013_s15, 4 }
  0x1d   : > { %7422 = sst [smem:[#allocation26_spill]] %s6001_s12  ;;  %s6146_s17 = sand.u32 1, %s6013_s15  }
  0x1e   : > { %7423 = sst [smem:[#allocation27_spill]] %s6009_s14  ;;  %p90_p3 = por %p88_p1, %p7388_p0 }
  0x1f   : > { %s6151_s18 = sand.u32 1, %s5981_s29   ;;  %s5283_s19 = smul.u32 3072, %s6005_s13 }
  0x20   : > { %s5282_s20 = smul.u32 192, %s6151_s18  ;;  %p6157_p4 = pnand %p7387_p2, %p90_p3 }
  0x21   : > { %s7425_s1 = sld [smem:[#allocation34_spill]] }
  0x22   : > { %s7424_s21 = scalar_select %p6157_p4, 1, 0 }
  0x23   : > { %s326_s25 = scalar_lea.vmem [#allocation5], %s5282_s20  ;;  %p6174_p7 = pneg %p6157_p4 }
  0x24   : > { %s333_s26 = sshll.u32 %s326_s25, 4  ;;  %s6166_s26 = int_to_ptr.vmem [resolvable:$true] %s333_s26 }
  0x27   : > { %s6164_s24 = scalar_lea.hbm %s7425_s1, %s5283_s19  ;;  %s5640_s20 = scalar_lea.hbm %s7425_s1, 6144 }
  0x28   : > { %s5635_s8 = scalar_lea.hbm %s6164_s24, 3072  ;;  %p5641_p10 = scmp.lt.u32.totalorder %s6164_s24, %s7425_s1 }
  0x29   : > { %p5636_p6 = scmp.ne.s32.totalorder %s6164_s24, %s5635_s8  ;;  %p5642_p11 = scmp.lt.u32.totalorder %s5640_s20, %s5635_s8 }
  0x2a   : > { %p5644_p13 = scmp.lt.u32.totalorder %s5635_s8, %s6164_s24 }
  0x2b   : > { %p5638_p8 = pnand %p6174_p7, %p5636_p6  ;;  %p5643_p12 = por %p5642_p11, %p5641_p10 }
  0x2d   : > { %p5639_p9 = pneg %p5638_p8  ;;  %p5645_p1 = por %p5644_p13, %p5643_p12 }
  0x2f   : > { %p5646_p3 = pnand %p5645_p1, %p5639_p9 }
  0x31   : > { %5649 = shalt.err (!%p5646_p3)
}
  0x32   : > { %s5650_s16 = scalar_lea.vmem %s6166_s26, 3072  ;;  %s6015_s19 = smov [#allocation5]  }
  0x33   : > { %p5651_p6 = scmp.ne.s32.totalorder %s6166_s26, %s5650_s16  ;;  %s5655_s22 = sshll.u32 %s6015_s19, 4  ;;  %s5656_s22 = int_to_ptr.vmem [resolvable:$false] %s5655_s22 }
  0x34   : > { %s5657_s23 = scalar_lea.vmem %s5656_s22, 6144  ;;  %p5658_p0 = scmp.lt.s32.totalorder %s6166_s26, %s5656_s22 }
  0x35   : > { %p5653_p8 = pnand %p5651_p6, %p6174_p7  ;;  %p5659_p5 = scmp.lt.s32.totalorder %s5657_s23, %s5650_s16 }
  0x37   : > { %p5654_p2 = pneg %p5653_p8  ;;  %p5660_p10 = por %p5659_p5, %p5658_p0 }
  0x39   : > { %p5661_p11 = pnand %p5660_p10, %p5654_p2 }
  0x3b   : > { %5664 = shalt.err (!%p5661_p11)
}
  0x3c   : > { %s6016_s8 = smov 192   ;;  %s6017_s20 = smov 12  }
  0x3d   : > { %s7427_s25 = scalar_lea.sflag [#allocation6], %s6146_s17  ;;  %p460_p0 = scmp.lt.s32.totalorder %s6013_s15, 5 }
  0x3e   : > { %5312 = dma.hbm_to_vmem [thread:$0]  (!%p6157_p4), %s6164_s24, 3072, %s6166_s26, %s7427_s25, %s6016_s8, %s6016_s8, %s6017_s20  }
  0x3f   : > { %p7428_p2 = scmp.ge.s32.totalorder %s6013_s15, 1  ;;  %s4919_s19 = sshll.u32 %s6151_s18, 7 }
  0x40   : > { %s7390_s22 = sshll.u32 %s6005_s13, 11  ;;  %s7431_s3 = sld [smem:[#allocation36_spill]] }
  0x41   : > { %p6202_p5 = pnand %p7428_p2, %p460_p0  ;;  %s368_s24 = scalar_lea.vmem [#allocation8], %s4919_s19 }
  0x42   : > { %s375_s26 = sshll.u32 %s368_s24, 4  ;;  %s7399_s8 = scalar_lea.sflag [#allocation9], %s6146_s17  ;;  %s6217_s26 = int_to_ptr.vmem [resolvable:$true] %s375_s26 }
  0x43   : > { %s7429_s16 = scalar_select %p6202_p5, 1, 0 }
  0x45   : > { %7430 = sst [smem:[#allocation28_spill]] %s7429_s16 }
  0x46   : > { %s6213_s11 = scalar_lea.hbm %s7431_s3, %s7390_s22  ;;  %s5670_s1 = scalar_lea.hbm %s7431_s3, 4096 }
  0x47   : > { %s5665_s20 = scalar_lea.hbm %s6213_s11, 2048  ;;  %p5671_p1 = scmp.lt.u32.totalorder %s6213_s11, %s7431_s3 }
  0x48   : > { %p5666_p9 = scmp.ne.s32.totalorder %s6213_s11, %s5665_s20  ;;  %p5672_p3 = scmp.lt.u32.totalorder %s5670_s1, %s5665_s20 }
  0x49   : > { %p5674_p8 = scmp.lt.u32.totalorder %s5665_s20, %s6213_s11 }
  0x4a   : > { %p5668_p12 = pnand %p5666_p9, %p6174_p7  ;;  %p5673_p6 = por %p5672_p3, %p5671_p1 }
  0x4c   : > { %p5669_p13 = pneg %p5668_p12  ;;  %p5675_p10 = por %p5674_p8, %p5673_p6 }
  0x4e   : > { %p5676_p11 = pnand %p5675_p10, %p5669_p13 }
  0x50   : > { %5679 = shalt.err (!%p5676_p11)
}
  0x51   : > { %s5680_s24 = scalar_lea.vmem %s6217_s26, 2048  ;;  %s6018_s16 = smov [#allocation8]  }
  0x52   : > { %p5681_p0 = scmp.ne.s32.totalorder %s6217_s26, %s5680_s24  ;;  %s5685_s25 = sshll.u32 %s6018_s16, 4  ;;  %s5686_s25 = int_to_ptr.vmem [resolvable:$false] %s5685_s25 }
  0x53   : > { %s5687_s22 = scalar_lea.vmem %s5686_s25, 4096  ;;  %p5688_p12 = scmp.lt.s32.totalorder %s6217_s26, %s5686_s25 }
  0x54   : > { %p5683_p2 = pnand %p5681_p0, %p6174_p7  ;;  %p5689_p5 = scmp.lt.s32.totalorder %s5687_s22, %s5680_s24 }
  0x56   : > { %p5684_p9 = pneg %p5683_p2  ;;  %p5690_p1 = por %p5689_p5, %p5688_p12 }
  0x58   : > { %p5691_p3 = pnand %p5690_p1, %p5684_p9 }
  0x5a   : > { %5694 = shalt.err (!%p5691_p3)
}
  0x5b   : > { %s7400_s20 = smov 128   ;;  %s7401_s1 = smov 8  }
  0x5c   : > { %5318 = dma.hbm_to_vmem [thread:$0]  (!%p6157_p4), %s6213_s11, 2048, %s6217_s26, %s7399_s8, %s7400_s20, %s7400_s20, %s7401_s1  }
  0x5d   : > { %s7432_s23 = sshll.u32 %s6005_s13, 11  ;;  %s389_s22 = scalar_lea.vmem [#allocation10], %s4919_s19 }
  0x5e   : > { %s6251_s25 = scalar_lea.hbm %s7381_s4, %s7432_s23  ;;  %s396_s3 = sshll.u32 %s389_s22, 4  ;;  %s6255_s3 = int_to_ptr.vmem [resolvable:$true] %s396_s3 }
  0x5f   : > { %s5284_s7 = smul.u32 3, %s6151_s18  ;;  %s7433_s5 = sld [smem:[#allocation37_spill]] }
  0x60   : > { %s5285_s6 = smul.u32 48, %s6005_s13  ;;  %s7398_s23 = scalar_lea.sflag [#allocation12], %s6146_s17 }
  0x61   : > { %s410_s11 = scalar_lea.vmem [#allocation11], %s5284_s7 }
  0x62   : > { %s418_s26 = sshll.u32 %s410_s11, 4  ;;  %s419_s26 = int_to_ptr.vmem [resolvable:$true] %s418_s26 }
  0x65   : > { %s6262_s28 = scalar_lea.hbm %s7433_s5, %s5285_s6  ;;  %s5700_s22 = scalar_lea.hbm %s7433_s5, 96 }
  0x66   : > { %s5695_s24 = scalar_lea.hbm %s6262_s28, 48  ;;  %p5701_p8 = scmp.lt.u32.totalorder %s6262_s28, %s7433_s5 }
  0x67   : > { %p5696_p5 = scmp.ne.s32.totalorder %s6262_s28, %s5695_s24  ;;  %p5702_p10 = scmp.lt.u32.totalorder %s5700_s22, %s5695_s24 }
  0x68   : > { %p5704_p0 = scmp.lt.u32.totalorder %s5695_s24, %s6262_s28 }
  0x69   : > { %p5698_p13 = pnand %p5696_p5, %p6174_p7  ;;  %p5703_p11 = por %p5702_p10, %p5701_p8 }
  0x6b   : > { %p5699_p6 = pneg %p5698_p13  ;;  %p5705_p2 = por %p5704_p0, %p5703_p11 }
  0x6d   : > { %p5706_p9 = pnand %p5705_p2, %p5699_p6 }
  0x6f   : > { %5709 = shalt.err (!%p5706_p9)
}
  0x70   : > { %s5710_s6 = scalar_lea.vmem %s419_s26, 48  ;;  %s6021_s7 = smov [#allocation11]  }
  0x71   : > { %p5711_p12 = scmp.ne.s32.totalorder %s419_s26, %s5710_s6  ;;  %s5715_s11 = sshll.u32 %s6021_s7, 4  ;;  %s5716_s11 = int_to_ptr.vmem [resolvable:$false] %s5715_s11 }
  0x72   : > { %s5717_s19 = scalar_lea.vmem %s5716_s11, 96  ;;  %p5718_p5 = scmp.lt.s32.totalorder %s419_s26, %s5716_s11 }
  0x73   : > { %p5713_p1 = pnand %p5711_p12, %p6174_p7  ;;  %p5719_p13 = scmp.lt.s32.totalorder %s5717_s19, %s5710_s6 }
  0x75   : > { %p5714_p3 = pneg %p5713_p1  ;;  %p5720_p4 = por %p5719_p13, %p5718_p5 }
  0x77   : > { %p5721_p8 = pnand %p5720_p4, %p5714_p3 }
  0x79   : > { %5724 = shalt.err (!%p5721_p8)
}
  0x7a   : > { %p7434_p10 = scmp.ne.s32.totalorder %s7424_s21, 0  ;;  %s6285_s24 = sadd.s32 4294967295, %s6013_s15  }
  0x7b   : > { %s4908_s16 = sadd.s32 4294967294, %s6013_s15   ;;  %s45_s22 = sadd.s32 1, %s6005_s13 }
  0x7c   : > { %5324 = dma.hbm_to_vmem [thread:$0]  (!%p7434_p10), %s6262_s28, 48, %s419_s26, %s7398_s23  }
  0x7d   : > { %s48_s0 = sadd.s32 1, %s6009_s14  ;;  %s7435_s2 = sld [smem:[#allocation23_spill]] }
  0x7e   : > { %p46_p4 = scmp.ge.s32.totalorder %s45_s22, 2  ;;  %s55_s6 = sadd.s32 1, %s5993_s10 }
  0x7f   : > { %p62_p6 = scmp.ne.s32.totalorder %s5993_s10, %s5989_s9  ;;  %p68_p11 = scmp.ne.s32.totalorder %s5989_s9, %s5985_s30 }
  0x80   : > { %s7488_s22 = smov (%p46_p4, %s45_s22), 0  ;;  %s7490_s0 = smov (!%p46_p4, %s48_s0), %s6009_s14 }
  0x81   : > { %7436 = sst [smem:[#allocation29_spill]] %s7488_s22  ;;  %p7437_p0 = scmp.eq.s32.totalorder %s6013_s15, 0 }
  0x82   : > { %p69_p9 = scmp.eq.s32.totalorder %s6285_s24, 0  ;;  %p50_p12 = scmp.ge.s32.totalorder %s7490_s0, 2 }
  0x83   : > { %p6303_p2 = por %p7437_p0, %p62_p6  ;;  %s78_s26 = ssub.s32 %s6005_s13, %s7488_s22 }
  0x84   : > { %p6313_p1 = por %p69_p9, %p68_p11  ;;  %p79_p3 = scmp.eq.s32.totalorder %s78_s26, 0 }
  0x85   : > { %s7492_s0 = smov (%p50_p12, %s7490_s0), 0  ;;  %s7441_s11 = sadd.s32 1, %s5981_s29 }
  0x86   : > { %s7439_s7 = scalar_select %p6313_p1, 1, 0 }
  0x87   : > { %7440 = sst [smem:[#allocation30_spill]] %s7492_s0  ;;  %s52_s23 = ssub.s32 %s6009_s14, %s7492_s0 }
  0x88   : > { %s6322_s19 = scalar_select %p79_p3, %s5981_s29, %s7441_s11  }
  0x89   : > { %p94_p5 = scmp.ne.s32.totalorder %s7435_s2, %s5973_s27  ;;  %p53_p13 = scmp.eq.s32.totalorder %s52_s23, 0 }
  0x8a   : > { %7442 = sst [smem:[#allocation31_spill]] %s6322_s19  ;;  %p274_p8 = scmp.eq.s32.totalorder %s6285_s24, 3 }
  0x8b   : > { %p6329_p4 = por %p94_p5, %p69_p9  ;;  %p280_p0 = scmp.eq.s32.totalorder %s4908_s16, 3 }
  0x8c   : > { %s6334_s20 = scalar_select %p53_p13, %s5993_s10, %s55_s6  }
  0x8d   : > { %s7443_s8 = scalar_select %p6329_p4, 1, 0 }
  0x8e   : > { %7444 = sst [smem:[#allocation32_spill]] %s6334_s20  ;;  %p6339_p12 = por %p274_p8, %p62_p6 }
  0x8f   : > { %p6346_p3 = por %p280_p0, %p68_p11  ;;  %s300_s27 = sand.u32 1, %s5993_s10  }
  0x90   : > { %s7445_s26 = scalar_select %p6339_p12, 1, 0 }
  0x91   : > { %s7446_s11 = scalar_select %p6346_p3, 1, 0 }
  0x92   : > { %s5059_s23 = sshll.u32 %s6009_s14, 9  ;;  %s4911_s2 = sshll.u32 %s300_s27, 5 }
  0x93   : > { %s7447_s0 = sld [smem:[#allocation33_spill]]  ;;  %s304_s16 = scalar_lea.vmem [#allocation2], %s4911_s2 }
  0x94   : > { %s312_s6 = sshll.u32 %s304_s16, 4  ;;  %p7448_p6 = scmp.lt.s32.totalorder %s6013_s15, 4  ;;  %s6365_s6 = int_to_ptr.vmem [resolvable:$true] %s312_s6 }
  0x95   : > { %s4916_s14 = sshll.u32 %s6151_s18, 6  ;;  %s6368_s5 = scalar_lea.sflag [#allocation3], %s300_s27 }
  0x96   : > { %p6361_p11 = pnand %p7448_p6, %p6303_p2 }
  0x98   : > { %p5727_p5 = pneg %p6361_p11 }
  0x99   : > { %s6355_s22 = scalar_lea.hbm %s7447_s0, %s5059_s23  ;;  %s5730_s2 = scalar_lea.hbm %s7447_s0, 1024 }
  0x9a   : > { %s5725_s1 = scalar_lea.hbm %s6355_s22, 512  ;;  %p5731_p2 = scmp.lt.u32.totalorder %s6355_s22, %s7447_s0 }
  0x9b   : > { %p5726_p9 = scmp.ne.s32.totalorder %s6355_s22, %s5725_s1  ;;  %p5732_p0 = scmp.lt.u32.totalorder %s5730_s2, %s5725_s1 }
  0x9c   : > { %p5734_p3 = scmp.lt.u32.totalorder %s5725_s1, %s6355_s22 }
  0x9d   : > { %p5728_p13 = pnand %p5727_p5, %p5726_p9  ;;  %p5733_p6 = por %p5732_p0, %p5731_p2 }
  0x9f   : > { %p5729_p8 = pneg %p5728_p13  ;;  %p5735_p12 = por %p5734_p3, %p5733_p6 }
  0xa1   : > { %p5736_p4 = pnand %p5735_p12, %p5729_p8 }
  0xa3   : > { %5739 = shalt.err (!%p5736_p4)
}
  0xa4   : > { %s5740_s27 = scalar_lea.vmem %s6365_s6, 512  ;;  %s6022_s28 = smov [#allocation2]  }
  0xa5   : > { %p5741_p9 = scmp.ne.s32.totalorder %s6365_s6, %s5740_s27  ;;  %s5745_s23 = sshll.u32 %s6022_s28, 4  ;;  %s5746_s23 = int_to_ptr.vmem [resolvable:$false] %s5745_s23 }
  0xa6   : > { %s5747_s10 = scalar_lea.vmem %s5746_s23, 1024  ;;  %p5748_p10 = scmp.lt.s32.totalorder %s6365_s6, %s5746_s23 }
  0xa7   : > { %p5743_p13 = pnand %p5741_p9, %p5727_p5  ;;  %p5749_p2 = scmp.lt.s32.totalorder %s5747_s10, %s5740_s27 }
  0xa9   : > { %p5744_p1 = pneg %p5743_p13  ;;  %p5750_p0 = por %p5749_p2, %p5748_p10 }
  0xab   : > { %p5751_p3 = pnand %p5750_p0, %p5744_p1 }
  0xad   : > { %5754 = shalt.err (!%p5751_p3)
}
  0xae   : > { %s7450_s1 = smov 8   ;;  %s7451_s2 = smov 128  }
  0xaf   : > { %5309 = dma.hbm_to_vmem [thread:$0]  (!%p6361_p11), %s6355_s22, 512, %s6365_s6, %s6368_s5, %s7451_s2, %s7451_s2, %s7450_s1  }
  0xb0   : > { %s5060_s16 = sshll.u32 %s6005_s13, 10  ;;  %s347_s28 = scalar_lea.vmem [#allocation7], %s4916_s14 }
  0xb1   : > { %s354_s23 = sshll.u32 %s347_s28, 4  ;;  %s7452_s0 = sld [smem:[#allocation35_spill]]  ;;  %s6407_s23 = int_to_ptr.vmem [resolvable:$true] %s354_s23 }
  0xb7   : > { %s6405_s19 = scalar_lea.hbm %s7452_s0, %s5060_s16  ;;  %s5760_s14 = scalar_lea.hbm %s7452_s0, 2048 }
  0xb8   : > { %s5755_s20 = scalar_lea.hbm %s6405_s19, 1024  ;;  %p5761_p12 = scmp.lt.u32.totalorder %s6405_s19, %s7452_s0 }
  0xb9   : > { %p5756_p10 = scmp.ne.s32.totalorder %s6405_s19, %s5755_s20  ;;  %p5762_p11 = scmp.lt.u32.totalorder %s5760_s14, %s5755_s20 }
  0xba   : > { %p5764_p8 = scmp.lt.u32.totalorder %s5755_s20, %s6405_s19 }
  0xbb   : > { %p5758_p1 = pnand %p5756_p10, %p6174_p7  ;;  %p5763_p5 = por %p5762_p11, %p5761_p12 }
  0xbd   : > { %p5759_p4 = pneg %p5758_p1  ;;  %p5765_p6 = por %p5764_p8, %p5763_p5 }
  0xbf   : > { %p5766_p9 = pnand %p5765_p6, %p5759_p4 }
  0xc1   : > { %5769 = shalt.err (!%p5766_p9)
}
  0xc2   : > { %s5770_s2 = scalar_lea.vmem %s6407_s23, 1024  ;;  %s6023_s16 = smov [#allocation7]  }
  0xc3   : > { %p5771_p13 = scmp.ne.s32.totalorder %s6407_s23, %s5770_s2  ;;  %s5775_s28 = sshll.u32 %s6023_s16, 4  ;;  %s5776_s28 = int_to_ptr.vmem [resolvable:$false] %s5775_s28 }
  0xc4   : > { %s5777_s27 = scalar_lea.vmem %s5776_s28, 2048  ;;  %p5778_p3 = scmp.lt.s32.totalorder %s6407_s23, %s5776_s28 }
  0xc5   : > { %p5773_p2 = pnand %p5771_p13, %p6174_p7  ;;  %p5779_p10 = scmp.lt.s32.totalorder %s5777_s27, %s5770_s2 }
  0xc7   : > { %p5774_p0 = pneg %p5773_p2  ;;  %p5780_p1 = por %p5779_p10, %p5778_p3 }
  0xc9   : > { %p5781_p12 = pnand %p5780_p1, %p5774_p0 }
  0xcb   : > { %5784 = shalt.err (!%p5781_p12)
}
  0xcc   : > { %s6024_s10 = smov 64   ;;  %s6025_s20 = smov 4  }
  0xcd   : > { %p7453_p4 = scmp.ne.s32.totalorder %s7424_s21, 0  ;;  %s7454_s22 = scalar_lea.sflag [#allocation6], %s6146_s17 }
  0xce   : > { %s5785_s6 = scalar_lea.hbm %s6251_s25, 2048  ;;  %s5790_s1 = scalar_lea.hbm %s7381_s4, 4096 }
  0xcf   : > { %5315 = dma.hbm_to_vmem [thread:$0]  (!%p7453_p4), %s6405_s19, 1024, %s6407_s23, %s7454_s22, %s6024_s10, %s6024_s10, %s6025_s20  }
  0xd0   : > { %p5786_p11 = scmp.ne.s32.totalorder %s6251_s25, %s5785_s6  ;;  %p5791_p6 = scmp.lt.u32.totalorder %s6251_s25, %s7381_s4 }
  0xd1   : > { %p5792_p9 = scmp.lt.u32.totalorder %s5790_s1, %s5785_s6  ;;  %p5794_p2 = scmp.lt.u32.totalorder %s5785_s6, %s6251_s25 }
  0xd2   : > { %p5788_p5 = pnand %p5786_p11, %p6174_p7 }
  0xd3   : > { %p5793_p13 = por %p5792_p9, %p5791_p6 }
  0xd4   : > { %p5789_p8 = pneg %p5788_p5 }
  0xd5   : > { %p5795_p0 = por %p5794_p2, %p5793_p13 }
  0xd7   : > { %p5796_p3 = pnand %p5795_p0, %p5789_p8 }
  0xd9   : > { %5799 = shalt.err (!%p5796_p3)
}
  0xda   : > { %s5800_s19 = scalar_lea.vmem %s6255_s3, 2048  ;;  %s6026_s23 = smov [#allocation10]  }
  0xdb   : > { %p5801_p10 = scmp.ne.s32.totalorder %s6255_s3, %s5800_s19  ;;  %s5805_s28 = sshll.u32 %s6026_s23, 4  ;;  %s5806_s28 = int_to_ptr.vmem [resolvable:$false] %s5805_s28 }
  0xdc   : > { %s5807_s27 = scalar_lea.vmem %s5806_s28, 4096  ;;  %p5808_p11 = scmp.lt.s32.totalorder %s6255_s3, %s5806_s28 }
  0xdd   : > { %p5803_p1 = pnand %p5801_p10, %p6174_p7  ;;  %p5809_p5 = scmp.lt.s32.totalorder %s5807_s27, %s5800_s19 }
  0xdf   : > { %p5804_p12 = pneg %p5803_p1  ;;  %p5810_p6 = por %p5809_p5, %p5808_p11 }
  0xe1   : > { %p5811_p9 = pnand %p5810_p6, %p5804_p12 }
  0xe3   : > { %5814 = shalt.err (!%p5811_p9)
}
  0xe4   : > { %s7455_s22 = scalar_lea.sflag [#allocation9], %s6146_s17  ;;  %s4926_s6 = sshll.u32 %s6151_s18, 1 }
  0xe5   : > { %5321 = dma.hbm_to_vmem [thread:$0]  (!%p7453_p4), %s6251_s25, 2048, %s6255_s3, %s7455_s22, %s6024_s10, %s6024_s10, %s6025_s20  }
  0xe6   : > { %s5063_s14 = sshll.u32 %s6005_s13, 5  ;;  %s7456_s2 = sld [smem:[#allocation38_spill]] }
  0xe7   : > { %s429_s19 = scalar_lea.vmem [#allocation13], %s4926_s6  ;;  %s4929_s28 = sshll.u32 %s6151_s18, 3 }
  0xe8   : > { %s437_s23 = sshll.u32 %s429_s19, 4  ;;  %s438_s23 = int_to_ptr.vmem [resolvable:$true] %s437_s23 }
  0xec   : > { %s6466_s16 = scalar_lea.hbm %s7456_s2, %s5063_s14  ;;  %s5820_s10 = scalar_lea.hbm %s7456_s2, 64 }
  0xed   : > { %s5815_s27 = scalar_lea.hbm %s6466_s16, 32  ;;  %p5821_p0 = scmp.lt.u32.totalorder %s6466_s16, %s7456_s2 }
  0xee   : > { %p5816_p8 = scmp.ne.s32.totalorder %s6466_s16, %s5815_s27  ;;  %p5822_p3 = scmp.lt.u32.totalorder %s5820_s10, %s5815_s27 }
  0xef   : > { %p5824_p1 = scmp.lt.u32.totalorder %s5815_s27, %s6466_s16 }
  0xf0   : > { %p5818_p13 = pnand %p5816_p8, %p6174_p7  ;;  %p5823_p10 = por %p5822_p3, %p5821_p0 }
  0xf2   : > { %p5819_p2 = pneg %p5818_p13  ;;  %p5825_p12 = por %p5824_p1, %p5823_p10 }
  0xf4   : > { %p5826_p11 = pnand %p5825_p12, %p5819_p2 }
  0xf6   : > { %5829 = shalt.err (!%p5826_p11)
}
  0xf7   : > { %s5830_s6 = scalar_lea.vmem %s438_s23, 32  ;;  %s6027_s14 = smov [#allocation13]  }
  0xf8   : > { %p5831_p5 = scmp.ne.s32.totalorder %s438_s23, %s5830_s6  ;;  %s5835_s5 = sshll.u32 %s6027_s14, 4  ;;  %s5836_s5 = int_to_ptr.vmem [resolvable:$false] %s5835_s5 }
  0xf9   : > { %s5837_s1 = scalar_lea.vmem %s5836_s5, 64  ;;  %p5838_p8 = scmp.lt.s32.totalorder %s438_s23, %s5836_s5 }
  0xfa   : > { %p5833_p6 = pnand %p5831_p5, %p6174_p7  ;;  %p5839_p13 = scmp.lt.s32.totalorder %s5837_s1, %s5830_s6 }
  0xfc   : > { %p5834_p9 = pneg %p5833_p6  ;;  %p5840_p4 = por %p5839_p13, %p5838_p8 }
  0xfe   : > { %p5841_p0 = pnand %p5840_p4, %p5834_p9 }
 0x100   : > { %5844 = shalt.err (!%p5841_p0)
}
 0x101   : > { %p7457_p3 = scmp.ne.s32.totalorder %s7424_s21, 0  ;;  %s7458_s19 = scalar_lea.sflag [#allocation12], %s6146_s17 }
 0x102   : > { %s4930_s27 = sshll.u32 %s6005_s13, 7  ;;  %s7459_s10 = sld [smem:[#allocation39_spill]] }
 0x103   : > { %5327 = dma.hbm_to_vmem [thread:$0]  (!%p7457_p3), %s6466_s16, 32, %s438_s23, %s7458_s19  }
 0x104   : > { %s448_s6 = scalar_lea.vmem [#allocation14], %s4929_s28  ;;  %s445_s17 = scalar_lea.sflag [#allocation15], %s6151_s18 }
 0x105   : > { %s455_s14 = sshll.u32 %s448_s6, 4  ;;  %s456_s14 = int_to_ptr.vmem [resolvable:$true] %s455_s14 }
 0x108   : > { %s7460_s20 = smov %s7459_s10  ;;  %s6492_s22 = scalar_lea.hbm %s7459_s10, %s4930_s27 }
 0x109   : > { %s5845_s5 = scalar_lea.hbm %s6492_s22, 128  ;;  %s5850_s1 = scalar_lea.hbm %s7460_s20, 256 }
 0x10a   : > { %p5846_p4 = scmp.ne.s32.totalorder %s6492_s22, %s5845_s5  ;;  %p5851_p1 = scmp.lt.u32.totalorder %s6492_s22, %s7460_s20 }
 0x10b   : > { %p5852_p12 = scmp.lt.u32.totalorder %s5850_s1, %s5845_s5  ;;  %p5854_p5 = scmp.lt.u32.totalorder %s5845_s5, %s6492_s22 }
 0x10c   : > { %p5848_p2 = pnand %p5846_p4, %p6174_p7 }
 0x10d   : > { %p5853_p11 = por %p5852_p12, %p5851_p1 }
 0x10e   : > { %p5849_p10 = pneg %p5848_p2 }
 0x10f   : > { %p5855_p6 = por %p5854_p5, %p5853_p11 }
 0x111   : > { %p5856_p9 = pnand %p5855_p6, %p5849_p10 }
 0x113   : > { %5859 = shalt.err (!%p5856_p9)
}
 0x114   : > { %s5860_s18 = scalar_lea.vmem %s456_s14, 128  ;;  %s6028_s28 = smov [#allocation14]  }
 0x115   : > { %p5861_p8 = scmp.ne.s32.totalorder %s456_s14, %s5860_s18  ;;  %s5865_s3 = sshll.u32 %s6028_s28, 4  ;;  %s5866_s3 = int_to_ptr.vmem [resolvable:$false] %s5865_s3 }
 0x116   : > { %s5867_s25 = scalar_lea.vmem %s5866_s3, 256  ;;  %p5868_p4 = scmp.lt.s32.totalorder %s456_s14, %s5866_s3 }
 0x117   : > { %p5863_p13 = pnand %p5861_p8, %p6174_p7  ;;  %p5869_p2 = scmp.lt.s32.totalorder %s5867_s25, %s5860_s18 }
 0x119   : > { %p5864_p0 = pneg %p5863_p13  ;;  %p5870_p3 = por %p5869_p2, %p5868_p4 }
 0x11b   : > { %p5871_p1 = pnand %p5870_p3, %p5864_p0 }
 0x11d   : > { %5874 = shalt.err (!%p5871_p1)
}
 0x11e   : > { %p7461_p12 = scmp.ne.s32.totalorder %s7424_s21, 0  ;;  %s7462_s10 = sld [smem:[#allocation28_spill]] }
 0x120   : > { %5330 = dma.hbm_to_vmem [thread:$0]  (!%p7461_p12), %s6492_s22, 128, %s456_s14, %s445_s17  }
 0x124   : > { %p7463_p10 = scmp.ne.s32.totalorder %s7462_s10, 0 }
 0x125   : > { %s6517_s12 = sand.u32 (!%p7463_p10), 1, %s5989_s9   ;;  %p7464_p7 = scmp.ne.s32.totalorder (!%p7463_p10), %s7439_s7, 0 }
 0x126   : > { %464 = sbr.rel (%p7463_p10) target bundleno = 3575 (0xdf7), region = 52  ;;  %s4932_s6 = sshll.u32 (!%p7463_p10), %s6517_s12, 5 }
 0x127   : > { %s467_s5 = scalar_lea.sflag (!%p7463_p10), [#allocation3], %s6517_s12  ;;  %s6523_s16 = scalar_lea.vmem (!%p7463_p10), [#allocation2], %s4932_s6 }
 0x12d   : > { %5948 = dma.done.wait (%p7464_p7), %s467_s5, 512  }
 0x12e   : > { %5950 = vsyncadd (%p7464_p7), %s467_s5, 4294966784  ;;  %s7465_s21 = sld [smem:[#allocation23_spill]]  ;;  %s475_s22 = sand.u32 1, %s6285_s24  }
 0x12f   : > { %s476_s23 = scalar_lea.sflag [#allocation6], %s475_s22  ;;  %p7466_p3 = scmp.ne.s32.totalorder %s7443_s8, 0 }
 0x134   : > { %s477_s14 = sand.u32 1, %s7465_s21  }
 0x135   : > { %s5286_s17 = smul.u32 192, %s477_s14 }
 0x137   : > { %s6531_s1 = scalar_lea.vmem [#allocation5], %s5286_s17 }
 0x138   : > { %5952 = dma.done.wait (%p7466_p3), %s476_s23, 4096  }
 0x139   : > { %5954 = vsyncadd (%p7466_p3), %s476_s23, 4294963200  ;;  %s4933_s19 = sshll.u32 %s477_s14, 6  ;;  %s4934_s27 = sshll.u32 %s477_s14, 7 }
 0x13a   : > { %s6537_s18 = scalar_lea.vmem [#allocation7], %s4933_s19  ;;  %s494_s7 = scalar_lea.sflag [#allocation9], %s475_s22 }
 0x13b   : > { %s6539_s28 = scalar_lea.vmem [#allocation8], %s4934_s27 }
 0x13c   : > { %5956 = dma.done.wait (%p7466_p3), %s494_s7, 4096  }
 0x13d   : > { %5958 = vsyncadd (%p7466_p3), %s494_s7, 4294963200  ;;  %s5287_s24 = smul.u32 3, %s477_s14  ;;  %s6545_s3 = scalar_lea.vmem [#allocation10], %s4934_s27 }
 0x13e   : > { %s512_s25 = scalar_lea.sflag [#allocation12], %s475_s22 }
 0x13f   : > { %s6547_s10 = scalar_lea.vmem [#allocation11], %s5287_s24 }
 0x140   : > { %5960 = dma.done.wait (%p7466_p3), %s512_s25, 80  }
 0x141   : > { %5962 = vsyncadd (%p7466_p3), %s512_s25, 4294967216  ;;  %s4936_s5 = sshll.u32 %s477_s14, 1  ;;  %s4937_s21 = sshll.u32 %s477_s14, 3 }
 0x142   : > { %s6553_s17 = scalar_lea.vmem [#allocation13], %s4936_s5  ;;  %s530_s23 = scalar_lea.sflag [#allocation15], %s477_s14 }
 0x143   : > { %s6555_s19 = scalar_lea.vmem [#allocation14], %s4937_s21 }
 0x144   : > { %5964 = dma.done.wait (%p7466_p3), %s530_s23, 128  }
 0x145   : > { %5966 = vsyncadd (%p7466_p3), %s530_s23, 4294967168  ;;  %s6563_s22 = scalar_lea.vmem [#allocation16], %s4932_s6  ;;  %s7467_s27 = sld [smem:[#allocation25_spill]] }
 0x14b   : > { %p4939_p11 = scmp.ne.s32.totalorder %s7467_s27, 0 }
 0x14c   : > { %v608_v0 = vld [vmem:[%s6523_s16] sm:$0xff] (!%p4939_p11)  ;;  %v609_v1 = vld [vmem:[%s6523_s16 + $0x8] sm:$0xff] (!%p4939_p11)  ;;  %v610_v2 = vld [vmem:[%s6523_s16 + $0x10] sm:$0xff] (!%p4939_p11) }
 0x14d   : > { %607 = sbr.rel (%p4939_p11) target bundleno = 340 (0x154), region = 88  ;;  %612 = vst [vmem:[%s6563_s22] sm:$0xff] (!%p4939_p11), %v608_v0  ;;  %613 = vst [vmem:[%s6563_s22 + $0x8] sm:$0xff] (!%p4939_p11), %v609_v1  ;;  %v611_v3 = vld [vmem:[%s6523_s16 + $0x18] sm:$0xff] (!%p4939_p11) }
 0x14e   : > { %614 = vst [vmem:[%s6563_s22 + $0x10] sm:$0xff] (!%p4939_p11), %v610_v2  ;;  %615 = vst [vmem:[%s6563_s22 + $0x18] sm:$0xff] (!%p4939_p11), %v611_v3 }
 0x154 PF: > { %v5471_v4 = vld [vmem:[%s6531_s1 + $0x4] ss:$12 sps:$4 sm:$0xff]   ;;  %v5473_v5 = vld [vmem:[%s6531_s1] ss:$12 sps:$4 sm:$0xff]   ;;  %v6029_v6 = vmov 0   ;;  %v657_v35 = vlaneseq  ;;  %s6030_s8 = smov 32  }
 0x155   : > { %832 = vmatprep.mubr.bf16.mxu0 %v6029_v6  ;;  %800 = vmatprep.subr.bf16.mxu0 %v5471_v4  ;;  %v5474_v7 = vld [vmem:[%s6531_s1 + $0x1c] ss:$12 sps:$4 sm:$0xff]   ;;  %v5476_v8 = vld [vmem:[%s6531_s1 + $0x18] ss:$12 sps:$4 sm:$0xff]   ;;  %v5477_v9 = vld [vmem:[%s6531_s1 + $0x34] ss:$12 sps:$4 sm:$0xff]  }
 0x156   : > { %801 = vmatpush1.bf16.msra.mxu0 %v5473_v5  ;;  %v5479_v10 = vld [vmem:[%s6531_s1 + $0x30] ss:$12 sps:$4 sm:$0xff]   ;;  %v5480_v11 = vld [vmem:[%s6531_s1 + $0x4c] ss:$12 sps:$4 sm:$0xff]   ;;  %v5482_v12 = vld [vmem:[%s6531_s1 + $0x48] ss:$12 sps:$4 sm:$0xff]  }
 0x157   : > { %802 = vmatprep.subr.bf16.mxu0 %v5474_v7  ;;  %v5483_v13 = vld [vmem:[%s6531_s1 + $0x64] ss:$12 sps:$4 sm:$0xff]   ;;  %v616_v14 = vld [vmem:[%s6563_s22] sm:$0xff]  ;;  %v5495_v17 = vld [vmem:[%s6531_s1 + $0x8] ss:$12 sps:$4 sm:$0xff]   ;;  %v6604_v36 = vshrl.u32 %v657_v35, 7 }
 0x158   : > { %v617_v15 = vld [vmem:[%s6563_s22 + $0x8] sm:$0xff]  ;;  %5146 = vmatprep.subr.bf16.mxu1 %v5495_v17  ;;  %v5498_v24 = vld [vmem:[%s6531_s1 + $0x50] ss:$12 sps:$4 sm:$0xff]   ;;  %v5492_v26 = vld [vmem:[%s6531_s1 + $0xac] ss:$12 sps:$4 sm:$0xff]   ;;  %s6031_s6 = smov 96  }
 0x159   : > { %v620_v16 = vpack.c.bf16 %v617_v15, %v616_v14  ;;  %v5496_v18 = vld [vmem:[%s6531_s1 + $0x20] ss:$12 sps:$4 sm:$0xff]   ;;  %v5486_v20 = vld [vmem:[%s6531_s1 + $0x7c] ss:$12 sps:$4 sm:$0xff]   ;;  %5147 = vmatpush3.bf16.msra.mxu1 %v5495_v17  ;;  %v5497_v21 = vld [vmem:[%s6531_s1 + $0x38] ss:$12 sps:$4 sm:$0xff]  }
 0x15a   : > { %803 = vmatpush1.bf16.msra.mxu0 %v5476_v8  ;;  %v5485_v19 = vld [vmem:[%s6531_s1 + $0x60] ss:$12 sps:$4 sm:$0xff]   ;;  %5148 = vmatprep.subr.bf16.mxu1 %v5496_v18  ;;  %v5488_v22 = vld [vmem:[%s6531_s1 + $0x78] ss:$12 sps:$4 sm:$0xff]   ;;  %v5491_v25 = vld [vmem:[%s6531_s1 + $0x90] ss:$12 sps:$4 sm:$0xff]  }
 0x15b   : > { %804 = vmatprep.subr.bf16.mxu0 %v5477_v9  ;;  %5162 = vmatprep.mubr.bf16.mxu1 %v620_v16  ;;  %v5489_v23 = vld [vmem:[%s6531_s1 + $0x94] ss:$12 sps:$4 sm:$0xff]   ;;  %v5501_v30 = vld [vmem:[%s6531_s1 + $0x98] ss:$12 sps:$4 sm:$0xff]   ;;  %v5502_v31 = vld [vmem:[%s6531_s1 + $0xb0] ss:$12 sps:$4 sm:$0xff]  }
 0x15c   : > { %v5494_v27 = vld [vmem:[%s6531_s1 + $0xa8] ss:$12 sps:$4 sm:$0xff]   ;;  %v5500_v29 = vld [vmem:[%s6531_s1 + $0x80] ss:$12 sps:$4 sm:$0xff]   ;;  %v6607_v37 = vsub.s32 0, %v6604_v36  ;;  %v6611_v39 = vsub.s32 1, %v6604_v36 }
 0x15d   : > { %5149 = vmatpush3.bf16.msra.mxu1 %v5496_v18  ;;  %v5499_v28 = vld [vmem:[%s6531_s1 + $0x68] ss:$12 sps:$4 sm:$0xff]   ;;  %v655_v38 = vld [vmem:[%s6547_s10] sm:$0x7]  ;;  %s6032_s16 = smov 64   ;;  %v6033_v54 = vmov 0.0  }
 0x15e   : > { %805 = vmatpush1.bf16.msra.mxu0 %v5479_v10  ;;  %5150 = vmatprep.subr.bf16.mxu1 %v5497_v21  ;;  %v618_v32 = vld [vmem:[%s6563_s22 + $0x10] sm:$0xff]  ;;  %v619_v33 = vld [vmem:[%s6563_s22 + $0x18] sm:$0xff]  ;;  %v660_v40 = vrot.slane %v655_v38, %v6607_v37  ;;  %v664_v42 = vrot.slane %v655_v38, %v6611_v39  ;;  %vm6034_vm0 = vmmov 0   ;;  %v667_v55 = vsub.s32 2, %v6604_v36  ;;  %s7468_s14 = sld [smem:[#allocation26_spill]]  ;;  %s7469_s24 = sld [smem:[#allocation40_spill]] }
 0x15f   : > { %806 = vmatprep.subr.bf16.mxu0 %v5480_v11  ;;  %v621_v34 = vpack.c.bf16 %v619_v33, %v618_v32  ;;  %vm1720_vm1 = vcmask 261120   ;;  %vm1909_vm2 = vcmask 130048   ;;  %vm2476_vm3 = vcmask 523264   ;;  %s4657_s25 = scalar_lea.sflag [#allocation4], %s6517_s12  ;;  %p7470_p6 = scmp.ne.s32.totalorder %s7445_s26, 0 }
 0x160   : > { %v668_v56 = vrot.slane %v655_v38, %v667_v55  ;;  %vm2479_vm4 = vcmask 785408   ;;  %s6037_s5 = smov [#allocation16]  }
 0x161   : > { %5151 = vmatpush3.bf16.msra.mxu1 %v5497_v21  ;;  %v6647_v21 = vpack.i.b16 %v6029_v6, %v6029_v6  ;;  %s5879_s21 = sshll.u32 %s6037_s5, 4  ;;  %s5880_s21 = int_to_ptr.vmem [resolvable:$false] %s5879_s21 }
 0x162   : > { %807 = vmatpush1.bf16.msra.mxu0 %v5482_v12  ;;  %5152 = vmatprep.subr.bf16.mxu1 %v5498_v24 }
 0x163   : > { %808 = vmatprep.subr.bf16.mxu0 %v5483_v13 }
 0x164   : > { %s5065_s1 = sshll.u32 %s7468_s14, 9 }
 0x165   : > { %5153 = vmatpush3.bf16.msra.mxu1 %v5498_v24 }
 0x166   : > { %809 = vmatpush1.bf16.msra.mxu0 %v5485_v19  ;;  %5154 = vmatprep.subr.bf16.mxu1 %v5499_v28  ;;  %v6036_v19 = vmov 1934713408  }
 0x167   : > { %810 = vmatprep.subr.bf16.mxu0 %v5486_v20  ;;  %v969_v20 = vunpack.c.l.s4 %v6036_v19 }
 0x169   : > { %5155 = vmatpush3.bf16.msra.mxu1 %v5499_v28  ;;  %v970_v28 = vunpack.c.0.s8 %v969_v20 }
 0x16a   : > { %811 = vmatpush1.bf16.msra.mxu0 %v5488_v22  ;;  %5156 = vmatprep.subr.bf16.mxu1 %v5500_v29 }
 0x16b   : > { %812 = vmatprep.subr.bf16.mxu0 %v5489_v23 }
 0x16d   : > { %5157 = vmatpush3.bf16.msra.mxu1 %v5500_v29 }
 0x16e   : > { %813 = vmatpush1.bf16.msra.mxu0 %v5491_v25  ;;  %5158 = vmatprep.subr.bf16.mxu1 %v5501_v30 }
 0x16f   : > { %814 = vmatprep.subr.bf16.mxu0 %v5492_v26 }
 0x171   : > { %5159 = vmatpush3.bf16.msra.mxu1 %v5501_v30 }
 0x172   : > { %815 = vmatpush1.bf16.msra.mxu0 %v5494_v27  ;;  %5160 = vmatprep.subr.bf16.mxu1 %v5502_v31 }
 0x173   : > { %5166 = vmatprep.subr.bf16.mxu0 %v6033_v54 }
 0x175   : > { %833 = vmatmul.mubr.bf16.vlgmr.msra.gmra.mrb[0].mxu0 %v620_v16  ;;  %5161 = vmatpush3.bf16.msra.mxu1 %v5502_v31  ;;  %v6035_v16 = vmov 1983009808  }
 0x176   : > { %842 = vmatprep.mubr.bf16.mxu0 %v6029_v6  ;;  %5178 = vmatprep.subr.bf16.mxu1 %v6033_v54  ;;  %v938_v17 = vunpack.c.l.s4 %v6035_v16 }
 0x178   : > { %5163 = vmatmul.mubr.bf16.vlgmr.msra.gmra.mrb[0].mxu1 %v621_v34  ;;  %v939_v18 = vunpack.c.0.s8 %v938_v17 }
 0x179   : > { %5180 = vmatprep.mubr.msk.bf16.mxu1 %vm6034_vm0, %v6033_v54 }
 0x17a   : > { %v6650_v27 = vsub.s32 %v939_v18, %v6604_v36 }
 0x17d   : > { %843 = vmatmul.mubr.bf16.gmra.mrb[4].mxu0 %v621_v34 }
 0x17e   : > { %5168 = vmatprep.mubr.msk.bf16.mxu0 %vm6034_vm0, %v6033_v54 }
 0x248   : > { %v834_v41 = vpop.f32.mrb[0].mxu0 }
 0x249   : > { %v835_v43 = vadd.f32 %v834_v41, %v660_v40  ;;  %v836_v44 = vpop.f32.mrb[1].mxu0 }
 0x24a   : > { %v838_v45 = vpop.f32.mrb[2].mxu0  ;;  %v837_v48 = vadd.f32 %v836_v44, %v664_v42 }
 0x24b   : > { %v839_v46 = vadd.f32 %v838_v45, %v660_v40  ;;  %v840_v47 = vpop.f32.mrb[3].mxu0  ;;  %v902_v50 = vmul.f32 0.17677669, %v835_v43  ;;  %v5164_v57 = vpop.f32.mrb[0].mxu1 }
 0x24c   : > { %v841_v49 = vadd.f32 %v840_v47, %v664_v42  ;;  %v896_v58 = vadd.f32 %v5164_v57, %v668_v56  ;;  %v887_v59 = vpop.f32.mrb[1].mxu1 }
 0x24d   : > { %v903_v51 = vmul.f32 0.17677669, %v839_v46  ;;  %v888_v61 = vadd.f32 %v887_v59, %v668_v56  ;;  %v5165_v62 = vpop.f32.mrb[2].mxu1 }
 0x24e   : > { %v1180_v52 = vpack.c.bf16 %v841_v49, %v837_v48  ;;  %v899_v1 = vadd.f32 %v5165_v62, %v668_v56  ;;  %v890_v2 = vpop.f32.mrb[3].mxu1 }
 0x24f   : > { %v6615_v53 = vpack.c.bf16 %v903_v51, %v902_v50  ;;  %v891_v5 = vadd.f32 %v890_v2, %v668_v56 }
 0x250   : > { %1186 = vrot.lane.b32.xlu1 %v1180_v52, %s6030_s8  ;;  %1182 = vrot.lane.b32.xlu0 %v1180_v52, %s6031_s6  ;;  %v844_v60 = vpop.f32.mrb[4].mxu0  ;;  %v6635_v10 = vpack.c.bf16 %v899_v1, %v896_v58  ;;  %v1192_v25 = vshrl.u32 %v1180_v52, 16 }
 0x251   : > { %v845_v63 = vadd.f32 %v844_v60, %v660_v40  ;;  %v846_v0 = vpop.f32.mrb[5].mxu0  ;;  %v6637_v12 = vpack.c.bf16 %v891_v5, %v888_v61  ;;  %v918_v46 = vshrl.u32 %v6615_v53, 16 }
 0x252   : > { %v847_v3 = vadd.f32 %v846_v0, %v664_v42  ;;  %v848_v4 = vpop.f32.mrb[6].mxu0 }
 0x253   : > { %v904_v7 = vmul.f32 0.17677669, %v845_v63  ;;  %v849_v8 = vadd.f32 %v848_v4, %v660_v40  ;;  %v850_v9 = vpop.f32.mrb[7].mxu0  ;;  %v6655_v40 = vsub.s32 %v970_v28, %v6604_v36 }
 0x254   : > { %1184 = vrot.lane.b32.xlu0 %v1180_v52, %s6032_s16  ;;  %908 = vrot.lane.b32.xlu1 %v6615_v53, %s6031_s6  ;;  %v851_v11 = vadd.f32 %v850_v9, %v664_v42 }
 0x255   : > { %v905_v13 = vmul.f32 0.17677669, %v849_v8 }
 0x256   : > { %v6639_v14 = vpack.c.bf16 %v851_v11, %v847_v3 }
 0x257   : > { %v6643_v15 = vpack.c.bf16 %v905_v13, %v904_v7 }
 0x258   : > { %910 = vrot.lane.b32.xlu0 %v6615_v53, %s6032_s16  ;;  %912 = vrot.lane.b32.xlu1 %v6615_v53, %s6030_s8 }
 0x25c   : > { %1450 = vrot.lane.b32.xlu1 %v6637_v12, %s6031_s6 }
 0x2c2   : > { %v1187_v22 = vpop.permute.xlu1 %1186  ;;  %v1183_v23 = vpop.permute.xlu0 %1182 }
 0x2c3   : > { %v1190_v24 = vpack.i.b16 %v1183_v23, %v1180_v52  ;;  %v1193_v26 = vshrl.u32 %v1183_v23, 16  ;;  %v1201_v34 = vshrl.u32 %v1187_v22, 16 }
 0x2c5   : > { %v1194_v29 = vpack.i.b16 %v1193_v26, %v1192_v25  ;;  %v1204_v30 = vcombine.high %v1190_v24, %v6647_v21  ;;  %v1211_v41 = vrot.slane %v1190_v24, %v6650_v27 }
 0x2c6   : > { %v1185_v31 = vpop.permute.xlu0 %1184  ;;  %v909_v33 = vpop.permute.xlu1 %908 }
 0x2c7   : > { %v1198_v32 = vpack.i.b16 %v1187_v22, %v1185_v31  ;;  %v1270_v35 = vcombine.high %v1194_v29, %v6647_v21  ;;  %v1200_v38 = vshrl.u32 %v1185_v31, 16  ;;  %v1218_v44 = vrot.slane %v1204_v30, %v6650_v27 }
 0x2c8   : > { %v919_v47 = vshrl.u32 %v909_v33, 16  ;;  %v1277_v48 = vrot.slane %v1194_v29, %v6650_v27  ;;  %v916_v58 = vpack.i.b16 %v909_v33, %v6615_v53 }
 0x2c9   : > { %v1219_v42 = vcombine.high %v1198_v32, %v6647_v21  ;;  %v1226_v43 = vrot.slane %v1198_v32, %v6650_v27  ;;  %v1202_v45 = vpack.i.b16 %v1201_v34, %v1200_v38  ;;  %v1284_v52 = vrot.slane %v1270_v35, %v6650_v27 }
 0x2ca   : > { %v920_v2 = vpack.i.b16 %v919_v47, %v918_v46  ;;  %v911_v3 = vpop.permute.xlu0 %910  ;;  %v913_v16 = vpop.permute.xlu1 %912  ;;  %v936_v20 = vcombine.high %v916_v58, %v6647_v21  ;;  %v943_v22 = vrot.slane %v916_v58, %v6650_v27 }
 0x2cb   : > { %v1233_v49 = vrot.slane %v1219_v42, %v6650_v27  ;;  %v1234_v50 = vcombine.low %v1211_v41, %v1226_v43  ;;  %v1235_v51 = vcombine.high %v1211_v41, %v1226_v43  ;;  %v1285_v56 = vcombine.high %v1202_v45, %v6647_v21 }
 0x2cc   : > { %v1292_v57 = vrot.slane %v1202_v45, %v6650_v27  ;;  %v926_v19 = vshrl.u32 %v911_v3, 16  ;;  %v1002_v23 = vcombine.high %v920_v2, %v6647_v21  ;;  %v924_v26 = vpack.i.b16 %v913_v16, %v911_v3 }
 0x2cd   : > { %v1242_v59 = vrot.slane %v1234_v50, %v6655_v40  ;;  %v1249_v60 = vrot.slane %v1235_v51, %v6655_v40  ;;  %v1250_v61 = vcombine.low %v1218_v44, %v1233_v49  ;;  %v1251_v62 = vcombine.high %v1218_v44, %v1233_v49 }
 0x2ce   : > { %v1299_v63 = vrot.slane %v1285_v56, %v6650_v27  ;;  %v1300_v0 = vcombine.low %v1277_v48, %v1292_v57  ;;  %v1301_v1 = vcombine.high %v1277_v48, %v1292_v57  ;;  %v927_v28 = vshrl.u32 %v913_v16, 16 }
 0x2cf   : > { %v1258_v4 = vrot.slane %v1250_v61, %v6655_v40  ;;  %v1265_v5 = vrot.slane %v1251_v62, %v6655_v40  ;;  %v1336_v7 = vcombine.low %v1242_v59, %v1249_v60  ;;  %v4968_v8 = vcombine.high %v1242_v59, %v1249_v60 }
 0x2d0   : > { %v1308_v53 = vrot.slane %v1300_v0, %v6655_v40  ;;  %v1315_v9 = vrot.slane %v1301_v1, %v6655_v40  ;;  %v1316_v11 = vcombine.low %v1284_v52, %v1299_v63  ;;  %v1317_v13 = vcombine.high %v1284_v52, %v1299_v63 }
 0x2d1   : > { %v1352_v17 = vcombine.low %v1258_v4, %v1265_v5  ;;  %v4969_v18 = vcombine.high %v1258_v4, %v1265_v5  ;;  %v1343_v24 = vrot.slane %v1336_v7, %v6650_v27  ;;  %v1351_v25 = vrot.slane %v4968_v8, %v6650_v27 }
 0x2d2   : > { %v1324_v29 = vrot.slane %v1316_v11, %v6655_v40  ;;  %v1331_v30 = vrot.slane %v1317_v13, %v6655_v40  ;;  %v1386_v31 = vcombine.low %v1308_v53, %v1315_v9  ;;  %v928_v33 = vpack.i.b16 %v927_v28, %v926_v19 }
 0x2d3   : > { %v1359_v32 = vrot.slane %v1352_v17, %v6650_v27  ;;  %v951_v34 = vcombine.high %v924_v26, %v6647_v21  ;;  %v958_v35 = vrot.slane %v924_v26, %v6650_v27  ;;  %v1367_v38 = vrot.slane %v4969_v18, %v6650_v27 }
 0x2d4   : > { %v4970_v41 = vcombine.high %v1308_v53, %v1315_v9  ;;  %v950_v42 = vrot.slane %v936_v20, %v6650_v27  ;;  %v1009_v43 = vrot.slane %v920_v2, %v6650_v27  ;;  %v1016_v44 = vrot.slane %v1002_v23, %v6650_v27 }
 0x2d5   : > { %v965_v45 = vrot.slane %v951_v34, %v6650_v27  ;;  %v966_v46 = vcombine.low %v943_v22, %v958_v35  ;;  %v967_v47 = vcombine.high %v943_v22, %v958_v35  ;;  %v1017_v48 = vcombine.high %v928_v33, %v6647_v21 }
 0x2d6   : > { %v1402_v49 = vcombine.low %v1324_v29, %v1331_v30  ;;  %v4971_v50 = vcombine.high %v1324_v29, %v1331_v30  ;;  %v1024_v51 = vrot.slane %v928_v33, %v6650_v27  ;;  %v1368_v52 = vcombine.low %v1343_v24, %v1351_v25 }
 0x2d7   : > { %v982_v56 = vcombine.low %v950_v42, %v965_v45  ;;  %v983_v57 = vcombine.high %v950_v42, %v965_v45  ;;  %v1376_v58 = vcombine.low %v1359_v32, %v1367_v38  ;;  %v1393_v59 = vrot.slane %v1386_v31, %v6650_v27 }
 0x2d8   : > { %v1031_v60 = vrot.slane %v1017_v48, %v6650_v27  ;;  %v1032_v61 = vcombine.low %v1009_v43, %v1024_v51  ;;  %v1033_v62 = vcombine.high %v1009_v43, %v1024_v51  ;;  %v1401_v63 = vrot.slane %v4970_v41, %v6650_v27 }
 0x2d9   : > { %v974_v0 = vrot.slane %v966_v46, %v6655_v40  ;;  %v981_v1 = vrot.slane %v967_v47, %v6655_v40  ;;  %v990_v2 = vrot.slane %v982_v56, %v6655_v40  ;;  %v997_v3 = vrot.slane %v983_v57, %v6655_v40 }
 0x2da   : > { %v1040_v4 = vrot.slane %v1032_v61, %v6655_v40  ;;  %v1047_v5 = vrot.slane %v1033_v62, %v6655_v40  ;;  %v1048_v7 = vcombine.low %v1016_v44, %v1031_v60  ;;  %v1049_v8 = vcombine.high %v1016_v44, %v1031_v60 }
 0x2db   : > { %v1084_v53 = vcombine.low %v990_v2, %v997_v3  ;;  %v4965_v9 = vcombine.high %v990_v2, %v997_v3  ;;  %v1409_v11 = vrot.slane %v1402_v49, %v6650_v27  ;;  %v1417_v13 = vrot.slane %v4971_v50, %v6650_v27 }
 0x2dc   : > { %v1056_v16 = vrot.slane %v1048_v7, %v6655_v40  ;;  %v1063_v17 = vrot.slane %v1049_v8, %v6655_v40  ;;  %v1118_v18 = vcombine.low %v1040_v4, %v1047_v5  ;;  %v4966_v19 = vcombine.high %v1040_v4, %v1047_v5 }
 0x2dd   : > { %v1068_v20 = vcombine.low %v974_v0, %v981_v1  ;;  %v4964_v22 = vcombine.high %v974_v0, %v981_v1  ;;  %v1383_v23 = vrot.slane %v1376_v58, %v6655_v40  ;;  %v1418_v24 = vcombine.low %v1393_v59, %v1401_v63 }
 0x2de   : > { %v1091_v25 = vrot.slane %v1084_v53, %v6650_v27  ;;  %v1099_v26 = vrot.slane %v4965_v9, %v6650_v27  ;;  %v1134_v28 = vcombine.low %v1056_v16, %v1063_v17  ;;  %v4967_v29 = vcombine.high %v1056_v16, %v1063_v17 }
 0x2df   : > { %v1125_v30 = vrot.slane %v1118_v18, %v6650_v27  ;;  %v1133_v31 = vrot.slane %v4966_v19, %v6650_v27  ;;  %v1426_v32 = vcombine.low %v1409_v11, %v1417_v13  ;;  %v1375_v35 = vrot.slane %v1368_v52, %v6655_v40 }
 0x2e0   : > { %v1141_v33 = vrot.slane %v1134_v28, %v6650_v27  ;;  %v1149_v34 = vrot.slane %v4967_v29, %v6650_v27  ;;  %v1075_v38 = vrot.slane %v1068_v20, %v6650_v27  ;;  %v1083_v41 = vrot.slane %v4964_v22, %v6650_v27 }
 0x2e1   : > { %v1425_v42 = vrot.slane %v1418_v24, %v6655_v40  ;;  %v1433_v43 = vrot.slane %v1426_v32, %v6655_v40  ;;  %v1108_v44 = vcombine.low %v1091_v25, %v1099_v26  ;;  %v1384_v46 = vcombine.low %v1375_v35, %v1383_v23 }
 0x2e2   : > { %v1158_v45 = vcombine.low %v1141_v33, %v1149_v34  ;;  %v1150_v47 = vcombine.low %v1125_v30, %v1133_v31  ;;  %v1385_v49 = vcombine.high %v1375_v35, %v1383_v23  ;;  %v1100_v51 = vcombine.low %v1075_v38, %v1083_v41 }
 0x2e3   : > { %v1434_v48 = vcombine.low %v1425_v42, %v1433_v43  ;;  %v1435_v50 = vcombine.high %v1425_v42, %v1433_v43  ;;  %v1115_v58 = vrot.slane %v1108_v44, %v6655_v40  ;;  %v1439_v2 = vshrl.u32 %v1384_v46, 16 }
 0x2e4   : > { %v1165_v56 = vrot.slane %v1158_v45, %v6655_v40  ;;  %v1157_v59 = vrot.slane %v1150_v47, %v6655_v40  ;;  %v1107_v63 = vrot.slane %v1100_v51, %v6655_v40  ;;  %v1445_v13 = vshrl.u32 %v1385_v49, 16 }
 0x2e5   : > { %v1438_v52 = vpack.i.b16 %v1434_v48, %v1384_v46  ;;  %v1444_v57 = vpack.i.b16 %v1435_v50, %v1385_v49  ;;  %v1440_v62 = vshrl.u32 %v1434_v48, 16  ;;  %v1446_v9 = vshrl.u32 %v1435_v50, 16 }
 0x2e6   : > { %v1166_v0 = vcombine.low %v1157_v59, %v1165_v56  ;;  %v1167_v1 = vcombine.high %v1157_v59, %v1165_v56  ;;  %v1116_v3 = vcombine.low %v1107_v63, %v1115_v58  ;;  %v1117_v4 = vcombine.high %v1107_v63, %v1115_v58 }
 0x2e7   : > { %v1725_v60 = vsel %vm1720_vm1, %v1438_v52, 0  ;;  %v1819_v61 = vsel %vm1720_vm1, %v1444_v57, 0  ;;  %v1441_v5 = vpack.i.b16 %v1440_v62, %v1439_v2  ;;  %v1447_v17 = vpack.i.b16 %v1446_v9, %v1445_v13  ;;  %v1451_v52 = vpop.permute.xlu1 %1450 }
 0x2e8   : > { %5167 = vmatpush3.bf16.xpose.msra.mxu0 %v1725_v60  ;;  %5179 = vmatpush3.bf16.xpose.msra.mxu1 %v1819_v61  ;;  %v1170_v7 = vpack.i.b16 %v1166_v0, %v1116_v3  ;;  %v1176_v8 = vpack.i.b16 %v1167_v1, %v1117_v4  ;;  %v1172_v11 = vshrl.u32 %v1166_v0, 16  ;;  %v1171_v16 = vshrl.u32 %v1116_v3, 16 }
 0x2e9   : > { %5172 = vmatprep.subr.bf16.mxu0 %v6033_v54  ;;  %5190 = vmatprep.subr.bf16.mxu1 %v6033_v54  ;;  %v1772_v53 = vsel %vm1720_vm1, %v1441_v5, 0  ;;  %v1866_v19 = vsel %vm1720_vm1, %v1447_v17, 0  ;;  %v1178_v20 = vshrl.u32 %v1167_v1, 16  ;;  %v1177_v22 = vshrl.u32 %v1117_v4, 16 }
 0x2ea   : > { %v1173_v18 = vpack.i.b16 %v1172_v11, %v1171_v16  ;;  %v1458_v11 = vpack.i.b16 %v1451_v52, %v6637_v12 }
 0x2eb   : > { %v1179_v23 = vpack.i.b16 %v1178_v20, %v1177_v22 }
 0x2ef   : > { %5169 = vmatmul.mubr.msk.bf16.vlgmr.msra.gmra.mrb[8].mxu0 %vm1720_vm1, %v1170_v7  ;;  %5181 = vmatmul.mubr.msk.bf16.vlgmr.msra.gmra.mrb[4].mxu1 %vm1720_vm1, %v1176_v8  ;;  %v1460_v8 = vshrl.u32 %v6637_v12, 16 }
 0x2f0   : > { %5173 = vmatpush3.bf16.xpose.msra.mxu0 %v1772_v53  ;;  %5174 = vmatprep.mubr.msk.bf16.mxu0 %vm6034_vm0, %v6033_v54  ;;  %v1461_v53 = vshrl.u32 %v1451_v52, 16 }
 0x2f1   : > { %5184 = vmatprep.subr.bf16.mxu0 %v6033_v54  ;;  %5192 = vmatprep.mubr.msk.bf16.mxu1 %vm6034_vm0, %v6033_v54 }
 0x2f7   : > { %5175 = vmatmul.mubr.msk.bf16.vlgmr.msra.gmra.mrb[12].mxu0 %vm1720_vm1, %v1173_v18  ;;  %v1462_v18 = vpack.i.b16 %v1461_v53, %v1460_v8 }
 0x2f8   : > { %5185 = vmatpush3.bf16.xpose.msra.mxu0 %v1866_v19  ;;  %5186 = vmatprep.mubr.msk.bf16.mxu0 %vm6034_vm0, %v6033_v54 }
 0x2f9   : > { %5196 = vmatprep.subr.bf16.mxu0 %v6033_v54 }
 0x2ff   : > { %5187 = vmatmul.mubr.msk.bf16.vlgmr.msra.gmra.mrb[16].mxu0 %vm1720_vm1, %v1179_v23  ;;  %v1472_v23 = vcombine.high %v1458_v11, %v6647_v21 }
 0x300   : > { %5198 = vmatprep.mubr.msk.bf16.mxu0 %vm6034_vm0, %v6033_v54 }
 0x3c2   : > { %v1761_v24 = vpop.f32.mrb[8].mxu0  ;;  %v1855_v25 = vpop.f32.mrb[4].mxu1 }
 0x3c3   : > { %v5170_v26 = vpop.f32.mrb[9].mxu0  ;;  %v5182_v28 = vpop.f32.mrb[5].mxu1  ;;  %v1922_v29 = vsel %vm1909_vm2, %v1855_v25, -inf  ;;  %v1910_v30 = vsel %vm1909_vm2, %v1761_v24, -inf }
 0x3c4   : > { %1923 = vmax.xlane.f32.xlu1 %v1922_v29  ;;  %v1858_v31 = vpop.f32.mrb[6].mxu1  ;;  %1911 = vmax.xlane.f32.xlu0 %v1910_v30  ;;  %v1764_v32 = vpop.f32.mrb[10].mxu0  ;;  %v1538_v30 = vcombine.high %v1462_v18, %v6647_v21 }
 0x3c5   : > { %v5171_v33 = vpop.f32.mrb[11].mxu0  ;;  %v5183_v34 = vpop.f32.mrb[7].mxu1  ;;  %v1925_v35 = vsel %vm1909_vm2, %v1858_v31, -inf  ;;  %v1913_v38 = vsel %vm1909_vm2, %v1764_v32, -inf }
 0x3c8   : > { %1926 = vmax.xlane.f32.xlu0 %v1925_v35  ;;  %1914 = vmax.xlane.f32.xlu1 %v1913_v38 }
 0x3ca   : > { %v1808_v41 = vpop.f32.mrb[12].mxu0 }
 0x3cb   : > { %v5176_v42 = vpop.f32.mrb[13].mxu0  ;;  %v1916_v43 = vsel %vm1909_vm2, %v1808_v41, -inf }
 0x3cc   : > { %1917 = vmax.xlane.f32.xlu0 %v1916_v43  ;;  %v1811_v44 = vpop.f32.mrb[14].mxu0 }
 0x3cd   : > { %v5177_v45 = vpop.f32.mrb[15].mxu0  ;;  %v1919_v46 = vsel %vm1909_vm2, %v1811_v44, -inf }
 0x3d0   : > { %1920 = vmax.xlane.f32.xlu0 %v1919_v46 }
 0x3d2   : > { %v6747_v47 = vpop.f32.mrb[16].mxu0 }
 0x3d3   : > { %v5188_v48 = vpop.f32.mrb[17].mxu0  ;;  %v1928_v51 = vsel %vm1909_vm2, %v6747_v47, -inf }
 0x3d4   : > { %v6749_v49 = vpop.f32.mrb[18].mxu0  ;;  %v1545_v48 = vrot.slane %v1462_v18, %v6650_v27 }
 0x3d5   : > { %v5189_v50 = vpop.f32.mrb[19].mxu0  ;;  %v1931_v56 = vsel %vm1909_vm2, %v6749_v49, -inf }
 0x3d6   : > { %v1552_v50 = vrot.slane %v1538_v30, %v6650_v27 }
 0x3d9   : > { %1454 = vrot.lane.b32.xlu1 %v6637_v12, %s6030_s8 }
 0x3e6   : > { %1452 = vrot.lane.b32.xlu0 %v6637_v12, %s6032_s16 }
 0x3fd   : > { %1929 = vmax.xlane.f32.xlu1 %v1928_v51 }
 0x405   : > { %1932 = vmax.xlane.f32.xlu0 %v1931_v56 }
 0x40e   : > { %2754 = vrot.lane.b32.xlu1 %v6639_v14, %s6032_s16 }
 0x412   : > { %2756 = vrot.lane.b32.xlu1 %v6639_v14, %s6030_s8 }
 0x41b   : > { %2752 = vrot.lane.b32.xlu0 %v6639_v14, %s6031_s6 }
 0x41f   : > { %2484 = vrot.lane.b32.xlu0 %v6643_v15, %s6031_s6 }
 0x451   : > { %v1924_v57 = vpop.xlane.xlu1 %1923  ;;  %v1912_v58 = vpop.xlane.xlu0 %1911 }
 0x452   : > { %v1938_v59 = vsub.f32 %v1855_v25, %v1924_v57  ;;  %v1934_v60 = vsub.f32 %v1761_v24, %v1912_v58 }
 0x454   : > { %v1950_v61 = vmul.f32 1.442695, %v1938_v59  ;;  %v1942_v62 = vmul.f32 1.442695, %v1934_v60 }
 0x455   : > { %v1927_v63 = vpop.xlane.xlu0 %1926  ;;  %v1915_v0 = vpop.xlane.xlu1 %1914 }
 0x456   : > { %5551 = vpow2.f32 %v1950_v61  ;;  %v1939_v1 = vsub.f32 %v1858_v31, %v1927_v63  ;;  %v1935_v2 = vsub.f32 %v1764_v32, %v1915_v0  ;;  %v1479_v32 = vrot.slane %v1458_v11, %v6650_v27 }
 0x457   : > { %5553 = vpow2.f32 %v1942_v62 }
 0x458   : > { %v1952_v3 = vmul.f32 1.442695, %v1939_v1  ;;  %v1944_v4 = vmul.f32 1.442695, %v1935_v2 }
 0x459   : > { %v1918_v5 = vpop.xlane.xlu0 %1917  ;;  %v1455_v16 = vpop.permute.xlu1 %1454 }
 0x45a   : > { %5555 = vpow2.f32 %v1952_v3  ;;  %v1936_v7 = vsub.f32 %v1808_v41, %v1918_v5  ;;  %v1469_v24 = vshrl.u32 %v1455_v16, 16  ;;  %v1486_v41 = vrot.slane %v1472_v23, %v6650_v27 }
 0x45b   : > { %5557 = vpow2.f32 %v1944_v4 }
 0x45c   : > { %v1946_v9 = vmul.f32 1.442695, %v1936_v7 }
 0x45d   : > { %v1921_v13 = vpop.xlane.xlu0 %1920 }
 0x45e   : > { %5559 = vpow2.f32 %v1946_v9  ;;  %v1937_v17 = vsub.f32 %v1811_v44, %v1921_v13 }
 0x460   : > { %v6769_v19 = vpop.eup %5551  ;;  %v1948_v20 = vmul.f32 1.442695, %v1937_v17 }
 0x461   : > { %v6771_v22 = vpop.eup %5553  ;;  %v1453_v25 = vpop.permute.xlu0 %1452  ;;  %v1970_v26 = vsel %vm1909_vm2, %v6769_v19, 0.0 }
 0x462   : > { %5561 = vpow2.f32 %v1948_v20  ;;  %v1466_v28 = vpack.i.b16 %v1455_v16, %v1453_v25  ;;  %v1468_v12 = vshrl.u32 %v1453_v25, 16  ;;  %v1958_v29 = vsel %vm1909_vm2, %v6771_v22, 0.0  ;;  %1971 = vadd.xlane.f32.xlu0 %v1970_v26 }
 0x463   : > { %1959 = vadd.xlane.f32.xlu1 %v1958_v29 }
 0x464   : > { %v6779_v31 = vpop.eup %5555  ;;  %v1470_v33 = vpack.i.b16 %v1469_v24, %v1468_v12  ;;  %v1487_v34 = vcombine.high %v1466_v28, %v6647_v21  ;;  %v1494_v35 = vrot.slane %v1466_v28, %v6650_v27 }
 0x465   : > { %v6784_v38 = vpop.eup %5557  ;;  %v1973_v42 = vsel %vm1909_vm2, %v6779_v31, 0.0 }
 0x466   : > { %v1501_v43 = vrot.slane %v1487_v34, %v6650_v27  ;;  %v1502_v44 = vcombine.low %v1479_v32, %v1494_v35  ;;  %v1503_v45 = vcombine.high %v1479_v32, %v1494_v35  ;;  %v1553_v46 = vcombine.high %v1470_v33, %v6647_v21 }
 0x467   : > { %v1560_v51 = vrot.slane %v1470_v33, %v6650_v27  ;;  %1974 = vadd.xlane.f32.xlu1 %v1973_v42  ;;  %v1961_v56 = vsel %vm1909_vm2, %v6784_v38, 0.0 }
 0x468   : > { %v6796_v52 = vpop.eup %5559  ;;  %v1510_v57 = vrot.slane %v1502_v44, %v6655_v40  ;;  %v1517_v58 = vrot.slane %v1503_v45, %v6655_v40  ;;  %v1518_v59 = vcombine.low %v1486_v41, %v1501_v43  ;;  %v1519_v60 = vcombine.high %v1486_v41, %v1501_v43  ;;  %1962 = vadd.xlane.f32.xlu0 %v1961_v56 }
 0x469   : > { %v1567_v61 = vrot.slane %v1553_v46, %v6650_v27  ;;  %v1568_v62 = vcombine.low %v1545_v48, %v1560_v51  ;;  %v1569_v63 = vcombine.high %v1545_v48, %v1560_v51  ;;  %v1964_v0 = vsel %vm1909_vm2, %v6796_v52, 0.0 }
 0x46a   : > { %v1526_v1 = vrot.slane %v1518_v59, %v6655_v40  ;;  %v1533_v2 = vrot.slane %v1519_v60, %v6655_v40  ;;  %v1604_v3 = vcombine.low %v1510_v57, %v1517_v58  ;;  %v4972_v4 = vcombine.high %v1510_v57, %v1517_v58 }
 0x46b   : > { %v1576_v5 = vrot.slane %v1568_v62, %v6655_v40  ;;  %v1583_v7 = vrot.slane %v1569_v63, %v6655_v40  ;;  %v1584_v8 = vcombine.low %v1552_v50, %v1567_v61  ;;  %v1585_v53 = vcombine.high %v1552_v50, %v1567_v61 }
 0x46c   : > { %v6807_v9 = vpop.eup %5561  ;;  %v1611_v11 = vrot.slane %v1604_v3, %v6650_v27  ;;  %v1619_v13 = vrot.slane %v4972_v4, %v6650_v27  ;;  %v1620_v16 = vcombine.low %v1526_v1, %v1533_v2  ;;  %v4973_v17 = vcombine.high %v1526_v1, %v1533_v2  ;;  %1965 = vadd.xlane.f32.xlu0 %v1964_v0 }
 0x46d   : > { %v1592_v18 = vrot.slane %v1584_v8, %v6655_v40  ;;  %v1599_v20 = vrot.slane %v1585_v53, %v6655_v40  ;;  %v1654_v23 = vcombine.low %v1576_v5, %v1583_v7  ;;  %v4974_v24 = vcombine.high %v1576_v5, %v1583_v7 }
 0x46e   : > { %v1627_v25 = vrot.slane %v1620_v16, %v6650_v27  ;;  %v1635_v26 = vrot.slane %v4973_v17, %v6650_v27  ;;  %v1967_v28 = vsel %vm1909_vm2, %v6807_v9, 0.0  ;;  %v1636_v12 = vcombine.low %v1611_v11, %v1619_v13 }
 0x46f   : > { %v1661_v29 = vrot.slane %v1654_v23, %v6650_v27  ;;  %v1669_v30 = vrot.slane %v4974_v24, %v6650_v27  ;;  %v1670_v32 = vcombine.low %v1592_v18, %v1599_v20  ;;  %v4975_v33 = vcombine.high %v1592_v18, %v1599_v20  ;;  %1968 = vadd.xlane.f32.xlu1 %v1967_v28 }
 0x470   : > { %v1644_v34 = vcombine.low %v1627_v25, %v1635_v26  ;;  %v1643_v43 = vrot.slane %v1636_v12, %v6655_v40  ;;  %v2762_v24 = vshrl.u32 %v6639_v14, 16 }
 0x471   : > { %v1677_v35 = vrot.slane %v1670_v32, %v6650_v27  ;;  %v1685_v41 = vrot.slane %v4975_v33, %v6650_v27  ;;  %v1686_v42 = vcombine.low %v1661_v29, %v1669_v30 }
 0x472   : > { %v1651_v44 = vrot.slane %v1644_v34, %v6655_v40 }
 0x473   : > { %v1694_v45 = vcombine.low %v1677_v35, %v1685_v41  ;;  %v1693_v50 = vrot.slane %v1686_v42, %v6655_v40 }
 0x474   : > { %v1652_v46 = vcombine.low %v1643_v43, %v1651_v44  ;;  %v6823_v48 = vcombine.high %v1643_v43, %v1651_v44 }
 0x475   : > { %v1701_v51 = vrot.slane %v1694_v45, %v6655_v40 }
 0x476   : > { %v1708_v58 = vshrl.u32 %v1652_v46, 16  ;;  %v1716_v59 = vshrl.u32 %v6823_v48, 16 }
 0x477   : > { %v1702_v56 = vcombine.low %v1693_v50, %v1701_v51  ;;  %v6827_v57 = vcombine.high %v1693_v50, %v1701_v51 }
 0x479   : > { %v1706_v60 = vpack.i.b16 %v1702_v56, %v1652_v46  ;;  %v1709_v61 = vshrl.u32 %v1702_v56, 16  ;;  %v1714_v62 = vpack.i.b16 %v6827_v57, %v6823_v48  ;;  %v1717_v63 = vshrl.u32 %v6827_v57, 16 }
 0x47b   : > { %5191 = vmatpush3.bf16.msra.mxu1 %v1706_v60  ;;  %v1710_v0 = vpack.i.b16 %v1709_v61, %v1708_v58  ;;  %v6833_v1 = vpack.i.b16 %v1717_v63, %v1716_v59 }
 0x47c   : > { %5202 = vmatprep.subr.bf16.mxu1 %v6033_v54 }
 0x47d   : > { %5197 = vmatpush3.bf16.msra.mxu0 %v1710_v0 }
 0x47e   : > { %5208 = vmatprep.subr.bf16.mxu0 %v6033_v54 }
 0x48a   : > { %v1930_v2 = vpop.xlane.xlu1 %1929 }
 0x48b   : > { %v1940_v3 = vsub.f32 %v6747_v47, %v1930_v2 }
 0x48d   : > { %v1954_v4 = vmul.f32 1.442695, %v1940_v3 }
 0x48e   : > { %v2755_v5 = vpop.permute.xlu1 %2754 }
 0x48f   : > { %5563 = vpow2.f32 %v1954_v4  ;;  %v2770_v16 = vshrl.u32 %v2755_v5, 16 }
 0x492   : > { %v2757_v7 = vpop.permute.xlu1 %2756  ;;  %v1933_v8 = vpop.xlane.xlu0 %1932 }
 0x493   : > { %v2768_v53 = vpack.i.b16 %v2757_v7, %v2755_v5  ;;  %v2771_v11 = vshrl.u32 %v2757_v7, 16  ;;  %v1941_v13 = vsub.f32 %v6749_v49, %v1933_v8 }
 0x495   : > { %v1956_v17 = vmul.f32 1.442695, %v1941_v13  ;;  %v2772_v20 = vpack.i.b16 %v2771_v11, %v2770_v16  ;;  %v2789_v23 = vcombine.high %v2768_v53, %v6647_v21  ;;  %v2796_v28 = vrot.slane %v2768_v53, %v6650_v27 }
 0x496   : > { %v2753_v18 = vpop.permute.xlu0 %2752 }
 0x497   : > { %5565 = vpow2.f32 %v1956_v17  ;;  %v2760_v47 = vpack.i.b16 %v2753_v18, %v6639_v14  ;;  %v2763_v25 = vshrl.u32 %v2753_v18, 16  ;;  %v2803_v32 = vrot.slane %v2789_v23, %v6650_v27 }
 0x498   : > { %v2855_v33 = vcombine.high %v2772_v20, %v6647_v21  ;;  %v2862_v42 = vrot.slane %v2772_v20, %v6650_v27 }
 0x499   : > { %v6842_v26 = vpop.eup %5563  ;;  %v2764_v12 = vpack.i.b16 %v2763_v25, %v2762_v24  ;;  %v2774_v29 = vcombine.high %v2760_v47, %v6647_v21  ;;  %v2781_v49 = vrot.slane %v2760_v47, %v6650_v27 }
 0x49a   : > { %v1976_v30 = vsel %vm1909_vm2, %v6842_v26, 0.0  ;;  %v2869_v51 = vrot.slane %v2855_v33, %v6650_v27 }
 0x49b   : > { %1977 = vadd.xlane.f32.xlu0 %v1976_v30  ;;  %v2788_v14 = vrot.slane %v2774_v29, %v6650_v27  ;;  %v2804_v34 = vcombine.low %v2781_v49, %v2796_v28  ;;  %v2805_v35 = vcombine.high %v2781_v49, %v2796_v28  ;;  %v2840_v41 = vcombine.high %v2764_v12, %v6647_v21 }
 0x49c   : > { %v2847_v43 = vrot.slane %v2764_v12, %v6650_v27 }
 0x49d   : > { %v2812_v44 = vrot.slane %v2804_v34, %v6655_v40  ;;  %v2819_v45 = vrot.slane %v2805_v35, %v6655_v40  ;;  %v2820_v46 = vcombine.low %v2788_v14, %v2803_v32  ;;  %v2821_v50 = vcombine.high %v2788_v14, %v2803_v32 }
 0x49e   : > { %v2854_v56 = vrot.slane %v2840_v41, %v6650_v27  ;;  %v2870_v58 = vcombine.low %v2847_v43, %v2862_v42  ;;  %v2871_v59 = vcombine.high %v2847_v43, %v2862_v42 }
 0x49f   : > { %v2828_v60 = vrot.slane %v2820_v46, %v6655_v40  ;;  %v2835_v61 = vrot.slane %v2821_v50, %v6655_v40  ;;  %v2906_v63 = vcombine.low %v2812_v44, %v2819_v45  ;;  %v4992_v0 = vcombine.high %v2812_v44, %v2819_v45 }
 0x4a0   : > { %v2878_v3 = vrot.slane %v2870_v58, %v6655_v40  ;;  %v2885_v4 = vrot.slane %v2871_v59, %v6655_v40  ;;  %v2886_v5 = vcombine.low %v2854_v56, %v2869_v51  ;;  %v2887_v7 = vcombine.high %v2854_v56, %v2869_v51  ;;  %v2485_v58 = vpop.permute.xlu0 %2484 }
 0x4a1   : > { %v6861_v2 = vpop.eup %5565  ;;  %v2913_v8 = vrot.slane %v2906_v63, %v6650_v27  ;;  %v2921_v53 = vrot.slane %v4992_v0, %v6650_v27  ;;  %v2922_v11 = vcombine.low %v2828_v60, %v2835_v61  ;;  %v4993_v13 = vcombine.high %v2828_v60, %v2835_v61 }
 0x4a2   : > { %v2894_v16 = vrot.slane %v2886_v5, %v6655_v40  ;;  %v2901_v17 = vrot.slane %v2887_v7, %v6655_v40  ;;  %v2956_v18 = vcombine.low %v2878_v3, %v2885_v4  ;;  %v4994_v20 = vcombine.high %v2878_v3, %v2885_v4 }
 0x4a3   : > { %v1979_v23 = vsel %vm1909_vm2, %v6861_v2, 0.0  ;;  %v2929_v24 = vrot.slane %v2922_v11, %v6650_v27  ;;  %v2937_v28 = vrot.slane %v4993_v13, %v6650_v27  ;;  %v2938_v12 = vcombine.low %v2913_v8, %v2921_v53 }
 0x4a4   : > { %v2972_v47 = vcombine.low %v2894_v16, %v2901_v17  ;;  %v4995_v25 = vcombine.high %v2894_v16, %v2901_v17  ;;  %1980 = vadd.xlane.f32.xlu1 %v1979_v23  ;;  %v2963_v29 = vrot.slane %v2956_v18, %v6650_v27  ;;  %v2971_v49 = vrot.slane %v4994_v20, %v6650_v27 }
 0x4a5   : > { %v2946_v30 = vcombine.low %v2929_v24, %v2937_v28  ;;  %v2945_v34 = vrot.slane %v2938_v12, %v6655_v40  ;;  %v2492_v57 = vpack.i.b16 %v2485_v58, %v6643_v15 }
 0x4a6   : > { %v2979_v32 = vrot.slane %v2972_v47, %v6650_v27  ;;  %v2987_v33 = vrot.slane %v4995_v25, %v6650_v27  ;;  %v2988_v14 = vcombine.low %v2963_v29, %v2971_v49 }
 0x4a7   : > { %v2953_v35 = vrot.slane %v2946_v30, %v6655_v40  ;;  %v2506_v12 = vcombine.high %v2492_v57, %v6647_v21 }
 0x4a8   : > { %v2996_v41 = vcombine.low %v2979_v32, %v2987_v33  ;;  %v2995_v42 = vrot.slane %v2988_v14, %v6655_v40 }
 0x4a9   : > { %v6881_v44 = vcombine.high %v2945_v34, %v2953_v35  ;;  %v2954_v23 = vcombine.low %v2945_v34, %v2953_v35  ;;  %v2513_v35 = vrot.slane %v2492_v57, %v6650_v27 }
 0x4aa   : > { %v3003_v43 = vrot.slane %v2996_v41, %v6655_v40 }
 0x4ab   : > { %v3015_v50 = vshrl.u32 %v6881_v44, 16 }
 0x4ac   : > { %v6883_v45 = vcombine.high %v2995_v42, %v3003_v43  ;;  %v3004_v17 = vcombine.low %v2995_v42, %v3003_v43  ;;  %v2520_v43 = vrot.slane %v2506_v12, %v6650_v27 }
 0x4ae   : > { %v3014_v46 = vpack.i.b16 %v6883_v45, %v6881_v44  ;;  %v3016_v51 = vshrl.u32 %v6883_v45, 16  ;;  %v3008_v25 = vpack.i.b16 %v3004_v17, %v2954_v23  ;;  %v3010_v14 = vshrl.u32 %v3004_v17, 16 }
 0x4b0   : > { %v6891_v56 = vpack.i.b16 %v3016_v51, %v3015_v50  ;;  %v3009_v51 = vshrl.u32 %v2954_v23, 16 }
 0x4b1   : > { %2488 = vrot.lane.b32.xlu0 %v6643_v15, %s6030_s8 }
 0x4b5   : > { %2486 = vrot.lane.b32.xlu1 %v6643_v15, %s6032_s16 }
 0x4ef   : > { %v1972_v59 = vpop.xlane.xlu0 %1971 }
 0x4f0   : > { %v1960_v60 = vpop.xlane.xlu1 %1959 }
 0x4f1   : > { %5567 = vrcp.f32 %v1960_v60 }
 0x4f4   : > { %v1975_v63 = vpop.xlane.xlu1 %1974 }
 0x4f5   : > { %v1963_v61 = vpop.xlane.xlu0 %1962 }
 0x4f6   : > { %5569 = vrcp.f32 %v1963_v61 }
 0x4f7   : > { %5571 = vrcp.f32 %v1975_v63 }
 0x4f9   : > { %v1966_v0 = vpop.xlane.xlu0 %1965 }
 0x4fa   : > { %5573 = vrcp.f32 %v1966_v0 }
 0x4fb   : > { %5575 = vrcp.f32 %v1972_v59  ;;  %v5568_v4 = vpop.eup %5567 }
 0x4fc   : > { %v1969_v3 = vpop.xlane.xlu1 %1968  ;;  %v1990_v7 = vmul.f32 %v5568_v4, %v6771_v22  ;;  %v3011_v4 = vpack.i.b16 %v3010_v14, %v3009_v51 }
 0x4fd   : > { %5577 = vrcp.f32 %v1969_v3 }
 0x500   : > { %v5570_v5 = vpop.eup %5569 }
 0x501   : > { %v1991_v8 = vmul.f32 %v5570_v5, %v6784_v38  ;;  %v5572_v11 = vpop.eup %5571 }
 0x502   : > { %v1995_v20 = vmul.f32 %v5572_v11, %v6779_v31  ;;  %v3294_v31 = vsel %vm1720_vm1, %v3008_v25, 0 }
 0x503   : > { %v1998_v53 = vpack.c.bf16 %v1991_v8, %v1990_v7 }
 0x504   : > { %v5574_v13 = vpop.eup %5573 }
 0x505   : > { %5193 = vmatmul.mubr.msk.bf16.vlgmr.msra.gmra.mrb[8].mxu1 %vm1909_vm2, %v1998_v53  ;;  %v5576_v16 = vpop.eup %5575  ;;  %v1992_v22 = vmul.f32 %v5574_v13, %v6796_v52  ;;  %v2495_v52 = vshrl.u32 %v2485_v58, 16 }
 0x506   : > { %5203 = vmatpush3.bf16.msra.mxu1 %v1714_v62  ;;  %5204 = vmatprep.mubr.msk.bf16.mxu1 %vm6034_vm0, %v6033_v54  ;;  %v1994_v24 = vmul.f32 %v5576_v16, %v6769_v19 }
 0x507   : > { %v5578_v18 = vpop.eup %5577  ;;  %5214 = vmatprep.subr.bf16.mxu1 %v6033_v54 }
 0x508   : > { %v1993_v38 = vmul.f32 %v5578_v18, %v6807_v9  ;;  %v2000_v48 = vpack.c.bf16 %v1995_v20, %v1994_v24  ;;  %v2494_v9 = vshrl.u32 %v6643_v15, 16 }
 0x50a   : > { %v1999_v47 = vpack.c.bf16 %v1993_v38, %v1992_v22 }
 0x50c   : > { %5199 = vmatmul.mubr.msk.bf16.vlgmr.msra.gmra.mrb[20].mxu0 %vm1909_vm2, %v1999_v47 }
 0x50d   : > { %5205 = vmatmul.mubr.msk.bf16.vlgmr.msra.gmra.mrb[12].mxu1 %vm1909_vm2, %v2000_v48  ;;  %5209 = vmatpush3.bf16.msra.mxu0 %v6833_v1  ;;  %v2496_v1 = vpack.i.b16 %v2495_v52, %v2494_v9 }
 0x50e   : > { %5210 = vmatprep.mubr.msk.bf16.mxu0 %vm6034_vm0, %v6033_v54  ;;  %5220 = vmatprep.subr.bf16.mxu0 %v6033_v54 }
 0x50f   : > { %5215 = vmatpush3.bf16.xpose.msra.mxu1 %v3294_v31  ;;  %5216 = vmatprep.mubr.msk.bf16.mxu1 %vm6034_vm0, %v6033_v54  ;;  %v2572_v33 = vcombine.high %v2496_v1, %v6647_v21  ;;  %v2579_v50 = vrot.slane %v2496_v1, %v6650_v27 }
 0x510   : > { %5226 = vmatprep.subr.bf16.mxu1 %v6033_v54 }
 0x511   : > { %v2586_v63 = vrot.slane %v2572_v33, %v6650_v27 }
 0x528   : > { %v1978_v19 = vpop.xlane.xlu0 %1977 }
 0x529   : > { %5579 = vrcp.f32 %v1978_v19 }
 0x52c   : > { %v2489_v28 = vpop.permute.xlu0 %2488 }
 0x52d   : > { %v2503_v49 = vshrl.u32 %v2489_v28, 16 }
 0x531   : > { %v1981_v62 = vpop.xlane.xlu1 %1980 }
 0x532   : > { %5581 = vrcp.f32 %v1981_v62 }
 0x533   : > { %v5580_v34 = vpop.eup %5579 }
 0x534   : > { %v1996_v0 = vmul.f32 %v5580_v34, %v6842_v26  ;;  %v3341_v34 = vsel %vm1720_vm1, %v3011_v4, 0 }
 0x535   : > { %v2487_v29 = vpop.permute.xlu1 %2486 }
 0x536   : > { %v2500_v30 = vpack.i.b16 %v2489_v28, %v2487_v29  ;;  %v2502_v32 = vshrl.u32 %v2487_v29, 16 }
 0x538   : > { %v2504_v41 = vpack.i.b16 %v2503_v49, %v2502_v32  ;;  %v2521_v42 = vcombine.high %v2500_v30, %v6647_v21  ;;  %v2528_v15 = vrot.slane %v2500_v30, %v6650_v27 }
 0x53a   : > { %v2535_v58 = vrot.slane %v2521_v42, %v6650_v27  ;;  %v2536_v59 = vcombine.low %v2513_v35, %v2528_v15  ;;  %v2537_v60 = vcombine.high %v2513_v35, %v2528_v15  ;;  %v2587_v61 = vcombine.high %v2504_v41, %v6647_v21 }
 0x53b   : > { %v2594_v3 = vrot.slane %v2504_v41, %v6650_v27 }
 0x53c   : > { %v5582_v5 = vpop.eup %5581  ;;  %v2544_v7 = vrot.slane %v2536_v59, %v6655_v40  ;;  %v2551_v8 = vrot.slane %v2537_v60, %v6655_v40  ;;  %v2552_v53 = vcombine.low %v2520_v43, %v2535_v58  ;;  %v2553_v11 = vcombine.high %v2520_v43, %v2535_v58 }
 0x53d   : > { %v1997_v13 = vmul.f32 %v5582_v5, %v6861_v2  ;;  %v2601_v16 = vrot.slane %v2587_v61, %v6650_v27  ;;  %v2602_v17 = vcombine.low %v2579_v50, %v2594_v3  ;;  %v2603_v18 = vcombine.high %v2579_v50, %v2594_v3 }
 0x53e   : > { %v2560_v20 = vrot.slane %v2552_v53, %v6655_v40  ;;  %v2567_v26 = vrot.slane %v2553_v11, %v6655_v40  ;;  %v2638_v22 = vcombine.low %v2544_v7, %v2551_v8  ;;  %v4988_v38 = vcombine.high %v2544_v7, %v2551_v8 }
 0x53f   : > { %v2610_v23 = vrot.slane %v2602_v17, %v6655_v40  ;;  %v2617_v24 = vrot.slane %v2603_v18, %v6655_v40  ;;  %v2618_v47 = vcombine.low %v2586_v63, %v2601_v16  ;;  %v2619_v25 = vcombine.high %v2586_v63, %v2601_v16 }
 0x540   : > { %v2645_v48 = vrot.slane %v2638_v22, %v6650_v27  ;;  %v2653_v2 = vrot.slane %v4988_v38, %v6650_v27  ;;  %v2654_v31 = vcombine.low %v2560_v20, %v2567_v26  ;;  %v4989_v19 = vcombine.high %v2560_v20, %v2567_v26 }
 0x541   : > { %v2626_v52 = vrot.slane %v2618_v47, %v6655_v40  ;;  %v2633_v9 = vrot.slane %v2619_v25, %v6655_v40  ;;  %v2688_v57 = vcombine.low %v2610_v23, %v2617_v24  ;;  %v4990_v62 = vcombine.high %v2610_v23, %v2617_v24 }
 0x542   : > { %v2661_v1 = vrot.slane %v2654_v31, %v6650_v27  ;;  %v2669_v28 = vrot.slane %v4989_v19, %v6650_v27  ;;  %v2670_v12 = vcombine.low %v2645_v48, %v2653_v2  ;;  %v2001_v29 = vpack.c.bf16 %v1997_v13, %v1996_v0 }
 0x543   : > { %v2695_v49 = vrot.slane %v2688_v57, %v6650_v27  ;;  %v2703_v30 = vrot.slane %v4990_v62, %v6650_v27  ;;  %v2704_v32 = vcombine.low %v2626_v52, %v2633_v9  ;;  %v4991_v33 = vcombine.high %v2626_v52, %v2633_v9 }
 0x544   : > { %v2678_v14 = vcombine.low %v2661_v1, %v2669_v28  ;;  %5211 = vmatmul.mubr.msk.bf16.vlgmr.msra.gmra.mrb[24].mxu0 %vm1909_vm2, %v2001_v29  ;;  %v2677_v43 = vrot.slane %v2670_v12, %v6655_v40  ;;  %v3388_v3 = vsel %vm1720_vm1, %v3014_v46, 0  ;;  %v3435_v7 = vsel %vm1720_vm1, %v6891_v56, 0 }
 0x545   : > { %v2711_v35 = vrot.slane %v2704_v32, %v6650_v27  ;;  %v2719_v41 = vrot.slane %v4991_v33, %v6650_v27  ;;  %v2720_v42 = vcombine.low %v2695_v49, %v2703_v30  ;;  %5221 = vmatpush3.bf16.xpose.msra.mxu0 %v3341_v34  ;;  %5222 = vmatprep.mubr.msk.bf16.mxu0 %vm6034_vm0, %v6033_v54 }
 0x546   : > { %v2685_v15 = vrot.slane %v2678_v14, %v6655_v40  ;;  %5232 = vmatprep.subr.bf16.mxu0 %v6033_v54 }
 0x547   : > { %v2728_v50 = vcombine.low %v2711_v35, %v2719_v41  ;;  %v2727_v58 = vrot.slane %v2720_v42, %v6655_v40 }
 0x548   : > { %v2686_v51 = vcombine.low %v2677_v43, %v2685_v15  ;;  %v2687_v8 = vcombine.high %v2677_v43, %v2685_v15 }
 0x549   : > { %v2735_v59 = vrot.slane %v2728_v50, %v6655_v40 }
 0x54a   : > { %v2741_v63 = vshrl.u32 %v2686_v51, 16  ;;  %v2747_v46 = vshrl.u32 %v2687_v8, 16 }
 0x54b   : > { %v2736_v60 = vcombine.low %v2727_v58, %v2735_v59  ;;  %v2737_v5 = vcombine.high %v2727_v58, %v2735_v59 }
 0x54d   : > { %v2740_v61 = vpack.i.b16 %v2736_v60, %v2686_v51  ;;  %v2742_v0 = vshrl.u32 %v2736_v60, 16  ;;  %v2748_v44 = vshrl.u32 %v2737_v5, 16  ;;  %v2746_v45 = vpack.i.b16 %v2737_v5, %v2687_v8 }
 0x54f   : > { %5217 = vmatmul.mubr.msk.bf16.vlgmr.msra.gmra.mrb[16].mxu1 %vm1720_vm1, %v2740_v61  ;;  %v2743_v4 = vpack.i.b16 %v2742_v0, %v2741_v63  ;;  %v2749_v53 = vpack.i.b16 %v2748_v44, %v2747_v46 }
 0x550   : > { %5227 = vmatpush3.bf16.xpose.msra.mxu1 %v3388_v3  ;;  %5228 = vmatprep.mubr.msk.bf16.mxu1 %vm6034_vm0, %v6033_v54 }
 0x551   : > { %5223 = vmatmul.mubr.msk.bf16.vlgmr.msra.gmra.mrb[28].mxu0 %vm1720_vm1, %v2743_v4  ;;  %5238 = vmatprep.subr.bf16.mxu1 %v6033_v54 }
 0x552   : > { %5233 = vmatpush3.bf16.xpose.msra.mxu0 %v3435_v7  ;;  %5234 = vmatprep.mubr.msk.bf16.mxu0 %vm6034_vm0, %v6033_v54 }
 0x553   : > { %5244 = vmatprep.subr.bf16.mxu0 %v6033_v54 }
 0x557   : > { %5229 = vmatmul.mubr.msk.bf16.vlgmr.msra.gmra.mrb[20].mxu1 %vm1720_vm1, %v2746_v45 }
 0x558   : > { %5240 = vmatprep.mubr.msk.bf16.mxu1 %vm6034_vm0, %v6033_v54 }
 0x559   : > { %5235 = vmatmul.mubr.msk.bf16.vlgmr.msra.gmra.mrb[32].mxu0 %vm1720_vm1, %v2749_v53 }
 0x55a   : > { %5246 = vmatprep.mubr.msk.bf16.mxu0 %vm6034_vm0, %v6033_v54 }
 0x5d8   : > { %v2039_v56 = vpop.f32.mrb[8].mxu1 }
 0x5d9   : > { %v5194_v11 = vpop.f32.mrb[9].mxu1 }
 0x5da   : > { %v2042_v13 = vpop.f32.mrb[10].mxu1 }
 0x5db   : > { %v5195_v16 = vpop.f32.mrb[11].mxu1 }
 0x5df   : > { %v2083_v17 = vpop.f32.mrb[20].mxu0 }
 0x5e0   : > { %v2127_v18 = vpop.f32.mrb[12].mxu1  ;;  %v5200_v20 = vpop.f32.mrb[21].mxu0 }
 0x5e1   : > { %v2178_v26 = vcombine.low %v2039_v56, %v2127_v18  ;;  %v2179_v22 = vcombine.high %v2039_v56, %v2127_v18  ;;  %v5206_v38 = vpop.f32.mrb[13].mxu1  ;;  %v2086_v23 = vpop.f32.mrb[22].mxu0 }
 0x5e2   : > { %v2130_v24 = vpop.f32.mrb[14].mxu1  ;;  %v5201_v47 = vpop.f32.mrb[23].mxu0 }
 0x5e3   : > { %v2246_v25 = vcombine.low %v2042_v13, %v2130_v24  ;;  %v2247_v48 = vcombine.high %v2042_v13, %v2130_v24  ;;  %v5207_v2 = vpop.f32.mrb[15].mxu1  ;;  %v2186_v57 = vrot.slane %v2178_v26, %v6650_v27  ;;  %v2193_v62 = vrot.slane %v2179_v22, %v6650_v27 }
 0x5e5   : > { %v2254_v35 = vrot.slane %v2246_v25, %v6650_v27  ;;  %v2261_v41 = vrot.slane %v2247_v48, %v6650_v27 }
 0x617   : > { %v2171_v31 = vpop.f32.mrb[24].mxu0 }
 0x618   : > { %v2194_v19 = vcombine.low %v2083_v17, %v2171_v31  ;;  %v2195_v52 = vcombine.high %v2083_v17, %v2171_v31  ;;  %v5212_v9 = vpop.f32.mrb[25].mxu0 }
 0x619   : > { %v2174_v1 = vpop.f32.mrb[26].mxu0 }
 0x61a   : > { %v2202_v28 = vrot.slane %v2194_v19, %v6650_v27  ;;  %v2209_v12 = vrot.slane %v2195_v52, %v6650_v27  ;;  %v2262_v29 = vcombine.low %v2086_v23, %v2174_v1  ;;  %v2263_v49 = vcombine.high %v2086_v23, %v2174_v1  ;;  %v5213_v30 = vpop.f32.mrb[27].mxu0 }
 0x61c   : > { %v2210_v32 = vcombine.low %v2186_v57, %v2202_v28  ;;  %v2211_v33 = vcombine.high %v2186_v57, %v2202_v28  ;;  %v2226_v14 = vcombine.low %v2193_v62, %v2209_v12  ;;  %v2227_v34 = vcombine.high %v2193_v62, %v2209_v12 }
 0x61d   : > { %v2270_v42 = vrot.slane %v2262_v29, %v6650_v27  ;;  %v2277_v15 = vrot.slane %v2263_v49, %v6650_v27 }
 0x61e   : > { %v2218_v43 = vrot.slane %v2210_v32, %v6655_v40  ;;  %v2225_v50 = vrot.slane %v2211_v33, %v6655_v40  ;;  %v2234_v51 = vrot.slane %v2226_v14, %v6655_v40  ;;  %v2241_v58 = vrot.slane %v2227_v34, %v6655_v40 }
 0x61f   : > { %v2278_v59 = vcombine.low %v2254_v35, %v2270_v42  ;;  %v2279_v60 = vcombine.high %v2254_v35, %v2270_v42  ;;  %v2294_v61 = vcombine.low %v2261_v41, %v2277_v15  ;;  %v2295_v63 = vcombine.high %v2261_v41, %v2277_v15 }
 0x620   : > { %v2314_v0 = vcombine.low %v2218_v43, %v2225_v50  ;;  %v4984_v3 = vcombine.high %v2218_v43, %v2225_v50  ;;  %v2330_v4 = vcombine.low %v2234_v51, %v2241_v58  ;;  %v4985_v5 = vcombine.high %v2234_v51, %v2241_v58 }
 0x621   : > { %v2286_v7 = vrot.slane %v2278_v59, %v6655_v40  ;;  %v2293_v8 = vrot.slane %v2279_v60, %v6655_v40  ;;  %v2302_v44 = vrot.slane %v2294_v61, %v6655_v40  ;;  %v2309_v45 = vrot.slane %v2295_v63, %v6655_v40 }
 0x622   : > { %v2321_v46 = vrot.slane %v2314_v0, %v6650_v27  ;;  %v2329_v53 = vrot.slane %v4984_v3, %v6650_v27  ;;  %v2337_v56 = vrot.slane %v2330_v4, %v6650_v27  ;;  %v2345_v11 = vrot.slane %v4985_v5, %v6650_v27  ;;  %v6999_v13 = vpop.f32.mrb[16].mxu1 }
 0x623   : > { %v2382_v16 = vcombine.low %v2286_v7, %v2293_v8  ;;  %v4986_v17 = vcombine.high %v2286_v7, %v2293_v8  ;;  %v2398_v18 = vcombine.low %v2302_v44, %v2309_v45  ;;  %v4987_v20 = vcombine.high %v2302_v44, %v2309_v45  ;;  %v5218_v26 = vpop.f32.mrb[17].mxu1 }
 0x624   : > { %v3478_v22 = vsel %vm1909_vm2, %v6999_v13, -inf  ;;  %v7003_v38 = vpop.f32.mrb[18].mxu1  ;;  %v7005_v23 = vpop.f32.mrb[28].mxu0  ;;  %v2346_v24 = vcombine.low %v2321_v46, %v2329_v53  ;;  %v2362_v47 = vcombine.low %v2337_v56, %v2345_v11  ;;  %v2347_v25 = vcombine.high %v2321_v46, %v2329_v53 }
 0x625   : > { %v2389_v48 = vrot.slane %v2382_v16, %v6650_v27  ;;  %v2397_v2 = vrot.slane %v4986_v17, %v6650_v27  ;;  %v2405_v31 = vrot.slane %v2398_v18, %v6650_v27  ;;  %v2413_v19 = vrot.slane %v4987_v20, %v6650_v27  ;;  %3479 = vmax.xlane.f32.xlu1 %v3478_v22  ;;  %v5219_v52 = vpop.f32.mrb[19].mxu1  ;;  %v5224_v9 = vpop.f32.mrb[29].mxu0 }
 0x626   : > { %v3481_v57 = vsel %vm1909_vm2, %v7003_v38, -inf  ;;  %v3380_v62 = vpop.f32.mrb[30].mxu0  ;;  %v7014_v1 = vrot.slane %v2346_v24, %v6655_v40  ;;  %v7017_v28 = vrot.slane %v2362_v47, %v6655_v40  ;;  %v2361_v32 = vrot.slane %v2347_v25, %v6655_v40 }
 0x627   : > { %3482 = vmax.xlane.f32.xlu0 %v3481_v57  ;;  %v5225_v12 = vpop.f32.mrb[31].mxu0  ;;  %v3487_v29 = vsel %vm1909_vm2, %v3380_v62, -inf  ;;  %v2414_v49 = vcombine.low %v2389_v48, %v2397_v2  ;;  %v2430_v30 = vcombine.low %v2405_v31, %v2413_v19  ;;  %v2363_v34 = vcombine.high %v2337_v56, %v2345_v11 }
 0x628   : > { %v2378_v33 = vcombine.low %v7014_v1, %v7017_v28  ;;  %v2379_v14 = vcombine.high %v7014_v1, %v7017_v28  ;;  %v2415_v35 = vcombine.high %v2389_v48, %v2397_v2  ;;  %v2431_v15 = vcombine.high %v2405_v31, %v2413_v19 }
 0x629   : > { %3488 = vmax.xlane.f32.xlu1 %v3487_v29  ;;  %v7026_v41 = vrot.slane %v2414_v49, %v6655_v40  ;;  %v7029_v42 = vrot.slane %v2430_v30, %v6655_v40  ;;  %v3484_v50 = vsel %vm1909_vm2, %v7005_v23, -inf  ;;  %v2377_v51 = vrot.slane %v2363_v34, %v6655_v40 }
 0x62a   : > { %v3424_v43 = vpop.f32.mrb[20].mxu1  ;;  %v2429_v58 = vrot.slane %v2415_v35, %v6655_v40  ;;  %v2445_v63 = vrot.slane %v2431_v15, %v6655_v40 }
 0x62b   : > { %3485 = vmax.xlane.f32.xlu0 %v3484_v50  ;;  %v5230_v59 = vpop.f32.mrb[21].mxu1  ;;  %v2447_v60 = vcombine.high %v7026_v41, %v7029_v42  ;;  %v2446_v61 = vcombine.low %v7026_v41, %v7029_v42  ;;  %v2381_v4 = vcombine.high %v2361_v32, %v2377_v51  ;;  %v2380_v5 = vcombine.low %v2361_v32, %v2377_v51 }
 0x62c   : > { %v3427_v0 = vpop.f32.mrb[22].mxu1  ;;  %v3471_v3 = vpop.f32.mrb[32].mxu0  ;;  %v2449_v46 = vcombine.high %v2429_v58, %v2445_v63  ;;  %v3490_v53 = vsel %vm1909_vm2, %v3424_v43, -inf  ;;  %v2448_v11 = vcombine.low %v2429_v58, %v2445_v63  ;;  %v3030_v63 = vshrl.u32 %v6635_v10, 16 }
 0x62d   : > { %v5231_v7 = vpop.f32.mrb[23].mxu1  ;;  %v5236_v8 = vpop.f32.mrb[33].mxu0  ;;  %v3493_v44 = vsel %vm1909_vm2, %v3427_v0, -inf  ;;  %v7041_v45 = vpack.i.bf16 %v2447_v60, %v2379_v14  ;;  %v3496_v26 = vsel %vm1909_vm2, %v3471_v3, -inf }
 0x62e   : > { %3494 = vmax.xlane.f32.xlu1 %v3493_v44  ;;  %v3474_v56 = vpop.f32.mrb[34].mxu0  ;;  %v7044_v17 = vpack.i.bf16 %v2449_v46, %v2381_v4  ;;  %v7046_v18 = vpack.i.bf16 %v2448_v11, %v2380_v5 }
 0x62f   : > { %3491 = vmax.xlane.f32.xlu0 %v3490_v53  ;;  %v5237_v16 = vpop.f32.mrb[35].mxu0  ;;  %v3499_v20 = vsel %vm1909_vm2, %v3474_v56, -inf }
 0x632   : > { %3500 = vmax.xlane.f32.xlu1 %v3499_v20 }
 0x633   : > { %3497 = vmax.xlane.f32.xlu0 %v3496_v26 }
 0x643   : > { %3022 = vrot.lane.b32.xlu1 %v6635_v10, %s6032_s16 }
 0x647   : > { %3024 = vrot.lane.b32.xlu1 %v6635_v10, %s6030_s8 }
 0x649   : > { %3020 = vrot.lane.b32.xlu0 %v6635_v10, %s6031_s6 }
 0x6b2   : > { %v3480_v22 = vpop.xlane.xlu1 %3479 }
 0x6b3   : > { %v3502_v24 = vsub.f32 %v6999_v13, %v3480_v22 }
 0x6b4   : > { %v3483_v47 = vpop.xlane.xlu0 %3482 }
 0x6b5   : > { %v3510_v25 = vmul.f32 1.442695, %v3502_v24  ;;  %v3503_v48 = vsub.f32 %v7003_v38, %v3483_v47 }
 0x6b6   : > { %v3489_v2 = vpop.xlane.xlu1 %3488 }
 0x6b7   : > { %5583 = vpow2.f32 %v3510_v25  ;;  %v3512_v31 = vmul.f32 1.442695, %v3503_v48  ;;  %v3505_v19 = vsub.f32 %v3380_v62, %v3489_v2 }
 0x6b8   : > { %v3486_v52 = vpop.xlane.xlu0 %3485 }
 0x6b9   : > { %5585 = vpow2.f32 %v3512_v31  ;;  %v3504_v9 = vsub.f32 %v7005_v23, %v3486_v52  ;;  %v3516_v57 = vmul.f32 1.442695, %v3505_v19 }
 0x6bb   : > { %v3514_v12 = vmul.f32 1.442695, %v3504_v9  ;;  %v3495_v29 = vpop.xlane.xlu1 %3494 }
 0x6bc   : > { %v3492_v49 = vpop.xlane.xlu0 %3491  ;;  %v3507_v30 = vsub.f32 %v3427_v0, %v3495_v29 }
 0x6bd   : > { %5587 = vpow2.f32 %v3514_v12  ;;  %v3506_v32 = vsub.f32 %v3424_v43, %v3492_v49 }
 0x6be   : > { %5589 = vpow2.f32 %v3516_v57  ;;  %v3520_v13 = vmul.f32 1.442695, %v3507_v30 }
 0x6bf   : > { %v3518_v14 = vmul.f32 1.442695, %v3506_v32  ;;  %v3501_v34 = vpop.xlane.xlu1 %3500 }
 0x6c0   : > { %5591 = vpow2.f32 %v3520_v13  ;;  %v3498_v38 = vpop.xlane.xlu0 %3497  ;;  %v3509_v35 = vsub.f32 %v3474_v56, %v3501_v34 }
 0x6c1   : > { %v7059_v15 = vpop.eup %5583  ;;  %5593 = vpow2.f32 %v3518_v14  ;;  %v3508_v62 = vsub.f32 %v3471_v3, %v3498_v38 }
 0x6c2   : > { %v3524_v50 = vmul.f32 1.442695, %v3509_v35  ;;  %v3526_v23 = vsel %vm1909_vm2, %v7059_v15, 0.0 }
 0x6c3   : > { %v7063_v51 = vpop.eup %5585  ;;  %v3522_v58 = vmul.f32 1.442695, %v3508_v62  ;;  %3527 = vadd.xlane.f32.xlu0 %v3526_v23  ;;  %v3023_v43 = vpop.permute.xlu1 %3022 }
 0x6c4   : > { %5595 = vpow2.f32 %v3524_v50  ;;  %v3021_v59 = vpop.permute.xlu0 %3020  ;;  %v3529_v60 = vsel %vm1909_vm2, %v7063_v51, 0.0  ;;  %v3038_v46 = vshrl.u32 %v3023_v43, 16 }
 0x6c5   : > { %v3028_v0 = vpack.i.b16 %v3021_v59, %v6635_v10  ;;  %v3031_v4 = vshrl.u32 %v3021_v59, 16  ;;  %3530 = vadd.xlane.f32.xlu1 %v3529_v60  ;;  %5597 = vpow2.f32 %v3522_v58 }
 0x6c7   : > { %v7069_v3 = vpop.eup %5587  ;;  %v3032_v5 = vpack.i.b16 %v3031_v4, %v3030_v63  ;;  %v3042_v7 = vcombine.high %v3028_v0, %v6647_v21  ;;  %v3025_v8 = vpop.permute.xlu1 %3024  ;;  %v3049_v20 = vrot.slane %v3028_v0, %v6650_v27 }
 0x6c8   : > { %v7072_v44 = vpop.eup %5589  ;;  %v3036_v53 = vpack.i.b16 %v3025_v8, %v3023_v43  ;;  %v3039_v56 = vshrl.u32 %v3025_v8, 16  ;;  %v3532_v11 = vsel %vm1909_vm2, %v7069_v3, 0.0 }
 0x6c9   : > { %v3108_v16 = vcombine.high %v3032_v5, %v6647_v21  ;;  %3533 = vadd.xlane.f32.xlu0 %v3532_v11  ;;  %v3056_v25 = vrot.slane %v3042_v7, %v6650_v27  ;;  %v3115_v48 = vrot.slane %v3032_v5, %v6650_v27  ;;  %v3535_v2 = vsel %vm1909_vm2, %v7072_v44, 0.0 }
 0x6ca   : > { %v7077_v10 = vpop.eup %5591  ;;  %v3040_v26 = vpack.i.b16 %v3039_v56, %v3038_v46  ;;  %v3057_v22 = vcombine.high %v3036_v53, %v6647_v21  ;;  %v3064_v24 = vrot.slane %v3036_v53, %v6650_v27 }
 0x6cb   : > { %v7082_v47 = vpop.eup %5593  ;;  %v3122_v57 = vrot.slane %v3108_v16, %v6650_v27  ;;  %v3541_v49 = vsel %vm1909_vm2, %v7077_v10, 0.0 }
 0x6cc   : > { %v3071_v31 = vrot.slane %v3057_v22, %v6650_v27  ;;  %v3072_v19 = vcombine.low %v3049_v20, %v3064_v24  ;;  %v3073_v52 = vcombine.high %v3049_v20, %v3064_v24  ;;  %v3123_v9 = vcombine.high %v3040_v26, %v6647_v21 }
 0x6cd   : > { %v3130_v12 = vrot.slane %v3040_v26, %v6650_v27  ;;  %3536 = vadd.xlane.f32.xlu0 %v3535_v2  ;;  %v3538_v29 = vsel %vm1909_vm2, %v7082_v47, 0.0 }
 0x6ce   : > { %v7096_v30 = vpop.eup %5595  ;;  %v3080_v32 = vrot.slane %v3072_v19, %v6655_v40  ;;  %v3087_v13 = vrot.slane %v3073_v52, %v6655_v40  ;;  %v3088_v14 = vcombine.low %v3056_v25, %v3071_v31  ;;  %v3089_v34 = vcombine.high %v3056_v25, %v3071_v31  ;;  %3539 = vadd.xlane.f32.xlu1 %v3538_v29 }
 0x6cf   : > { %v3137_v21 = vrot.slane %v3123_v9, %v6650_v27  ;;  %v3138_v38 = vcombine.low %v3115_v48, %v3130_v12  ;;  %v3139_v35 = vcombine.high %v3115_v48, %v3130_v12  ;;  %v3547_v62 = vsel %vm1909_vm2, %v7096_v30, 0.0  ;;  %v7105_v59 = vpop.eup %5597 }
 0x6d0   : > { %v3096_v50 = vrot.slane %v3088_v14, %v6655_v40  ;;  %v3103_v23 = vrot.slane %v3089_v34, %v6655_v40  ;;  %v3174_v58 = vcombine.low %v3080_v32, %v3087_v13  ;;  %v4996_v43 = vcombine.high %v3080_v32, %v3087_v13 }
 0x6d1   : > { %v3146_v60 = vrot.slane %v3138_v38, %v6655_v40  ;;  %v3153_v63 = vrot.slane %v3139_v35, %v6655_v40  ;;  %v3154_v0 = vcombine.low %v3122_v57, %v3137_v21  ;;  %v3155_v4 = vcombine.high %v3122_v57, %v3137_v21  ;;  %3542 = vadd.xlane.f32.xlu0 %v3541_v49 }
 0x6d2   : > { %v3181_v5 = vrot.slane %v3174_v58, %v6650_v27  ;;  %v3189_v7 = vrot.slane %v4996_v43, %v6650_v27  ;;  %v3190_v8 = vcombine.low %v3096_v50, %v3103_v23  ;;  %v4997_v46 = vcombine.high %v3096_v50, %v3103_v23 }
 0x6d3   : > { %v3162_v53 = vrot.slane %v3154_v0, %v6655_v40  ;;  %v3169_v56 = vrot.slane %v3155_v4, %v6655_v40  ;;  %v3224_v11 = vcombine.low %v3146_v60, %v3153_v63  ;;  %v4998_v16 = vcombine.high %v3146_v60, %v3153_v63 }
 0x6d4   : > { %v3197_v20 = vrot.slane %v3190_v8, %v6650_v27  ;;  %v3205_v26 = vrot.slane %v4997_v46, %v6650_v27  ;;  %v3544_v22 = vsel %vm1909_vm2, %v7105_v59, 0.0  ;;  %v3206_v24 = vcombine.low %v3181_v5, %v3189_v7 }
 0x6d5   : > { %v3231_v25 = vrot.slane %v3224_v11, %v6650_v27  ;;  %v3239_v48 = vrot.slane %v4998_v16, %v6650_v27  ;;  %v3240_v2 = vcombine.low %v3162_v53, %v3169_v56  ;;  %v4999_v31 = vcombine.high %v3162_v53, %v3169_v56  ;;  %3545 = vadd.xlane.f32.xlu1 %v3544_v22 }
 0x6d6   : > { %3548 = vadd.xlane.f32.xlu0 %v3547_v62  ;;  %v3214_v19 = vcombine.low %v3197_v20, %v3205_v26  ;;  %v3213_v12 = vrot.slane %v3206_v24, %v6655_v40 }
 0x6d7   : > { %v3247_v52 = vrot.slane %v3240_v2, %v6650_v27  ;;  %v3255_v9 = vrot.slane %v4999_v31, %v6650_v27  ;;  %v3256_v57 = vcombine.low %v3231_v25, %v3239_v48 }
 0x6d8   : > { %v3221_v29 = vrot.slane %v3214_v19, %v6655_v40 }
 0x6d9   : > { %v3264_v49 = vcombine.low %v3247_v52, %v3255_v9  ;;  %v3263_v14 = vrot.slane %v3256_v57, %v6655_v40 }
 0x6da   : > { %v3222_v32 = vcombine.low %v3213_v12, %v3221_v29  ;;  %v3223_v13 = vcombine.high %v3213_v12, %v3221_v29 }
 0x6db   : > { %v3271_v34 = vrot.slane %v3264_v49, %v6655_v40 }
 0x6dc   : > { %v3278_v35 = vshrl.u32 %v3222_v32, 16  ;;  %v3286_v62 = vshrl.u32 %v3223_v13, 16 }
 0x6dd   : > { %v3272_v21 = vcombine.low %v3263_v14, %v3271_v34  ;;  %v3273_v38 = vcombine.high %v3263_v14, %v3271_v34 }
 0x6df   : > { %v3276_v50 = vpack.i.b16 %v3272_v21, %v3222_v32  ;;  %v3279_v23 = vshrl.u32 %v3272_v21, 16  ;;  %v3284_v58 = vpack.i.b16 %v3273_v38, %v3223_v13  ;;  %v3287_v43 = vshrl.u32 %v3273_v38, 16  ;;  %v5504_v21 = vld [vmem:[%s6537_s18 + $0x8] sm:$0xff]   ;;  %v5505_v38 = vld [vmem:[%s6537_s18 + $0x10] sm:$0xff]  }
 0x6e1   : > { %5239 = vmatpush3.bf16.msra.mxu1 %v3276_v50  ;;  %v3280_v60 = vpack.i.b16 %v3279_v23, %v3278_v35  ;;  %v3288_v63 = vpack.i.b16 %v3287_v43, %v3286_v62  ;;  %v5506_v35 = vld [vmem:[%s6537_s18 + $0x18] sm:$0xff]  }
 0x6e2   : > { %5250 = vmatprep.subr.bf16.mxu1 %v6033_v54 }
 0x6e3   : > { %5245 = vmatpush3.bf16.msra.mxu0 %v3280_v60 }
 0x6e4   : > { %5256 = vmatprep.subr.bf16.mxu0 %v6033_v54 }
 0x6e6   : > { %5442 = vrot.lane.b32.xlu1 %v7041_v45, %s6030_s8 }
 0x6ea   : > { %5452 = vrot.lane.b32.xlu1 %v7044_v17, %s6031_s6 }
 0x6ec   : > { %5447 = vrot.lane.b32.xlu0 %v7046_v18, %s6032_s16 }
 0x750   : > { %v3528_v0 = vpop.xlane.xlu0 %3527 }
 0x751   : > { %5599 = vrcp.f32 %v3528_v0 }
 0x752   : > { %v3531_v4 = vpop.xlane.xlu1 %3530 }
 0x753   : > { %5601 = vrcp.f32 %v3531_v4 }
 0x756   : > { %v3534_v5 = vpop.xlane.xlu0 %3533 }
 0x757   : > { %5603 = vrcp.f32 %v3534_v5 }
 0x75a   : > { %v3537_v7 = vpop.xlane.xlu0 %3536 }
 0x75b   : > { %v5600_v8 = vpop.eup %5599  ;;  %5605 = vrcp.f32 %v3537_v7  ;;  %v3540_v46 = vpop.xlane.xlu1 %3539 }
 0x75c   : > { %5607 = vrcp.f32 %v3540_v46  ;;  %v3558_v45 = vmul.f32 %v5600_v8, %v7059_v15 }
 0x75d   : > { %v5602_v53 = vpop.eup %5601 }
 0x75e   : > { %v3559_v56 = vmul.f32 %v5602_v53, %v7063_v51  ;;  %v3543_v17 = vpop.xlane.xlu0 %3542 }
 0x75f   : > { %5609 = vrcp.f32 %v3543_v17 }
 0x760   : > { %v3566_v11 = vpack.c.bf16 %v3559_v56, %v3558_v45 }
 0x761   : > { %v5604_v16 = vpop.eup %5603 }
 0x762   : > { %v3546_v18 = vpop.xlane.xlu1 %3545  ;;  %5241 = vmatmul.mubr.msk.bf16.vlgmr.msra.gmra.mrb[24].mxu1 %vm1909_vm2, %v3566_v11  ;;  %v3560_v22 = vmul.f32 %v5604_v16, %v7069_v3 }
 0x763   : > { %5611 = vrcp.f32 %v3546_v18  ;;  %v3549_v20 = vpop.xlane.xlu0 %3548  ;;  %5251 = vmatpush3.bf16.msra.mxu1 %v3284_v58  ;;  %5252 = vmatprep.mubr.msk.bf16.mxu1 %vm6034_vm0, %v6033_v54 }
 0x764   : > { %5613 = vrcp.f32 %v3549_v20 }
 0x765   : > { %v5606_v26 = vpop.eup %5605 }
 0x766   : > { %v3561_v15 = vmul.f32 %v5606_v26, %v7072_v44  ;;  %v5443_v51 = vpop.permute.xlu1 %5442  ;;  %v5608_v24 = vpop.eup %5607 }
 0x767   : > { %v5445_v25 = vunpack.i.h.bf16 %v5443_v51  ;;  %v5444_v48 = vunpack.i.l.bf16 %v5443_v51  ;;  %v5448_v2 = vpop.permute.xlu0 %5447  ;;  %v3562_v44 = vmul.f32 %v5608_v24, %v7082_v47 }
 0x768   : > { %v5450_v31 = vunpack.i.h.bf16 %v5448_v2  ;;  %v5449_v19 = vunpack.i.l.bf16 %v5448_v2  ;;  %v3567_v52 = vpack.c.bf16 %v3561_v15, %v3560_v22 }
 0x769   : > { %v5610_v9 = vpop.eup %5609  ;;  %v2475_v57 = vsel %vm1720_vm1, %v2446_v61, %v5445_v25  ;;  %v2474_v3 = vsel %vm1720_vm1, %v2378_v33, %v5444_v48 }
 0x76a   : > { %v3563_v12 = vmul.f32 %v5610_v9, %v7077_v10  ;;  %v2477_v29 = vsel %vm2476_vm3, %v2474_v3, %v5449_v19  ;;  %v2478_v49 = vsel %vm2476_vm3, %v2475_v57, %v5450_v31  ;;  %v5453_v32 = vpop.permute.xlu1 %5452  ;;  %5247 = vmatmul.mubr.msk.bf16.vlgmr.msra.gmra.mrb[36].mxu0 %vm1909_vm2, %v3567_v52 }
 0x76b   : > { %v5455_v41 = vunpack.i.h.bf16 %v5453_v32  ;;  %v5454_v42 = vunpack.i.l.bf16 %v5453_v32  ;;  %5257 = vmatpush3.bf16.msra.mxu0 %v3288_v63  ;;  %5258 = vmatprep.mubr.msk.bf16.mxu0 %vm6034_vm0, %v6033_v54  ;;  %v5503_v54 = vld [vmem:[%s6537_s18] sm:$0xff]  }
 0x76c   : > { %v3568_v1 = vpack.c.bf16 %v3563_v12, %v3562_v44  ;;  %5262 = vmatprep.subr.bf16.mxu1 %v5503_v54 }
 0x76d   : > { %v5612_v28 = vpop.eup %5611  ;;  %v2480_v33 = vsel %vm2479_vm4, %v2477_v29, %v5454_v42  ;;  %v2481_v61 = vsel %vm2479_vm4, %v2478_v49, %v5455_v41 }
 0x76e   : > { %v5614_v10 = vpop.eup %5613  ;;  %5253 = vmatmul.mubr.msk.bf16.vlgmr.msra.gmra.mrb[28].mxu1 %vm1909_vm2, %v3568_v1  ;;  %v4048_v47 = vpack.c.bf16 %v2481_v61, %v2480_v33  ;;  %v3564_v13 = vmul.f32 %v5612_v28, %v7105_v59  ;;  %v5508_v59 = vld [vmem:[%s6537_s18 + $0x28] sm:$0xff]  }
 0x76f   : > { %v3565_v14 = vmul.f32 %v5614_v10, %v7096_v30  ;;  %5263 = vmatpush3.bf16.msra.mxu1 %v5503_v54  ;;  %v5507_v30 = vld [vmem:[%s6537_s18 + $0x20] sm:$0xff]  }
 0x770   : > { %5278 = vmatprep.mubr.bf16.mxu1 %v4048_v47  ;;  %5264 = vmatprep.subr.bf16.mxu1 %v5504_v21 }
 0x771   : > { %v3569_v34 = vpack.c.bf16 %v3565_v14, %v3564_v13 }
 0x773   : > { %5259 = vmatmul.mubr.msk.bf16.vlgmr.msra.gmra.mrb[40].mxu0 %vm1909_vm2, %v3569_v34  ;;  %5265 = vmatpush3.bf16.msra.mxu1 %v5504_v21 }
 0x774   : > { %4374 = vmatprep.mubr.bf16.mxu0 %v6029_v6  ;;  %5266 = vmatprep.subr.bf16.mxu1 %v5505_v38 }
 0x777   : > { %5267 = vmatpush3.bf16.msra.mxu1 %v5505_v38 }
 0x778   : > { %5268 = vmatprep.subr.bf16.mxu1 %v5506_v35 }
 0x77b   : > { %5269 = vmatpush3.bf16.msra.mxu1 %v5506_v35 }
 0x77c   : > { %5270 = vmatprep.subr.bf16.mxu1 %v5507_v30 }
 0x77f   : > { %5271 = vmatpush3.bf16.msra.mxu1 %v5507_v30 }
 0x780   : > { %5272 = vmatprep.subr.bf16.mxu1 %v5508_v59 }
 0x783   : > { %5273 = vmatpush3.bf16.msra.mxu1 %v5508_v59 }
 0x835   : > { %v3607_v62 = vpop.f32.mrb[24].mxu1 }
 0x836   : > { %v5242_v50 = vpop.f32.mrb[25].mxu1 }
 0x837   : > { %v3610_v23 = vpop.f32.mrb[26].mxu1 }
 0x838   : > { %v5243_v58 = vpop.f32.mrb[27].mxu1 }
 0x83d   : > { %v3651_v43 = vpop.f32.mrb[36].mxu0 }
 0x83e   : > { %v5248_v60 = vpop.f32.mrb[37].mxu0 }
 0x83f   : > { %v3654_v63 = vpop.f32.mrb[38].mxu0 }
 0x840   : > { %v5249_v0 = vpop.f32.mrb[39].mxu0 }
 0x841   : > { %v3695_v4 = vpop.f32.mrb[28].mxu1  ;;  %v5509_v0 = vld [vmem:[%s6537_s18 + $0x30] sm:$0xff]  }
 0x842   : > { %v3746_v5 = vcombine.low %v3607_v62, %v3695_v4  ;;  %v3747_v7 = vcombine.high %v3607_v62, %v3695_v4  ;;  %v5254_v8 = vpop.f32.mrb[29].mxu1  ;;  %5274 = vmatprep.subr.bf16.mxu1 %v5509_v0 }
 0x843   : > { %v3698_v46 = vpop.f32.mrb[30].mxu1  ;;  %5275 = vmatpush3.bf16.msra.mxu1 %v5509_v0  ;;  %v5633_v0 = vld [vmem:[%s6563_s22 + $0x10] sm:$0xff] }
 0x844   : > { %v3814_v53 = vcombine.low %v3610_v23, %v3698_v46  ;;  %v3815_v45 = vcombine.high %v3610_v23, %v3698_v46  ;;  %v5255_v56 = vpop.f32.mrb[31].mxu1  ;;  %v3754_v20 = vrot.slane %v3746_v5, %v6650_v27  ;;  %v3761_v26 = vrot.slane %v3747_v7, %v6650_v27 }
 0x846   : > { %v3739_v17 = vpop.f32.mrb[40].mxu0  ;;  %v3822_v9 = vrot.slane %v3814_v53, %v6650_v27  ;;  %v3829_v57 = vrot.slane %v3815_v45, %v6650_v27 }
 0x847   : > { %v3762_v11 = vcombine.low %v3651_v43, %v3739_v17  ;;  %v3763_v18 = vcombine.high %v3651_v43, %v3739_v17  ;;  %v5260_v16 = vpop.f32.mrb[41].mxu0 }
 0x848   : > { %v3742_v22 = vpop.f32.mrb[42].mxu0 }
 0x849   : > { %v3770_v15 = vrot.slane %v3762_v11, %v6650_v27  ;;  %v3777_v51 = vrot.slane %v3763_v18, %v6650_v27  ;;  %v3830_v24 = vcombine.low %v3654_v63, %v3742_v22  ;;  %v3831_v25 = vcombine.high %v3654_v63, %v3742_v22  ;;  %v5261_v48 = vpop.f32.mrb[43].mxu0 }
 0x84b   : > { %v3778_v2 = vcombine.low %v3754_v20, %v3770_v15  ;;  %v3779_v31 = vcombine.high %v3754_v20, %v3770_v15  ;;  %v3794_v19 = vcombine.low %v3761_v26, %v3777_v51  ;;  %v3795_v52 = vcombine.high %v3761_v26, %v3777_v51  ;;  %v5510_v51 = vld [vmem:[%s6537_s18 + $0x38] sm:$0xff]   ;;  %s4671_s18 = sshll.u32 %s6563_s22, 4  ;;  %s7312_s18 = int_to_ptr.vmem [resolvable:$true] %s4671_s18 }
 0x84c   : > { %v3838_v3 = vrot.slane %v3830_v24, %v6650_v27  ;;  %v3845_v44 = vrot.slane %v3831_v25, %v6650_v27  ;;  %5276 = vmatprep.subr.bf16.mxu1 %v5510_v51  ;;  %s5875_s10 = scalar_lea.vmem %s7312_s18, 512  ;;  %p5882_p13 = scmp.lt.s32.totalorder %s7312_s18, %s5880_s21 }
 0x84d   : > { %v3786_v12 = vrot.slane %v3778_v2, %v6655_v40  ;;  %v3793_v29 = vrot.slane %v3779_v31, %v6655_v40  ;;  %v3802_v49 = vrot.slane %v3794_v19, %v6655_v40  ;;  %v3809_v32 = vrot.slane %v3795_v52, %v6655_v40  ;;  %5277 = vmatpush3.bf16.msra.mxu1 %v5510_v51  ;;  %p5876_p5 = scmp.ne.s32.totalorder %s7312_s18, %s5875_s10 }
 0x84e   : > { %v3846_v41 = vcombine.low %v3822_v9, %v3838_v3  ;;  %v3847_v42 = vcombine.high %v3822_v9, %v3838_v3  ;;  %v3862_v1 = vcombine.low %v3829_v57, %v3845_v44  ;;  %v3863_v28 = vcombine.high %v3829_v57, %v3845_v44 }
 0x84f   : > { %v3882_v33 = vcombine.low %v3786_v12, %v3793_v29  ;;  %v5008_v61 = vcombine.high %v3786_v12, %v3793_v29  ;;  %v3898_v10 = vcombine.low %v3802_v49, %v3809_v32  ;;  %v5009_v47 = vcombine.high %v3802_v49, %v3809_v32  ;;  %p5877_p9 = pnand %p5876_p5, %p7470_p6 }
 0x850   : > { %v3854_v13 = vrot.slane %v3846_v41, %v6655_v40  ;;  %v3861_v14 = vrot.slane %v3847_v42, %v6655_v40  ;;  %v3870_v34 = vrot.slane %v3862_v1, %v6655_v40  ;;  %v3877_v54 = vrot.slane %v3863_v28, %v6655_v40 }
 0x851   : > { %v3889_v21 = vrot.slane %v3882_v33, %v6650_v27  ;;  %v3897_v38 = vrot.slane %v5008_v61, %v6650_v27  ;;  %v3905_v35 = vrot.slane %v3898_v10, %v6650_v27  ;;  %v3913_v30 = vrot.slane %v5009_v47, %v6650_v27  ;;  %p5878_p8 = pneg %p5877_p9 }
 0x852   : > { %v3950_v59 = vcombine.low %v3854_v13, %v3861_v14  ;;  %v5010_v62 = vcombine.high %v3854_v13, %v3861_v14  ;;  %v3966_v50 = vcombine.low %v3870_v34, %v3877_v54  ;;  %v5011_v23 = vcombine.high %v3870_v34, %v3877_v54  ;;  %v7212_v34 = vld [vmem:[%s6555_s19] sm:$0xff] }
 0x853   : > { %v3915_v58 = vcombine.high %v3889_v21, %v3897_v38  ;;  %v3931_v43 = vcombine.high %v3905_v35, %v3913_v30  ;;  %v3914_v60 = vcombine.low %v3889_v21, %v3897_v38  ;;  %v3930_v63 = vcombine.low %v3905_v35, %v3913_v30 }
 0x854   : > { %v3957_v4 = vrot.slane %v3950_v59, %v6650_v27  ;;  %v3965_v5 = vrot.slane %v5010_v62, %v6650_v27  ;;  %v3973_v7 = vrot.slane %v3966_v50, %v6650_v27  ;;  %v3981_v8 = vrot.slane %v5011_v23, %v6650_v27  ;;  %v5631_v23 = vld [vmem:[%s6563_s22] sm:$0xff] }
 0x855   : > { %v3929_v46 = vrot.slane %v3915_v58, %v6655_v40  ;;  %v3945_v53 = vrot.slane %v3931_v43, %v6655_v40  ;;  %v3922_v45 = vrot.slane %v3914_v60, %v6655_v40  ;;  %v3938_v56 = vrot.slane %v3930_v63, %v6655_v40  ;;  %v5632_v43 = vld [vmem:[%s6563_s22 + $0x8] sm:$0xff] }
 0x856   : > { %v3983_v17 = vcombine.high %v3957_v4, %v3965_v5  ;;  %v3999_v11 = vcombine.high %v3973_v7, %v3981_v8  ;;  %v3982_v18 = vcombine.low %v3957_v4, %v3965_v5  ;;  %v3998_v16 = vcombine.low %v3973_v7, %v3981_v8  ;;  %v5634_v5 = vld [vmem:[%s6563_s22 + $0x18] sm:$0xff]  ;;  %v5511_v8 = vld [vmem:[%s6539_s28] ss:$8 sps:$4 sm:$0xff]  }
 0x857   : > { %v3948_v20 = vcombine.low %v3929_v46, %v3945_v53  ;;  %v3946_v26 = vcombine.low %v3922_v45, %v3938_v56  ;;  %v3947_v22 = vcombine.high %v3922_v45, %v3938_v56  ;;  %v3949_v15 = vcombine.high %v3929_v46, %v3945_v53  ;;  %v5513_v46 = vld [vmem:[%s6539_s28 + $0x4] ss:$8 sps:$4 sm:$0xff]   ;;  %v5516_v53 = vld [vmem:[%s6539_s28 + $0x14] ss:$8 sps:$4 sm:$0xff]   ;;  %v5514_v45 = vld [vmem:[%s6539_s28 + $0x10] ss:$8 sps:$4 sm:$0xff]  }
 0x858   : > { %v3997_v27 = vrot.slane %v3983_v17, %v6655_v40  ;;  %v4013_v24 = vrot.slane %v3999_v11, %v6655_v40  ;;  %v3990_v25 = vrot.slane %v3982_v18, %v6655_v40  ;;  %v4006_v48 = vrot.slane %v3998_v16, %v6655_v40  ;;  %4342 = vmatprep.subr.bf16.mxu0 %v5513_v46 }
 0x859   : > { %v4069_v54 = vrot.slane %v7212_v34, %v6607_v37  ;;  %4343 = vmatpush1.bf16.msra.mxu0 %v5511_v8  ;;  %v4227_v46 = vrot.slane %v7212_v34, %v667_v55 }
 0x85a   : > { %v4016_v2 = vcombine.low %v3997_v27, %v4013_v24  ;;  %v4015_v31 = vcombine.high %v3990_v25, %v4006_v48  ;;  %v4014_v19 = vcombine.low %v3990_v25, %v4006_v48  ;;  %v4017_v52 = vcombine.high %v3997_v27, %v4013_v24  ;;  %4344 = vmatprep.subr.bf16.mxu0 %v5516_v53 }
 0x85c   : > { %v5461_v9 = vpack.i.bf16 %v4016_v2, %v3948_v20  ;;  %v5456_v57 = vpack.i.bf16 %v4015_v31, %v3947_v22  ;;  %v5466_v3 = vpack.i.bf16 %v4017_v52, %v3949_v15  ;;  %v5517_v52 = vld [vmem:[%s6539_s28 + $0x20] ss:$8 sps:$4 sm:$0xff]  }
 0x85d   : > { %4345 = vmatpush1.bf16.msra.mxu0 %v5514_v45 }
 0x85e   : > { %5462 = vrot.lane.b32.xlu0 %v5461_v9, %s6032_s16  ;;  %5457 = vrot.lane.b32.xlu1 %v5456_v57, %s6030_s8  ;;  %v5522_v9 = vld [vmem:[%s6539_s28 + $0x34] ss:$8 sps:$4 sm:$0xff]   ;;  %v5520_v57 = vld [vmem:[%s6539_s28 + $0x30] ss:$8 sps:$4 sm:$0xff]  }
 0x862   : > { %5467 = vrot.lane.b32.xlu1 %v5466_v3, %s6031_s6  ;;  %v5525_v3 = vld [vmem:[%s6539_s28 + $0x44] ss:$8 sps:$4 sm:$0xff]  }
 0x8d0   : > { %v5463_v44 = vpop.permute.xlu0 %5462  ;;  %v5458_v12 = vpop.permute.xlu1 %5457 }
 0x8d1   : > { %v5460_v29 = vunpack.i.h.bf16 %v5458_v12  ;;  %v5459_v40 = vunpack.i.l.bf16 %v5458_v12  ;;  %v5465_v49 = vunpack.i.h.bf16 %v5463_v44  ;;  %v5464_v32 = vunpack.i.l.bf16 %v5463_v44  ;;  %v5523_v44 = vld [vmem:[%s6539_s28 + $0x40] ss:$8 sps:$4 sm:$0xff]   ;;  %v5528_v12 = vld [vmem:[%s6539_s28 + $0x54] ss:$8 sps:$4 sm:$0xff]  }
 0x8d3   : > { %v4042_v41 = vsel %vm1720_vm1, %v3946_v26, %v5459_v40  ;;  %v4043_v42 = vsel %vm1720_vm1, %v4014_v19, %v5460_v29  ;;  %v5519_v19 = vld [vmem:[%s6539_s28 + $0x24] ss:$8 sps:$4 sm:$0xff]   ;;  %v5526_v29 = vld [vmem:[%s6539_s28 + $0x50] ss:$8 sps:$4 sm:$0xff]   ;;  %v5529_v40 = vld [vmem:[%s6539_s28 + $0x60] ss:$8 sps:$4 sm:$0xff]  }
 0x8d4   : > { %v5468_v1 = vpop.permute.xlu1 %5467  ;;  %v4044_v61 = vsel %vm2476_vm3, %v4042_v41, %v5464_v32  ;;  %v4045_v10 = vsel %vm2476_vm3, %v4043_v42, %v5465_v49  ;;  %4346 = vmatprep.subr.bf16.mxu0 %v5519_v19  ;;  %v5531_v49 = vld [vmem:[%s6539_s28 + $0x64] ss:$8 sps:$4 sm:$0xff]   ;;  %v5534_v32 = vld [vmem:[%s6539_s28 + $0x74] ss:$8 sps:$4 sm:$0xff]   ;;  %v5532_v41 = vld [vmem:[%s6539_s28 + $0x70] ss:$8 sps:$4 sm:$0xff]  }
 0x8d5   : > { %v5470_v28 = vunpack.i.h.bf16 %v5468_v1  ;;  %v5469_v33 = vunpack.i.l.bf16 %v5468_v1  ;;  %4347 = vmatpush1.bf16.msra.mxu0 %v5517_v52  ;;  %v5535_v42 = vld [vmem:[%s6545_s3 + $0x40] sm:$0xff]   ;;  %v5550_v19 = vld [vmem:[%s6545_s3 + $0x38] sm:$0xff]  }
 0x8d6   : > { %4348 = vmatprep.subr.bf16.mxu0 %v5522_v9  ;;  %v5536_v1 = vld [vmem:[%s6545_s3] sm:$0xff]   ;;  %5118 = vmatprep.subr.bf16.mxu1 %v5535_v42 }
 0x8d7   : > { %v4046_v47 = vsel %vm2479_vm4, %v4044_v61, %v5469_v33  ;;  %v4047_v13 = vsel %vm2479_vm4, %v4045_v10, %v5470_v28  ;;  %v5537_v28 = vld [vmem:[%s6545_s3 + $0x48] sm:$0xff]   ;;  %v5539_v61 = vld [vmem:[%s6545_s3 + $0x50] sm:$0xff]  }
 0x8d8   : > { %v4049_v14 = vpack.c.bf16 %v4047_v13, %v4046_v47  ;;  %v5538_v33 = vld [vmem:[%s6545_s3 + $0x8] sm:$0xff]   ;;  %v5540_v10 = vld [vmem:[%s6545_s3 + $0x10] sm:$0xff]   ;;  %v5541_v47 = vld [vmem:[%s6545_s3 + $0x58] sm:$0xff]  }
 0x8d9   : > { %4349 = vmatpush1.bf16.msra.mxu0 %v5520_v57  ;;  %v5542_v13 = vld [vmem:[%s6545_s3 + $0x18] sm:$0xff]   ;;  %v4250_v52 = vld [vmem:[%s6553_s17] sm:$0x3]  ;;  %s5881_s17 = scalar_lea.vmem %s5880_s21, 1024 }
 0x8da   : > { %5279 = vmatmul.mubr.bf16.vlgmr.msra.gmra.mrb[32].mxu1 %v4049_v14  ;;  %4350 = vmatprep.subr.bf16.mxu0 %v5525_v3  ;;  %v5543_v14 = vld [vmem:[%s6545_s3 + $0x60] sm:$0xff]   ;;  %v4259_v9 = vrot.slane %v4250_v52, %v6611_v39  ;;  %p5883_p0 = scmp.lt.s32.totalorder %s5881_s17, %s5875_s10 }
 0x8db   : > { %5119 = vmatpush3.bf16.msra.mxu1 %v5536_v1 }
 0x8dc   : > { %5120 = vmatprep.subr.bf16.mxu1 %v5537_v28  ;;  %p5884_p4 = por %p5883_p0, %p5882_p13 }
 0x8dd   : > { %4351 = vmatpush1.bf16.msra.mxu0 %v5523_v44 }
 0x8de   : > { %4352 = vmatprep.subr.bf16.mxu0 %v5528_v12  ;;  %p5885_p2 = pnand %p5884_p4, %p5878_p8 }
 0x8df   : > { %5121 = vmatpush3.bf16.msra.mxu1 %v5538_v33 }
 0x8e0   : > { %5122 = vmatprep.subr.bf16.mxu1 %v5539_v61 }
 0x8e1   : > { %4353 = vmatpush1.bf16.msra.mxu0 %v5526_v29 }
 0x8e2   : > { %4354 = vmatprep.subr.bf16.mxu0 %v5531_v49 }
 0x8e3   : > { %5123 = vmatpush3.bf16.msra.mxu1 %v5540_v10 }
 0x8e4   : > { %5124 = vmatprep.subr.bf16.mxu1 %v5541_v47 }
 0x8e5   : > { %4355 = vmatpush1.bf16.msra.mxu0 %v5529_v40 }
 0x8e6   : > { %4356 = vmatprep.subr.bf16.mxu0 %v5534_v32 }
 0x8e7   : > { %5125 = vmatpush3.bf16.msra.mxu1 %v5542_v13 }
 0x8e8   : > { %5126 = vmatprep.subr.bf16.mxu1 %v5543_v14 }
 0x8e9   : > { %4357 = vmatpush1.bf16.msra.mxu0 %v5532_v41 }
 0x9ad   : > { %v5280_v21 = vpop.f32.mrb[32].mxu1 }
 0x9ae   : > { %v4152_v38 = vpop.f32.mrb[33].mxu1  ;;  %v4161_v62 = vadd.f32 %v5280_v21, %v4069_v54  ;;  %v5545_v21 = vld [vmem:[%s6545_s3 + $0x68] sm:$0xff]  }
 0x9af   : > { %v4153_v35 = vadd.f32 %v4152_v38, %v4069_v54  ;;  %v5281_v30 = vpop.f32.mrb[34].mxu1 }
 0x9b0   : > { %v4155_v59 = vpop.f32.mrb[35].mxu1  ;;  %v4164_v63 = vadd.f32 %v5281_v30, %v4069_v54  ;;  %v4169_v4 = vadd.f32 %v5633_v0, %v4161_v62 }
 0x9b1   : > { %v4156_v50 = vadd.f32 %v4155_v59, %v4069_v54  ;;  %v4167_v58 = vadd.f32 %v5631_v23, %v4153_v35  ;;  %v5544_v54 = vld [vmem:[%s6545_s3 + $0x20] sm:$0xff]  }
 0x9b2   : > { %v4170_v7 = vadd.f32 %v5634_v5, %v4164_v63  ;;  %5127 = vmatpush3.bf16.msra.mxu1 %v5544_v54 }
 0x9b3   : > { %4171 = vadd.xlane.f32.xlu0 %v4167_v58  ;;  %v4168_v60 = vadd.f32 %v5632_v43, %v4156_v50  ;;  %5128 = vmatprep.subr.bf16.mxu1 %v5545_v21 }
 0x9b5   : > { %4173 = vadd.xlane.f32.xlu1 %v4168_v60 }
 0x9b7   : > { %4175 = vadd.xlane.f32.xlu0 %v4169_v4 }
 0x9bb   : > { %4177 = vadd.xlane.f32.xlu0 %v4170_v7 }
 0xa40   : > { %v4172_v56 = vpop.xlane.xlu0 %4171 }
 0xa41   : > { %v4180_v17 = vmul.f32 0.0078125, %v4172_v56 }
 0xa42   : > { %v4174_v11 = vpop.xlane.xlu1 %4173 }
 0xa43   : > { %v7224_v18 = vsub.f32 %v4167_v58, %v4180_v17  ;;  %v4181_v16 = vmul.f32 0.0078125, %v4174_v11 }
 0xa44   : > { %v4176_v20 = vpop.xlane.xlu0 %4175 }
 0xa45   : > { %v7226_v26 = vsub.f32 %v4168_v60, %v4181_v16  ;;  %v4182_v22 = vmul.f32 0.0078125, %v4176_v20  ;;  %v4188_v15 = vmul.f32 %v7224_v18, %v7224_v18 }
 0xa47   : > { %v7230_v51 = vsub.f32 %v4169_v4, %v4182_v22  ;;  %4192 = vadd.xlane.f32.xlu1 %v4188_v15  ;;  %v4189_v27 = vmul.f32 %v7226_v26, %v7226_v26  ;;  %v4219_v4 = vrot.slane %v7212_v34, %v6611_v39 }
 0xa48   : > { %v4178_v24 = vpop.xlane.xlu0 %4177 }
 0xa49   : > { %v4183_v25 = vmul.f32 0.0078125, %v4178_v24  ;;  %4194 = vadd.xlane.f32.xlu0 %v4189_v27  ;;  %v4190_v48 = vmul.f32 %v7230_v51, %v7230_v51 }
 0xa4b   : > { %v7236_v2 = vsub.f32 %v4170_v7, %v4183_v25  ;;  %4196 = vadd.xlane.f32.xlu1 %v4190_v48  ;;  %v5546_v25 = vld [vmem:[%s6545_s3 + $0x28] sm:$0xff]   ;;  %v5547_v48 = vld [vmem:[%s6545_s3 + $0x70] sm:$0xff]  }
 0xa4c   : > { %5129 = vmatpush3.bf16.msra.mxu1 %v5546_v25 }
 0xa4d   : > { %v4191_v31 = vmul.f32 %v7236_v2, %v7236_v2  ;;  %5130 = vmatprep.subr.bf16.mxu1 %v5547_v48 }
 0xa4f   : > { %4198 = vadd.xlane.f32.xlu0 %v4191_v31  ;;  %v5548_v31 = vld [vmem:[%s6545_s3 + $0x30] sm:$0xff]  }
 0xa50   : > { %5131 = vmatpush3.bf16.msra.mxu1 %v5548_v31 }
 0xad4   : > { %v4193_v38 = vpop.xlane.xlu1 %4192 }
 0xad5   : > { %v4200_v35 = vmul.f32 0.0078125, %v4193_v38 }
 0xad6   : > { %v4195_v30 = vpop.xlane.xlu0 %4194 }
 0xad7   : > { %v4204_v59 = vadd.f32 1e-05, %v4200_v35  ;;  %v4201_v62 = vmul.f32 0.0078125, %v4195_v30 }
 0xad8   : > { %v4197_v50 = vpop.xlane.xlu1 %4196 }
 0xad9   : > { %5615 = vrsqrt.f32 %v4204_v59  ;;  %v4205_v23 = vadd.f32 1e-05, %v4201_v62  ;;  %v4202_v58 = vmul.f32 0.0078125, %v4197_v50 }
 0xadb   : > { %5617 = vrsqrt.f32 %v4205_v23  ;;  %v4206_v43 = vadd.f32 1e-05, %v4202_v58  ;;  %v4441_v23 = vsub.s32 3, %v6604_v36 }
 0xadc   : > { %v4199_v60 = vpop.xlane.xlu0 %4198 }
 0xadd   : > { %5619 = vrsqrt.f32 %v4206_v43  ;;  %v4203_v63 = vmul.f32 0.0078125, %v4199_v60  ;;  %v4442_v43 = vrot.slane %v7212_v34, %v4441_v23 }
 0xadf   : > { %v4207_v0 = vadd.f32 1e-05, %v4203_v63 }
 0xae1   : > { %5621 = vrsqrt.f32 %v4207_v0 }
 0xae3   : > { %v5616_v5 = vpop.eup %5615 }
 0xae4   : > { %v4212_v7 = vmul.f32 %v5616_v5, %v7224_v18 }
 0xae5   : > { %v5618_v8 = vpop.eup %5617 }
 0xae6   : > { %v4213_v53 = vmul.f32 %v5618_v8, %v7226_v26  ;;  %v4220_v45 = vmul.f32 %v4219_v4, %v4212_v7 }
 0xae7   : > { %v5620_v56 = vpop.eup %5619 }
 0xae8   : > { %v4221_v17 = vmul.f32 %v4219_v4, %v4213_v53  ;;  %v7270_v11 = vadd.f32 %v4227_v46, %v4220_v45  ;;  %v4214_v20 = vmul.f32 %v5620_v56, %v7230_v51 }
 0xaea   : > { %v7272_v16 = vadd.f32 %v4227_v46, %v4221_v17  ;;  %v4222_v26 = vmul.f32 %v4219_v4, %v4214_v20 }
 0xaeb   : > { %v5622_v18 = vpop.eup %5621 }
 0xaec   : > { %v4232_v22 = vpack.c.bf16 %v7272_v16, %v7270_v11  ;;  %v4215_v55 = vmul.f32 %v5622_v18, %v7236_v2  ;;  %v7281_v24 = vadd.f32 %v4227_v46, %v4222_v26  ;;  %v5549_v2 = vld [vmem:[%s6545_s3 + $0x78] sm:$0xff]   ;;  %s7310_s3 = scalar_lea.hbm %s7469_s24, %s5065_s1 }
 0xaed   : > { %5132 = vmatprep.subr.bf16.mxu1 %v5549_v2 }
 0xaee   : > { %4375 = vmatmul.mubr.bf16.vlgmr.msra.gmra.mrb[44].mxu0 %v4232_v22  ;;  %v4223_v15 = vmul.f32 %v4219_v4, %v4215_v55  ;;  %5133 = vmatpush3.bf16.msra.mxu1 %v5550_v19 }
 0xaef   : > { %4384 = vmatprep.mubr.bf16.mxu0 %v6029_v6  ;;  %v4255_v6 = vrot.slane %v4250_v52, %v6607_v37 }
 0xaf0   : > { %v7279_v27 = vadd.f32 %v4227_v46, %v4223_v15 }
 0xaf2   : > { %v4233_v51 = vpack.c.bf16 %v7279_v27, %v7281_v24 }
 0xaf6   : > { %4385 = vmatmul.mubr.bf16.gmra.mrb[48].mxu0 %v4233_v51 }
 0xbc1   : > { %v4376_v57 = vpop.f32.mrb[44].mxu0 }
 0xbc2   : > { %v4377_v3 = vadd.f32 %v4376_v57, %v4255_v6  ;;  %v4378_v44 = vpop.f32.mrb[45].mxu0 }
 0xbc3   : > { %v4379_v12 = vadd.f32 %v4378_v44, %v4259_v9  ;;  %v4380_v29 = vpop.f32.mrb[46].mxu0 }
 0xbc4   : > { %v4381_v40 = vadd.f32 %v4380_v29, %v4255_v6  ;;  %v4382_v49 = vpop.f32.mrb[47].mxu0  ;;  %v4395_v41 = vmax.f32 %v4377_v3, 0.0 }
 0xbc5   : > { %v4383_v32 = vadd.f32 %v4382_v49, %v4259_v9  ;;  %v4396_v1 = vmax.f32 %v4379_v12, 0.0 }
 0xbc6   : > { %v4397_v42 = vmax.f32 %v4381_v40, 0.0 }
 0xbc7   : > { %v4398_v28 = vmax.f32 %v4383_v32, 0.0 }
 0xbc8   : > { %v4403_v33 = vpack.c.bf16 %v4397_v42, %v4395_v41 }
 0xbc9   : > { %v4404_v61 = vpack.c.bf16 %v4398_v28, %v4396_v1  ;;  %v4386_v10 = vpop.f32.mrb[48].mxu0 }
 0xbca   : > { %v4387_v47 = vadd.f32 %v4386_v10, %v4255_v6  ;;  %v4388_v13 = vpop.f32.mrb[49].mxu0 }
 0xbcb   : > { %v4389_v37 = vadd.f32 %v4388_v13, %v4259_v9  ;;  %v4390_v14 = vpop.f32.mrb[50].mxu0  ;;  %4571 = vmatprep.mubr.bf16.mxu1 %v4404_v61  ;;  %v4646_v13 = vsub.s32 5, %v6604_v36 }
 0xbcc   : > { %v4391_v39 = vadd.f32 %v4390_v14, %v4255_v6  ;;  %v4392_v54 = vpop.f32.mrb[51].mxu0  ;;  %4572 = vmatmul.mubr.bf16.vlgmr.msra.gmra.mrb[36].mxu1 %v4403_v33  ;;  %v4399_v38 = vmax.f32 %v4387_v47, 0.0  ;;  %v4638_v33 = vsub.s32 4, %v6604_v36 }
 0xbcd   : > { %v4393_v21 = vadd.f32 %v4392_v54, %v4259_v9  ;;  %v4400_v30 = vmax.f32 %v4389_v37, 0.0  ;;  %v4647_v54 = vrot.slane %v7212_v34, %v4646_v13 }
 0xbce   : > { %v4401_v35 = vmax.f32 %v4391_v39, 0.0  ;;  %v4639_v14 = vrot.slane %v7212_v34, %v4638_v33 }
 0xbcf   : > { %v4402_v59 = vmax.f32 %v4393_v21, 0.0 }
 0xbd0   : > { %v4405_v62 = vpack.c.bf16 %v4401_v35, %v4399_v38 }
 0xbd1   : > { %v4406_v50 = vpack.c.bf16 %v4402_v59, %v4400_v30 }
 0xbd3   : > { %4579 = vmatprep.mubr.bf16.mxu1 %v4406_v50 }
 0xbd4   : > { %4580 = vmatmul.mubr.bf16.gmra.mrb[40].mxu1 %v4405_v62 }
 0xc9f   : > { %v5134_v58 = vpop.f32.mrb[36].mxu1 }
 0xca0   : > { %v5135_v60 = vpop.f32.mrb[37].mxu1 }
 0xca1   : > { %v5136_v63 = vadd.f32 %v5135_v60, %v5134_v58  ;;  %v5137_v0 = vpop.f32.mrb[38].mxu1 }
 0xca2   : > { %v5138_v4 = vpop.f32.mrb[39].mxu1 }
 0xca3   : > { %v4574_v5 = vadd.f32 %v5136_v63, %v4442_v43  ;;  %v5139_v7 = vadd.f32 %v5138_v4, %v5137_v0 }
 0xca5   : > { %v4577_v8 = vadd.f32 %v5139_v7, %v4442_v43  ;;  %v4588_v46 = vadd.f32 %v4574_v5, %v7270_v11 }
 0xca7   : > { %v5140_v53 = vpop.f32.mrb[40].mxu1  ;;  %4592 = vadd.xlane.f32.xlu1 %v4588_v46  ;;  %v4589_v45 = vadd.f32 %v4577_v8, %v7272_v16 }
 0xca8   : > { %v5141_v56 = vpop.f32.mrb[41].mxu1 }
 0xca9   : > { %v5142_v17 = vadd.f32 %v5141_v56, %v5140_v53  ;;  %v5143_v20 = vpop.f32.mrb[42].mxu1  ;;  %4594 = vadd.xlane.f32.xlu0 %v4589_v45 }
 0xcaa   : > { %v5144_v18 = vpop.f32.mrb[43].mxu1 }
 0xcab   : > { %v4582_v22 = vadd.f32 %v5142_v17, %v4442_v43  ;;  %v5145_v55 = vadd.f32 %v5144_v18, %v5143_v20 }
 0xcad   : > { %v4585_v26 = vadd.f32 %v5145_v55, %v4442_v43  ;;  %v4590_v15 = vadd.f32 %v4582_v22, %v7281_v24 }
 0xcaf   : > { %4596 = vadd.xlane.f32.xlu1 %v4590_v15  ;;  %v4591_v51 = vadd.f32 %v4585_v26, %v7279_v27 }
 0xcb1   : > { %4598 = vadd.xlane.f32.xlu0 %v4591_v51 }
 0xd34   : > { %v4593_v25 = vpop.xlane.xlu1 %4592 }
 0xd35   : > { %v4600_v11 = vmul.f32 0.0078125, %v4593_v25 }
 0xd36   : > { %v4595_v48 = vpop.xlane.xlu0 %4594 }
 0xd37   : > { %v4604_v31 = vsub.f32 %v4588_v46, %v4600_v11  ;;  %v4601_v2 = vmul.f32 0.0078125, %v4595_v48 }
 0xd39   : > { %v4605_v16 = vsub.f32 %v4589_v45, %v4601_v2  ;;  %v4608_v19 = vmul.f32 %v4604_v31, %v4604_v31 }
 0xd3b   : > { %4612 = vadd.xlane.f32.xlu1 %v4608_v19  ;;  %v4609_v52 = vmul.f32 %v4605_v16, %v4605_v16 }
 0xd3c   : > { %v4597_v6 = vpop.xlane.xlu1 %4596 }
 0xd3d   : > { %v4602_v9 = vmul.f32 0.0078125, %v4597_v6  ;;  %4614 = vadd.xlane.f32.xlu0 %v4609_v52 }
 0xd3e   : > { %v4599_v57 = vpop.xlane.xlu0 %4598 }
 0xd3f   : > { %v4606_v3 = vsub.f32 %v4590_v15, %v4602_v9  ;;  %v4603_v44 = vmul.f32 0.0078125, %v4599_v57 }
 0xd41   : > { %v4607_v24 = vsub.f32 %v4591_v51, %v4603_v44  ;;  %v4610_v12 = vmul.f32 %v4606_v3, %v4606_v3 }
 0xd43   : > { %4616 = vadd.xlane.f32.xlu1 %v4610_v12  ;;  %v4611_v27 = vmul.f32 %v4607_v24, %v4607_v24 }
 0xd45   : > { %4618 = vadd.xlane.f32.xlu0 %v4611_v27 }
 0xdc8   : > { %v4613_v29 = vpop.xlane.xlu1 %4612 }
 0xdc9   : > { %v4620_v40 = vmul.f32 0.0078125, %v4613_v29 }
 0xdca   : > { %v4615_v49 = vpop.xlane.xlu0 %4614 }
 0xdcb   : > { %v4624_v32 = vadd.f32 1e-05, %v4620_v40  ;;  %v4621_v41 = vmul.f32 0.0078125, %v4615_v49 }
 0xdcd   : > { %5623 = vrsqrt.f32 %v4624_v32  ;;  %v4625_v42 = vadd.f32 1e-05, %v4621_v41 }
 0xdcf   : > { %5625 = vrsqrt.f32 %v4625_v42 }
 0xdd0   : > { %v4617_v1 = vpop.xlane.xlu1 %4616 }
 0xdd1   : > { %v4622_v28 = vmul.f32 0.0078125, %v4617_v1 }
 0xdd2   : > { %v4619_v61 = vpop.xlane.xlu0 %4618 }
 0xdd3   : > { %v4626_v10 = vadd.f32 1e-05, %v4622_v28  ;;  %v4623_v47 = vmul.f32 0.0078125, %v4619_v61 }
 0xdd5   : > { %5627 = vrsqrt.f32 %v4626_v10  ;;  %v4627_v37 = vadd.f32 1e-05, %v4623_v47 }
 0xdd7   : > { %v5624_v39 = vpop.eup %5623  ;;  %5629 = vrsqrt.f32 %v4627_v37 }
 0xdd8   : > { %v4632_v21 = vmul.f32 %v5624_v39, %v4604_v31 }
 0xdd9   : > { %v5626_v38 = vpop.eup %5625 }
 0xdda   : > { %v4640_v35 = vmul.f32 %v4639_v14, %v4632_v21  ;;  %v4633_v30 = vmul.f32 %v5626_v38, %v4605_v16 }
 0xddc   : > { %v4648_v59 = vadd.f32 %v4647_v54, %v4640_v35  ;;  %v4641_v62 = vmul.f32 %v4639_v14, %v4633_v30 }
 0xdde   : > { %4652 = vst [vmem:[%s6563_s22] sm:$0xff] %v4648_v59  ;;  %v4649_v36 = vadd.f32 %v4647_v54, %v4641_v62 }
 0xddf   : > { %v5628_v50 = vpop.eup %5627 }
 0xde0   : > { %4653 = vst [vmem:[%s6563_s22 + $0x8] sm:$0xff] %v4649_v36  ;;  %v4634_v23 = vmul.f32 %v5628_v50, %v4606_v3 }
 0xde1   : > { %v5630_v58 = vpop.eup %5629 }
 0xde2   : > { %v4642_v43 = vmul.f32 %v4639_v14, %v4634_v23  ;;  %v4635_v60 = vmul.f32 %v5630_v58, %v4607_v24 }
 0xde4   : > { %v4650_v34 = vadd.f32 %v4647_v54, %v4642_v43  ;;  %v4643_v63 = vmul.f32 %v4639_v14, %v4635_v60 }
 0xde6   : > { %4654 = vst [vmem:[%s6563_s22 + $0x10] sm:$0xff] %v4650_v34  ;;  %v4651_v0 = vadd.f32 %v4647_v54, %v4643_v63 }
 0xde8   : > { %4655 = vst [vmem:[%s6563_s22 + $0x18] sm:$0xff] %v4651_v0 }
 0xde9   : > { %5888 = shalt.err (!%p5885_p2)
}
 0xdea   : > { %s5889_s23 = scalar_lea.hbm %s7310_s3, 512  ;;  %s5893_s27 = scalar_lea.hbm %s7469_s24, 1024 }
 0xdeb   : > { %p5890_p1 = scmp.ne.s32.totalorder %s7310_s3, %s5889_s23  ;;  %p5894_p7 = scmp.lt.u32.totalorder %s7310_s3, %s7469_s24 }
 0xdec   : > { %p5895_p3 = scmp.lt.u32.totalorder %s5893_s27, %s5889_s23  ;;  %p5897_p5 = scmp.lt.u32.totalorder %s5889_s23, %s7310_s3 }
 0xded   : > { %p5891_p12 = pnand %p5890_p1, %p7470_p6 }
 0xdee   : > { %p5896_p11 = por %p5895_p3, %p5894_p7 }
 0xdef   : > { %p5892_p10 = pneg %p5891_p12 }
 0xdf0   : > { %p5898_p9 = por %p5897_p5, %p5896_p11 }
 0xdf2   : > { %p5899_p8 = pnand %p5898_p9, %p5892_p10 }
 0xdf4   : > { %5902 = shalt.err (!%p5899_p8)
}
 0xdf5   : > { %s6038_s16 = smov 128   ;;  %s6039_s14 = smov 8  }
 0xdf6   : > { %5304 = dma.vmem_to_hbm [thread:$0]  (%p7470_p6), %s7312_s18, 512, %s7310_s3, %s4657_s25, %s6038_s16, %s6038_s16, %s6039_s14  }
 0xdf7 PF: > { %p5336_p13 = scmp.ge.s32.totalorder %s6013_s15, 2  ;;  %s4686_s1 = sand.u32 1, %s5985_s30  }
 0xdf8   : > { %p7471_p0 = scmp.ne.s32.totalorder %s7446_s11, 0  ;;  %s4687_s7 = scalar_lea.sflag [#allocation4], %s4686_s1 }
 0xdfa   : > { %p5332_p4 = pnand %p5336_p13, %p7471_p0 }
 0xdfc   : > { %5968 = dma.done.wait (!%p5332_p4), %s4687_s7, 512  }
 0xdfd   : > { %5970 = vsyncadd (!%p5332_p4), %s4687_s7, 4294966784  ;;  %s36_s15 = sadd.s32 1, %s6013_s15   ;;  %s7472_s27 = sld [smem:[#allocation23_spill]] }
 0xdfe   : > { %p33_p2 = scmp.ge.s32.totalorder %s36_s15, 6   ;;  %s7473_s10 = sld [smem:[#allocation31_spill]] }
 0xdff   : > { %s7474_s26 = sld [smem:[#allocation24_spill]]  ;;  %s7475_s12 = sld [smem:[#allocation32_spill]] }
 0xe00   : > { %s7476_s18 = sld [smem:[#allocation27_spill]]  ;;  %s7477_s3 = sld [smem:[#allocation29_spill]] }
 0xe01   : > { %s7478_s14 = sld [smem:[#allocation30_spill]]  ;;  %s7479_s28 = smov %s5981_s29 }
 0xe02   : > { %s7481_s30 = smov %s5989_s9  ;;  %s7484_s11 = smov %s6005_s13 }
 0xe03   :  { %35 = sbr.rel (!%p33_p2) target bundleno = 26 (0x1a), region = 186 }
 0xe04   : > { %s7480_s29 = smov %s7473_s10 }
 0xe05   : > { %s7482_s9 = smov %s7474_s26  ;;  %s7483_s10 = smov %s7475_s12 }
 0xe06   : > { %s7485_s12 = smov %s7476_s18  ;;  %s7486_s13 = smov %s7477_s3 }
 0xe0a   :  { %4692 = vsyncpa [#allocation3], 1 }
 0xe0b   :  { %4694 = vsyncpa [#allocation3 + $0x1], 1 }
 0xe0c   :  { %4695 = vsyncpa [#allocation6], 1 }
 0xe0d   :  { %4697 = vsyncpa [#allocation6 + $0x1], 1 }
 0xe0e   :  { %4698 = vsyncpa [#allocation9], 1 }
 0xe0f   :  { %4700 = vsyncpa [#allocation9 + $0x1], 1 }
 0xe10   :  { %4701 = vsyncpa [#allocation12], 1 }
 0xe11   :  { %4703 = vsyncpa [#allocation12 + $0x1], 1 }
 0xe12   :  { %4704 = vsyncpa [#allocation15], 1 }
 0xe13   :  { %4706 = vsyncpa [#allocation15 + $0x1], 1 }
 0xe14   :  { %4707 = vsyncpa [#allocation4], 1 }
 0xe15   :  { %4709 = vsyncpa [#allocation4 + $0x1], 1 }

</bundles_post_ra>
